<compile_context>
chip_gen: v5e
topology: v5e:2x2
jax: 0.10.0
libtpu: 0.0.40
codegen_flags: <defaults>
</compile_context>

<pallas_src>
import jax
import jax.numpy as jnp
from jax import lax
from jax.experimental import pallas as pl
from jax.experimental.pallas import tpu as pltpu

EPS = 1e-5


# ---------------- shared conv core (BN1/BN2 pre-folded into weights & bias rows) --------
def _conv_core(w_ref, x0_ref, x1_ref, cm_ref, bi_ref, bd_ref):
    # w_ref : (4*Cin*Cout,) SMEM  folded weights, index = tap*Cin*Cout + ci*Cout + co
    # x0_ref: (1, Cin, TG, L)     packed rows (tap kh=0)
    # x1_ref: (1, Cin, TG, L)     packed rows shifted down by one image row (tap kh=1), last row = 0
    # cm_ref: (1, L)              column mask: 0 where lane is the last column of its row segment
    # bi_ref: (Cout, L)           bias row for interior packed row-groups
    # bd_ref: (Cout, L)           correction added on the globally-last packed row-group
    Cin = x0_ref.shape[1]
    TG = x0_ref.shape[2]
    Cout, L = bi_ref.shape
    CC = Cin * Cout

    i = pl.program_id(1)
    n_i = pl.num_programs(1)
    # 1.0 on the packed row-group that contains the last image row (bottom 'same' pad).
    t = lax.broadcasted_iota(jnp.int32, (TG, 1), 0)
    edge = jnp.where(jnp.logical_and(i == n_i - 1, t == TG - 1), 1.0, 0.0)   # (TG, 1)
    cm = cm_ref[0:1, :]                                                      # (1, L)

    accs = [bi_ref[co:co + 1, :] + edge * bd_ref[co:co + 1, :] for co in range(Cout)]
    for ci in range(Cin):
        a = x0_ref[0, ci, :, :]                          # tap (0,0)
        b = pltpu.roll(a, L - 1, axis=1) * cm            # tap (0,1): lane+1, pad column zeroed
        c = x1_ref[0, ci, :, :]                          # tap (1,0): row+1 (zero on last row)
        d = pltpu.roll(c, L - 1, axis=1) * cm            # tap (1,1)
        base = ci * Cout
        for co in range(Cout):
            accs[co] = (accs[co]
                        + w_ref[0 * CC + base + co] * a
                        + w_ref[1 * CC + base + co] * b
                        + w_ref[2 * CC + base + co] * c
                        + w_ref[3 * CC + base + co] * d)
    return accs


# ---------------- pass A: conv + per-block BN2 [sum, sumsq] lane partials (no y write) ---
def _conv_stats_kernel(w_ref, x0_ref, x1_ref, cm_ref, bi_ref, bd_ref, o_ref):
    Cout = bi_ref.shape[0]
    accs = _conv_core(w_ref, x0_ref, x1_ref, cm_ref, bi_ref, bd_ref)
    for co in range(Cout):
        acc = accs[co]                                                   # (TG, L)
        o_ref[0, 0, co:co + 1, :] = jnp.sum(acc, axis=0, keepdims=True)  # sum  (full-lane store)
        o_ref[0, 0, Cout + co:Cout + co + 1, :] = jnp.sum(acc * acc, axis=0, keepdims=True)


# ---------------- pass B: conv with BN2 folded in, write final output tile --------------
def _conv_out_kernel(w_ref, x0_ref, x1_ref, cm_ref, bi_ref, bd_ref, o_ref):
    accs = _conv_core(w_ref, x0_ref, x1_ref, cm_ref, bi_ref, bd_ref)
    for co, acc in enumerate(accs):
        o_ref[0, co, :, :] = acc


# ---------------- JAX glue ---------------------------------------------------------------
def _bilinear_upsample_x2_align_corners(x_nchw):
    """nn.Upsample(scale_factor=2, mode='bilinear', align_corners=True), NCHW."""
    def lerp_axis(a, axis, n_in):
        n_out = 2 * n_in
        pos = jnp.arange(n_out, dtype=jnp.float32) * (n_in - 1) / (n_out - 1)
        i0 = jnp.floor(pos).astype(jnp.int32)
        i1 = jnp.minimum(i0 + 1, n_in - 1)
        w1 = pos - i0.astype(jnp.float32)
        a0 = jnp.take(a, i0, axis=axis)
        a1 = jnp.take(a, i1, axis=axis)
        shape = [1] * a.ndim
        shape[axis] = n_out
        return a0 * (1.0 - w1.reshape(shape)) + a1 * w1.reshape(shape)

    _, _, H, W = x_nchw.shape
    x = lerp_axis(x_nchw, 2, H)
    x = lerp_axis(x, 3, W)
    return x


def _pick_row_tile(G, Cin, Cout, L):
    """Largest multiple-of-8 row-group tile dividing G with bounded (double-buffered) VMEM."""
    budget = 4 << 20                                   # bytes per double-buffered block set
    per_row = (2 * Cin + Cout) * L * 4 * 2
    max_tg = max(1, budget // per_row)
    for tg in (512, 256, 128, 64, 32, 16, 8):
        if tg <= G and tg <= max_tg and G % tg == 0:
            return tg
    return G                                           # small G: take the whole extent


@jax.jit
def upconv_forward(x, w4, bias, g1, b1, g2, b2):
    # x: (N, Cin, H0, W0) NCHW f32.  w4: (4, Cin, Cout), tap index = kh*2 + kw.
    x = x.astype(jnp.float32)
    xu = _bilinear_upsample_x2_align_corners(x)                  # (N, Cin, H, W)
    N, Cin, H, W = xu.shape
    Cout = w4.shape[-1]
    cnt = jnp.float32(N * H * W)

    # ---- BN1 batch stats: plain jnp reduction (XLA fuses it with the upsample lerp) ----
    s1 = jnp.sum(xu, axis=(0, 2, 3))
    q1 = jnp.sum(xu * xu, axis=(0, 2, 3))
    m1 = s1 / cnt
    v1 = jnp.maximum(q1 / cnt - m1 * m1, 0.0)                    # biased batch variance
    scale1 = g1 / jnp.sqrt(v1 + EPS)
    shift1 = b1 - m1 * scale1

    # ---- fold BN1 into conv: scale into weights, shift into per-tap bias terms ----
    wfold1 = (w4 * scale1[None, :, None]).reshape(-1)            # (4*Cin*Cout,)
    ctap = jnp.einsum("tio,i->to", w4, shift1)                   # (4, Cout)

    # ---- lane-dense packing: RW consecutive rows share the 128-lane dim ----
    RW = 128 // W if (W <= 128 and 128 % W == 0 and H % max(1, 128 // W) == 0) else 1
    G = H // RW
    L = RW * W
    x0p = xu.reshape(N, Cin, G, L)                               # free row-major reshape
    x1 = jnp.concatenate([xu[:, :, 1:, :], jnp.zeros((N, Cin, 1, W), jnp.float32)], axis=2)
    x1p = x1.reshape(N, Cin, G, L)                               # kh=1 taps, bottom pad = 0

    lane = jnp.arange(L)
    colmask = (lane % W != W - 1).astype(jnp.float32)[None, :]   # kw=1 taps valid      (1, L)
    rowlast = (lane // W == RW - 1).astype(jnp.float32)[None, :] # lanes of the last image row
    # pre-BN2 bias rows: interior row-groups, and the correction on the last row-group.
    bint = (bias + ctap[0] + ctap[2])[:, None] + (ctap[1] + ctap[3])[:, None] * colmask
    bdiff = -rowlast * (ctap[2][:, None] + ctap[3][:, None] * colmask)

    TG = _pick_row_tile(G, Cin, Cout, L)
    nI = G // TG
    grid = (N, nI)
    x_spec = pl.BlockSpec((1, Cin, TG, L), lambda n, i: (n, 0, i, 0))
    small_specs = [
        pl.BlockSpec((1, L), lambda n, i: (0, 0)),
        pl.BlockSpec((Cout, L), lambda n, i: (0, 0)),
        pl.BlockSpec((Cout, L), lambda n, i: (0, 0)),
    ]
    cparams = pltpu.CompilerParams(dimension_semantics=("parallel", "parallel"))

    # ---- pass A: folded conv, emit only BN2 [sum, sumsq] partials ----
    part = pl.pallas_call(
        _conv_stats_kernel,
        out_shape=jax.ShapeDtypeStruct((N, nI, 2 * Cout, L), jnp.float32),
        grid=grid,
        in_specs=[pl.BlockSpec(memory_space=pltpu.MemorySpace.SMEM),
                  x_spec, x_spec] + small_specs,
        out_specs=pl.BlockSpec((1, 1, 2 * Cout, L), lambda n, i: (n, i, 0, 0)),
        compiler_params=cparams,
    )(wfold1, x0p, x1p, colmask, bint, bdiff)

    s2 = jnp.sum(part[:, :, :Cout, :], axis=(0, 1, 3))
    q2 = jnp.sum(part[:, :, Cout:, :], axis=(0, 1, 3))
    m2 = s2 / cnt
    v2 = jnp.maximum(q2 / cnt - m2 * m2, 0.0)
    scale2 = g2 / jnp.sqrt(v2 + EPS)
    shift2 = b2 - m2 * scale2

    # ---- pass B: recompute the cheap folded conv with BN2 folded in; write final output ----
    wfold2 = (wfold1.reshape(4, Cin, Cout) * scale2[None, None, :]).reshape(-1)
    bint2 = bint * scale2[:, None] + shift2[:, None]
    bdiff2 = bdiff * scale2[:, None]
    yp = pl.pallas_call(
        _conv_out_kernel,
        out_shape=jax.ShapeDtypeStruct((N, Cout, G, L), jnp.float32),
        grid=grid,
        in_specs=[pl.BlockSpec(memory_space=pltpu.MemorySpace.SMEM),
                  x_spec, x_spec] + small_specs,
        out_specs=pl.BlockSpec((1, Cout, TG, L), lambda n, i: (n, 0, i, 0)),
        compiler_params=cparams,
    )(wfold2, x0p, x1p, colmask, bint2, bdiff2)

    return yp.reshape(N, Cout, H, W)                             # NCHW, free reshape


def upconv_reference(x_nchw, w_oihw, bias, g1, b1, g2, b2):
    """Pure-JAX reference mirroring the PyTorch forward (training-mode BN)."""
    xu = _bilinear_upsample_x2_align_corners(x_nchw)
    m1 = jnp.mean(xu, axis=(0, 2, 3), keepdims=True)
    v1 = jnp.mean((xu - m1) ** 2, axis=(0, 2, 3), keepdims=True)
    xn = (xu - m1) / jnp.sqrt(v1 + EPS) * g1.reshape(1, -1, 1, 1) + b1.reshape(1, -1, 1, 1)
    y = lax.conv_general_dilated(xn, w_oihw, (1, 1), ((0, 1), (0, 1)),
                                 dimension_numbers=('NCHW', 'OIHW', 'NCHW'))
    y = y + bias.reshape(1, -1, 1, 1)
    m2 = jnp.mean(y, axis=(0, 2, 3), keepdims=True)
    v2 = jnp.mean((y - m2) ** 2, axis=(0, 2, 3), keepdims=True)
    return (y - m2) / jnp.sqrt(v2 + EPS) * g2.reshape(1, -1, 1, 1) + b2.reshape(1, -1, 1, 1)


if __name__ == "__main__":
    N, Cin, Cout, H0, W0 = 2, 4, 8, 16, 16

    key = jax.random.PRNGKey(0)
    kx, kw, kb, kg1, kb1, kg2, kb2 = jax.random.split(key, 7)

    x = jax.random.normal(kx, (N, Cin, H0, W0), jnp.float32)
    # conv weight generated as (kh, kw, Cin, Cout); PyTorch stores (Cout, Cin, kh, kw)
    w_hwio = 0.2 * jax.random.normal(kw, (2, 2, Cin, Cout), jnp.float32)
    bias = 0.1 * jax.random.normal(kb, (Cout,), jnp.float32)
    g1 = 1.0 + 0.1 * jax.random.normal(kg1, (Cin,), jnp.float32)
    b1 = 0.1 * jax.random.normal(kb1, (Cin,), jnp.float32)
    g2 = 1.0 + 0.1 * jax.random.normal(kg2, (Cout,), jnp.float32)
    b2 = 0.1 * jax.random.normal(kb2, (Cout,), jnp.float32)

    w4 = w_hwio.reshape(4, Cin, Cout)                 # tap-major kernel layout
    w_oihw = jnp.transpose(w_hwio, (3, 2, 0, 1))      # reference layout (Cout, Cin, kh, kw)

    out = upconv_forward(x, w4, bias, g1, b1, g2, b2)
    out = jax.block_until_ready(out)

    ref = upconv_reference(x, w_oihw, bias, g1, b1, g2, b2)
    assert out.shape == (N, Cout, 2 * H0, 2 * W0), out.shape
    max_err = float(jnp.max(jnp.abs(out - ref)))
    assert jnp.allclose(out, ref, atol=1e-3, rtol=1e-3), f"max abs err {max_err}"

    print("KERNEL_OK")
</pallas_src>

<mosaic_0001>
module attributes {stable_mosaic.version = 11 : i64} {
  func.func @_conv_stats_kernel(%arg0: i32, %arg1: i32, %arg2: memref<128xf32, #tpu.memory_space<smem>>, %arg3: memref<1x4x8x128xf32, #tpu.memory_space<vmem>>, %arg4: memref<1x4x8x128xf32, #tpu.memory_space<vmem>>, %arg5: memref<1x128xf32, #tpu.memory_space<vmem>>, %arg6: memref<8x128xf32, #tpu.memory_space<vmem>>, %arg7: memref<8x128xf32, #tpu.memory_space<vmem>>, %arg8: memref<1x1x16x128xf32, #tpu.memory_space<vmem>>) attributes {dimension_semantics = [#tpu.dimension_semantics<parallel>, #tpu.dimension_semantics<parallel>], iteration_bounds = array<i64: 2, 1>, scalar_prefetch = 0 : i64, scratch_operands = 0 : i64, tpu.core_type = #tpu.core_type<tc>, window_params = [{transform_indices = @transform_0, window_bounds = array<i64: 128>}, {transform_indices = @transform_1, window_bounds = array<i64: 1, 4, 8, 128>}, {transform_indices = @transform_2, window_bounds = array<i64: 1, 4, 8, 128>}, {pipeline_mode = #tpu.pipeline_mode<synchronous>, transform_indices = @transform_3, window_bounds = array<i64: 1, 128>}, {pipeline_mode = #tpu.pipeline_mode<synchronous>, transform_indices = @transform_4, window_bounds = array<i64: 8, 128>}, {pipeline_mode = #tpu.pipeline_mode<synchronous>, transform_indices = @transform_5, window_bounds = array<i64: 8, 128>}, {transform_indices = @transform_6, window_bounds = array<i64: 1, 1, 16, 128>}]} {
    %0 = tpu.iota {dimensions = array<i32: 0>} : vector<8x1xi32>
    %c0_i32 = arith.constant 0 : i32
    %1 = arith.cmpi eq, %arg1, %c0_i32 : i32
    %c7_i32 = arith.constant 7 : i32
    %2 = vector.broadcast %c7_i32 : i32 to vector<8x1xi32>
    %3 = arith.cmpi eq, %0, %2 : vector<8x1xi32>
    %4 = vector.broadcast %1 : i1 to vector<8x1xi1>
    %5 = arith.andi %4, %3 : vector<8x1xi1>
    %cst = arith.constant 1.000000e+00 : f32
    %cst_0 = arith.constant 0.000000e+00 : f32
    %6 = vector.broadcast %cst : f32 to vector<8x1xf32>
    %7 = vector.broadcast %cst_0 : f32 to vector<8x1xf32>
    %8 = arith.select %5, %6, %7 : vector<8x1xi1>, vector<8x1xf32>
    %c0 = arith.constant 0 : index
    %c0_1 = arith.constant 0 : index
    %9 = vector.load %arg5[%c0, %c0_1] : memref<1x128xf32, #tpu.memory_space<vmem>>, vector<1x128xf32>
    %c0_2 = arith.constant 0 : index
    %c0_3 = arith.constant 0 : index
    %10 = vector.load %arg6[%c0_2, %c0_3] : memref<8x128xf32, #tpu.memory_space<vmem>>, vector<1x128xf32>
    %c0_4 = arith.constant 0 : index
    %c0_5 = arith.constant 0 : index
    %11 = vector.load %arg7[%c0_4, %c0_5] : memref<8x128xf32, #tpu.memory_space<vmem>>, vector<1x128xf32>
    %12 = vector.broadcast %8 : vector<8x1xf32> to vector<8x128xf32>
    %13 = vector.broadcast %11 : vector<1x128xf32> to vector<8x128xf32>
    %14 = arith.mulf %12, %13 : vector<8x128xf32>
    %15 = vector.broadcast %10 : vector<1x128xf32> to vector<8x128xf32>
    %16 = arith.addf %15, %14 : vector<8x128xf32>
    %c1 = arith.constant 1 : index
    %c0_6 = arith.constant 0 : index
    %17 = vector.load %arg6[%c1, %c0_6] : memref<8x128xf32, #tpu.memory_space<vmem>>, vector<1x128xf32>
    %c1_7 = arith.constant 1 : index
    %c0_8 = arith.constant 0 : index
    %18 = vector.load %arg7[%c1_7, %c0_8] : memref<8x128xf32, #tpu.memory_space<vmem>>, vector<1x128xf32>
    %19 = vector.broadcast %8 : vector<8x1xf32> to vector<8x128xf32>
    %20 = vector.broadcast %18 : vector<1x128xf32> to vector<8x128xf32>
    %21 = arith.mulf %19, %20 : vector<8x128xf32>
    %22 = vector.broadcast %17 : vector<1x128xf32> to vector<8x128xf32>
    %23 = arith.addf %22, %21 : vector<8x128xf32>
    %c2 = arith.constant 2 : index
    %c0_9 = arith.constant 0 : index
    %24 = vector.load %arg6[%c2, %c0_9] : memref<8x128xf32, #tpu.memory_space<vmem>>, vector<1x128xf32>
    %c2_10 = arith.constant 2 : index
    %c0_11 = arith.constant 0 : index
    %25 = vector.load %arg7[%c2_10, %c0_11] : memref<8x128xf32, #tpu.memory_space<vmem>>, vector<1x128xf32>
    %26 = vector.broadcast %8 : vector<8x1xf32> to vector<8x128xf32>
    %27 = vector.broadcast %25 : vector<1x128xf32> to vector<8x128xf32>
    %28 = arith.mulf %26, %27 : vector<8x128xf32>
    %29 = vector.broadcast %24 : vector<1x128xf32> to vector<8x128xf32>
    %30 = arith.addf %29, %28 : vector<8x128xf32>
    %c3 = arith.constant 3 : index
    %c0_12 = arith.constant 0 : index
    %31 = vector.load %arg6[%c3, %c0_12] : memref<8x128xf32, #tpu.memory_space<vmem>>, vector<1x128xf32>
    %c3_13 = arith.constant 3 : index
    %c0_14 = arith.constant 0 : index
    %32 = vector.load %arg7[%c3_13, %c0_14] : memref<8x128xf32, #tpu.memory_space<vmem>>, vector<1x128xf32>
    %33 = vector.broadcast %8 : vector<8x1xf32> to vector<8x128xf32>
    %34 = vector.broadcast %32 : vector<1x128xf32> to vector<8x128xf32>
    %35 = arith.mulf %33, %34 : vector<8x128xf32>
    %36 = vector.broadcast %31 : vector<1x128xf32> to vector<8x128xf32>
    %37 = arith.addf %36, %35 : vector<8x128xf32>
    %c4 = arith.constant 4 : index
    %c0_15 = arith.constant 0 : index
    %38 = vector.load %arg6[%c4, %c0_15] : memref<8x128xf32, #tpu.memory_space<vmem>>, vector<1x128xf32>
    %c4_16 = arith.constant 4 : index
    %c0_17 = arith.constant 0 : index
    %39 = vector.load %arg7[%c4_16, %c0_17] : memref<8x128xf32, #tpu.memory_space<vmem>>, vector<1x128xf32>
    %40 = vector.broadcast %8 : vector<8x1xf32> to vector<8x128xf32>
    %41 = vector.broadcast %39 : vector<1x128xf32> to vector<8x128xf32>
    %42 = arith.mulf %40, %41 : vector<8x128xf32>
    %43 = vector.broadcast %38 : vector<1x128xf32> to vector<8x128xf32>
    %44 = arith.addf %43, %42 : vector<8x128xf32>
    %c5 = arith.constant 5 : index
    %c0_18 = arith.constant 0 : index
    %45 = vector.load %arg6[%c5, %c0_18] : memref<8x128xf32, #tpu.memory_space<vmem>>, vector<1x128xf32>
    %c5_19 = arith.constant 5 : index
    %c0_20 = arith.constant 0 : index
    %46 = vector.load %arg7[%c5_19, %c0_20] : memref<8x128xf32, #tpu.memory_space<vmem>>, vector<1x128xf32>
    %47 = vector.broadcast %8 : vector<8x1xf32> to vector<8x128xf32>
    %48 = vector.broadcast %46 : vector<1x128xf32> to vector<8x128xf32>
    %49 = arith.mulf %47, %48 : vector<8x128xf32>
    %50 = vector.broadcast %45 : vector<1x128xf32> to vector<8x128xf32>
    %51 = arith.addf %50, %49 : vector<8x128xf32>
    %c6 = arith.constant 6 : index
    %c0_21 = arith.constant 0 : index
    %52 = vector.load %arg6[%c6, %c0_21] : memref<8x128xf32, #tpu.memory_space<vmem>>, vector<1x128xf32>
    %c6_22 = arith.constant 6 : index
    %c0_23 = arith.constant 0 : index
    %53 = vector.load %arg7[%c6_22, %c0_23] : memref<8x128xf32, #tpu.memory_space<vmem>>, vector<1x128xf32>
    %54 = vector.broadcast %8 : vector<8x1xf32> to vector<8x128xf32>
    %55 = vector.broadcast %53 : vector<1x128xf32> to vector<8x128xf32>
    %56 = arith.mulf %54, %55 : vector<8x128xf32>
    %57 = vector.broadcast %52 : vector<1x128xf32> to vector<8x128xf32>
    %58 = arith.addf %57, %56 : vector<8x128xf32>
    %c7 = arith.constant 7 : index
    %c0_24 = arith.constant 0 : index
    %59 = vector.load %arg6[%c7, %c0_24] : memref<8x128xf32, #tpu.memory_space<vmem>>, vector<1x128xf32>
    %c7_25 = arith.constant 7 : index
    %c0_26 = arith.constant 0 : index
    %60 = vector.load %arg7[%c7_25, %c0_26] : memref<8x128xf32, #tpu.memory_space<vmem>>, vector<1x128xf32>
    %61 = vector.broadcast %8 : vector<8x1xf32> to vector<8x128xf32>
    %62 = vector.broadcast %60 : vector<1x128xf32> to vector<8x128xf32>
    %63 = arith.mulf %61, %62 : vector<8x128xf32>
    %64 = vector.broadcast %59 : vector<1x128xf32> to vector<8x128xf32>
    %65 = arith.addf %64, %63 : vector<8x128xf32>
    %c0_27 = arith.constant 0 : index
    %c0_28 = arith.constant 0 : index
    %c0_29 = arith.constant 0 : index
    %c0_30 = arith.constant 0 : index
    %66 = vector.load %arg3[%c0_27, %c0_28, %c0_29, %c0_30] : memref<1x4x8x128xf32, #tpu.memory_space<vmem>>, vector<1x1x8x128xf32>
    %67 = vector.shape_cast %66 : vector<1x1x8x128xf32> to vector<8x128xf32>
    %c127_i32 = arith.constant 127 : i32
    %68 = tpu.dynamic_rotate %67 by %c127_i32 dim 1 : vector<8x128xf32>, i32 -> vector<8x128xf32>
    %69 = vector.broadcast %9 : vector<1x128xf32> to vector<8x128xf32>
    %70 = arith.mulf %68, %69 : vector<8x128xf32>
    %c0_31 = arith.constant 0 : index
    %c0_32 = arith.constant 0 : index
    %c0_33 = arith.constant 0 : index
    %c0_34 = arith.constant 0 : index
    %71 = vector.load %arg4[%c0_31, %c0_32, %c0_33, %c0_34] : memref<1x4x8x128xf32, #tpu.memory_space<vmem>>, vector<1x1x8x128xf32>
    %72 = vector.shape_cast %71 : vector<1x1x8x128xf32> to vector<8x128xf32>
    %c127_i32_35 = arith.constant 127 : i32
    %73 = tpu.dynamic_rotate %72 by %c127_i32_35 dim 1 : vector<8x128xf32>, i32 -> vector<8x128xf32>
    %74 = vector.broadcast %9 : vector<1x128xf32> to vector<8x128xf32>
    %75 = arith.mulf %73, %74 : vector<8x128xf32>
    %c0_36 = arith.constant 0 : index
    %76 = memref.load %arg2[%c0_36] : memref<128xf32, #tpu.memory_space<smem>>
    %77 = vector.broadcast %76 : f32 to vector<8x128xf32>
    %78 = arith.mulf %77, %67 : vector<8x128xf32>
    %79 = arith.addf %16, %78 : vector<8x128xf32>
    %c32 = arith.constant 32 : index
    %80 = memref.load %arg2[%c32] : memref<128xf32, #tpu.memory_space<smem>>
    %81 = vector.broadcast %80 : f32 to vector<8x128xf32>
    %82 = arith.mulf %81, %70 : vector<8x128xf32>
    %83 = arith.addf %79, %82 : vector<8x128xf32>
    %c64 = arith.constant 64 : index
    %84 = memref.load %arg2[%c64] : memref<128xf32, #tpu.memory_space<smem>>
    %85 = vector.broadcast %84 : f32 to vector<8x128xf32>
    %86 = arith.mulf %85, %72 : vector<8x128xf32>
    %87 = arith.addf %83, %86 : vector<8x128xf32>
    %c96 = arith.constant 96 : index
    %88 = memref.load %arg2[%c96] : memref<128xf32, #tpu.memory_space<smem>>
    %89 = vector.broadcast %88 : f32 to vector<8x128xf32>
    %90 = arith.mulf %89, %75 : vector<8x128xf32>
    %91 = arith.addf %87, %90 : vector<8x128xf32>
    %c1_37 = arith.constant 1 : index
    %92 = memref.load %arg2[%c1_37] : memref<128xf32, #tpu.memory_space<smem>>
    %93 = vector.broadcast %92 : f32 to vector<8x128xf32>
    %94 = arith.mulf %93, %67 : vector<8x128xf32>
    %95 = arith.addf %23, %94 : vector<8x128xf32>
    %c33 = arith.constant 33 : index
    %96 = memref.load %arg2[%c33] : memref<128xf32, #tpu.memory_space<smem>>
    %97 = vector.broadcast %96 : f32 to vector<8x128xf32>
    %98 = arith.mulf %97, %70 : vector<8x128xf32>
    %99 = arith.addf %95, %98 : vector<8x128xf32>
    %c65 = arith.constant 65 : index
    %100 = memref.load %arg2[%c65] : memref<128xf32, #tpu.memory_space<smem>>
    %101 = vector.broadcast %100 : f32 to vector<8x128xf32>
    %102 = arith.mulf %101, %72 : vector<8x128xf32>
    %103 = arith.addf %99, %102 : vector<8x128xf32>
    %c97 = arith.constant 97 : index
    %104 = memref.load %arg2[%c97] : memref<128xf32, #tpu.memory_space<smem>>
    %105 = vector.broadcast %104 : f32 to vector<8x128xf32>
    %106 = arith.mulf %105, %75 : vector<8x128xf32>
    %107 = arith.addf %103, %106 : vector<8x128xf32>
    %c2_38 = arith.constant 2 : index
    %108 = memref.load %arg2[%c2_38] : memref<128xf32, #tpu.memory_space<smem>>
    %109 = vector.broadcast %108 : f32 to vector<8x128xf32>
    %110 = arith.mulf %109, %67 : vector<8x128xf32>
    %111 = arith.addf %30, %110 : vector<8x128xf32>
    %c34 = arith.constant 34 : index
    %112 = memref.load %arg2[%c34] : memref<128xf32, #tpu.memory_space<smem>>
    %113 = vector.broadcast %112 : f32 to vector<8x128xf32>
    %114 = arith.mulf %113, %70 : vector<8x128xf32>
    %115 = arith.addf %111, %114 : vector<8x128xf32>
    %c66 = arith.constant 66 : index
    %116 = memref.load %arg2[%c66] : memref<128xf32, #tpu.memory_space<smem>>
    %117 = vector.broadcast %116 : f32 to vector<8x128xf32>
    %118 = arith.mulf %117, %72 : vector<8x128xf32>
    %119 = arith.addf %115, %118 : vector<8x128xf32>
    %c98 = arith.constant 98 : index
    %120 = memref.load %arg2[%c98] : memref<128xf32, #tpu.memory_space<smem>>
    %121 = vector.broadcast %120 : f32 to vector<8x128xf32>
    %122 = arith.mulf %121, %75 : vector<8x128xf32>
    %123 = arith.addf %119, %122 : vector<8x128xf32>
    %c3_39 = arith.constant 3 : index
    %124 = memref.load %arg2[%c3_39] : memref<128xf32, #tpu.memory_space<smem>>
    %125 = vector.broadcast %124 : f32 to vector<8x128xf32>
    %126 = arith.mulf %125, %67 : vector<8x128xf32>
    %127 = arith.addf %37, %126 : vector<8x128xf32>
    %c35 = arith.constant 35 : index
    %128 = memref.load %arg2[%c35] : memref<128xf32, #tpu.memory_space<smem>>
    %129 = vector.broadcast %128 : f32 to vector<8x128xf32>
    %130 = arith.mulf %129, %70 : vector<8x128xf32>
    %131 = arith.addf %127, %130 : vector<8x128xf32>
    %c67 = arith.constant 67 : index
    %132 = memref.load %arg2[%c67] : memref<128xf32, #tpu.memory_space<smem>>
    %133 = vector.broadcast %132 : f32 to vector<8x128xf32>
    %134 = arith.mulf %133, %72 : vector<8x128xf32>
    %135 = arith.addf %131, %134 : vector<8x128xf32>
    %c99 = arith.constant 99 : index
    %136 = memref.load %arg2[%c99] : memref<128xf32, #tpu.memory_space<smem>>
    %137 = vector.broadcast %136 : f32 to vector<8x128xf32>
    %138 = arith.mulf %137, %75 : vector<8x128xf32>
    %139 = arith.addf %135, %138 : vector<8x128xf32>
    %c4_40 = arith.constant 4 : index
    %140 = memref.load %arg2[%c4_40] : memref<128xf32, #tpu.memory_space<smem>>
    %141 = vector.broadcast %140 : f32 to vector<8x128xf32>
    %142 = arith.mulf %141, %67 : vector<8x128xf32>
    %143 = arith.addf %44, %142 : vector<8x128xf32>
    %c36 = arith.constant 36 : index
    %144 = memref.load %arg2[%c36] : memref<128xf32, #tpu.memory_space<smem>>
    %145 = vector.broadcast %144 : f32 to vector<8x128xf32>
    %146 = arith.mulf %145, %70 : vector<8x128xf32>
    %147 = arith.addf %143, %146 : vector<8x128xf32>
    %c68 = arith.constant 68 : index
    %148 = memref.load %arg2[%c68] : memref<128xf32, #tpu.memory_space<smem>>
    %149 = vector.broadcast %148 : f32 to vector<8x128xf32>
    %150 = arith.mulf %149, %72 : vector<8x128xf32>
    %151 = arith.addf %147, %150 : vector<8x128xf32>
    %c100 = arith.constant 100 : index
    %152 = memref.load %arg2[%c100] : memref<128xf32, #tpu.memory_space<smem>>
    %153 = vector.broadcast %152 : f32 to vector<8x128xf32>
    %154 = arith.mulf %153, %75 : vector<8x128xf32>
    %155 = arith.addf %151, %154 : vector<8x128xf32>
    %c5_41 = arith.constant 5 : index
    %156 = memref.load %arg2[%c5_41] : memref<128xf32, #tpu.memory_space<smem>>
    %157 = vector.broadcast %156 : f32 to vector<8x128xf32>
    %158 = arith.mulf %157, %67 : vector<8x128xf32>
    %159 = arith.addf %51, %158 : vector<8x128xf32>
    %c37 = arith.constant 37 : index
    %160 = memref.load %arg2[%c37] : memref<128xf32, #tpu.memory_space<smem>>
    %161 = vector.broadcast %160 : f32 to vector<8x128xf32>
    %162 = arith.mulf %161, %70 : vector<8x128xf32>
    %163 = arith.addf %159, %162 : vector<8x128xf32>
    %c69 = arith.constant 69 : index
    %164 = memref.load %arg2[%c69] : memref<128xf32, #tpu.memory_space<smem>>
    %165 = vector.broadcast %164 : f32 to vector<8x128xf32>
    %166 = arith.mulf %165, %72 : vector<8x128xf32>
    %167 = arith.addf %163, %166 : vector<8x128xf32>
    %c101 = arith.constant 101 : index
    %168 = memref.load %arg2[%c101] : memref<128xf32, #tpu.memory_space<smem>>
    %169 = vector.broadcast %168 : f32 to vector<8x128xf32>
    %170 = arith.mulf %169, %75 : vector<8x128xf32>
    %171 = arith.addf %167, %170 : vector<8x128xf32>
    %c6_42 = arith.constant 6 : index
    %172 = memref.load %arg2[%c6_42] : memref<128xf32, #tpu.memory_space<smem>>
    %173 = vector.broadcast %172 : f32 to vector<8x128xf32>
    %174 = arith.mulf %173, %67 : vector<8x128xf32>
    %175 = arith.addf %58, %174 : vector<8x128xf32>
    %c38 = arith.constant 38 : index
    %176 = memref.load %arg2[%c38] : memref<128xf32, #tpu.memory_space<smem>>
    %177 = vector.broadcast %176 : f32 to vector<8x128xf32>
    %178 = arith.mulf %177, %70 : vector<8x128xf32>
    %179 = arith.addf %175, %178 : vector<8x128xf32>
    %c70 = arith.constant 70 : index
    %180 = memref.load %arg2[%c70] : memref<128xf32, #tpu.memory_space<smem>>
    %181 = vector.broadcast %180 : f32 to vector<8x128xf32>
    %182 = arith.mulf %181, %72 : vector<8x128xf32>
    %183 = arith.addf %179, %182 : vector<8x128xf32>
    %c102 = arith.constant 102 : index
    %184 = memref.load %arg2[%c102] : memref<128xf32, #tpu.memory_space<smem>>
    %185 = vector.broadcast %184 : f32 to vector<8x128xf32>
    %186 = arith.mulf %185, %75 : vector<8x128xf32>
    %187 = arith.addf %183, %186 : vector<8x128xf32>
    %c7_43 = arith.constant 7 : index
    %188 = memref.load %arg2[%c7_43] : memref<128xf32, #tpu.memory_space<smem>>
    %189 = vector.broadcast %188 : f32 to vector<8x128xf32>
    %190 = arith.mulf %189, %67 : vector<8x128xf32>
    %191 = arith.addf %65, %190 : vector<8x128xf32>
    %c39 = arith.constant 39 : index
    %192 = memref.load %arg2[%c39] : memref<128xf32, #tpu.memory_space<smem>>
    %193 = vector.broadcast %192 : f32 to vector<8x128xf32>
    %194 = arith.mulf %193, %70 : vector<8x128xf32>
    %195 = arith.addf %191, %194 : vector<8x128xf32>
    %c71 = arith.constant 71 : index
    %196 = memref.load %arg2[%c71] : memref<128xf32, #tpu.memory_space<smem>>
    %197 = vector.broadcast %196 : f32 to vector<8x128xf32>
    %198 = arith.mulf %197, %72 : vector<8x128xf32>
    %199 = arith.addf %195, %198 : vector<8x128xf32>
    %c103 = arith.constant 103 : index
    %200 = memref.load %arg2[%c103] : memref<128xf32, #tpu.memory_space<smem>>
    %201 = vector.broadcast %200 : f32 to vector<8x128xf32>
    %202 = arith.mulf %201, %75 : vector<8x128xf32>
    %203 = arith.addf %199, %202 : vector<8x128xf32>
    %c0_44 = arith.constant 0 : index
    %c1_45 = arith.constant 1 : index
    %c0_46 = arith.constant 0 : index
    %c0_47 = arith.constant 0 : index
    %204 = vector.load %arg3[%c0_44, %c1_45, %c0_46, %c0_47] : memref<1x4x8x128xf32, #tpu.memory_space<vmem>>, vector<1x1x8x128xf32>
    %205 = vector.shape_cast %204 : vector<1x1x8x128xf32> to vector<8x128xf32>
    %c127_i32_48 = arith.constant 127 : i32
    %206 = tpu.dynamic_rotate %205 by %c127_i32_48 dim 1 : vector<8x128xf32>, i32 -> vector<8x128xf32>
    %207 = vector.broadcast %9 : vector<1x128xf32> to vector<8x128xf32>
    %208 = arith.mulf %206, %207 : vector<8x128xf32>
    %c0_49 = arith.constant 0 : index
    %c1_50 = arith.constant 1 : index
    %c0_51 = arith.constant 0 : index
    %c0_52 = arith.constant 0 : index
    %209 = vector.load %arg4[%c0_49, %c1_50, %c0_51, %c0_52] : memref<1x4x8x128xf32, #tpu.memory_space<vmem>>, vector<1x1x8x128xf32>
    %210 = vector.shape_cast %209 : vector<1x1x8x128xf32> to vector<8x128xf32>
    %c127_i32_53 = arith.constant 127 : i32
    %211 = tpu.dynamic_rotate %210 by %c127_i32_53 dim 1 : vector<8x128xf32>, i32 -> vector<8x128xf32>
    %212 = vector.broadcast %9 : vector<1x128xf32> to vector<8x128xf32>
    %213 = arith.mulf %211, %212 : vector<8x128xf32>
    %c8 = arith.constant 8 : index
    %214 = memref.load %arg2[%c8] : memref<128xf32, #tpu.memory_space<smem>>
    %215 = vector.broadcast %214 : f32 to vector<8x128xf32>
    %216 = arith.mulf %215, %205 : vector<8x128xf32>
    %217 = arith.addf %91, %216 : vector<8x128xf32>
    %c40 = arith.constant 40 : index
    %218 = memref.load %arg2[%c40] : memref<128xf32, #tpu.memory_space<smem>>
    %219 = vector.broadcast %218 : f32 to vector<8x128xf32>
    %220 = arith.mulf %219, %208 : vector<8x128xf32>
    %221 = arith.addf %217, %220 : vector<8x128xf32>
    %c72 = arith.constant 72 : index
    %222 = memref.load %arg2[%c72] : memref<128xf32, #tpu.memory_space<smem>>
    %223 = vector.broadcast %222 : f32 to vector<8x128xf32>
    %224 = arith.mulf %223, %210 : vector<8x128xf32>
    %225 = arith.addf %221, %224 : vector<8x128xf32>
    %c104 = arith.constant 104 : index
    %226 = memref.load %arg2[%c104] : memref<128xf32, #tpu.memory_space<smem>>
    %227 = vector.broadcast %226 : f32 to vector<8x128xf32>
    %228 = arith.mulf %227, %213 : vector<8x128xf32>
    %229 = arith.addf %225, %228 : vector<8x128xf32>
    %c9 = arith.constant 9 : index
    %230 = memref.load %arg2[%c9] : memref<128xf32, #tpu.memory_space<smem>>
    %231 = vector.broadcast %230 : f32 to vector<8x128xf32>
    %232 = arith.mulf %231, %205 : vector<8x128xf32>
    %233 = arith.addf %107, %232 : vector<8x128xf32>
    %c41 = arith.constant 41 : index
    %234 = memref.load %arg2[%c41] : memref<128xf32, #tpu.memory_space<smem>>
    %235 = vector.broadcast %234 : f32 to vector<8x128xf32>
    %236 = arith.mulf %235, %208 : vector<8x128xf32>
    %237 = arith.addf %233, %236 : vector<8x128xf32>
    %c73 = arith.constant 73 : index
    %238 = memref.load %arg2[%c73] : memref<128xf32, #tpu.memory_space<smem>>
    %239 = vector.broadcast %238 : f32 to vector<8x128xf32>
    %240 = arith.mulf %239, %210 : vector<8x128xf32>
    %241 = arith.addf %237, %240 : vector<8x128xf32>
    %c105 = arith.constant 105 : index
    %242 = memref.load %arg2[%c105] : memref<128xf32, #tpu.memory_space<smem>>
    %243 = vector.broadcast %242 : f32 to vector<8x128xf32>
    %244 = arith.mulf %243, %213 : vector<8x128xf32>
    %245 = arith.addf %241, %244 : vector<8x128xf32>
    %c10 = arith.constant 10 : index
    %246 = memref.load %arg2[%c10] : memref<128xf32, #tpu.memory_space<smem>>
    %247 = vector.broadcast %246 : f32 to vector<8x128xf32>
    %248 = arith.mulf %247, %205 : vector<8x128xf32>
    %249 = arith.addf %123, %248 : vector<8x128xf32>
    %c42 = arith.constant 42 : index
    %250 = memref.load %arg2[%c42] : memref<128xf32, #tpu.memory_space<smem>>
    %251 = vector.broadcast %250 : f32 to vector<8x128xf32>
    %252 = arith.mulf %251, %208 : vector<8x128xf32>
    %253 = arith.addf %249, %252 : vector<8x128xf32>
    %c74 = arith.constant 74 : index
    %254 = memref.load %arg2[%c74] : memref<128xf32, #tpu.memory_space<smem>>
    %255 = vector.broadcast %254 : f32 to vector<8x128xf32>
    %256 = arith.mulf %255, %210 : vector<8x128xf32>
    %257 = arith.addf %253, %256 : vector<8x128xf32>
    %c106 = arith.constant 106 : index
    %258 = memref.load %arg2[%c106] : memref<128xf32, #tpu.memory_space<smem>>
    %259 = vector.broadcast %258 : f32 to vector<8x128xf32>
    %260 = arith.mulf %259, %213 : vector<8x128xf32>
    %261 = arith.addf %257, %260 : vector<8x128xf32>
    %c11 = arith.constant 11 : index
    %262 = memref.load %arg2[%c11] : memref<128xf32, #tpu.memory_space<smem>>
    %263 = vector.broadcast %262 : f32 to vector<8x128xf32>
    %264 = arith.mulf %263, %205 : vector<8x128xf32>
    %265 = arith.addf %139, %264 : vector<8x128xf32>
    %c43 = arith.constant 43 : index
    %266 = memref.load %arg2[%c43] : memref<128xf32, #tpu.memory_space<smem>>
    %267 = vector.broadcast %266 : f32 to vector<8x128xf32>
    %268 = arith.mulf %267, %208 : vector<8x128xf32>
    %269 = arith.addf %265, %268 : vector<8x128xf32>
    %c75 = arith.constant 75 : index
    %270 = memref.load %arg2[%c75] : memref<128xf32, #tpu.memory_space<smem>>
    %271 = vector.broadcast %270 : f32 to vector<8x128xf32>
    %272 = arith.mulf %271, %210 : vector<8x128xf32>
    %273 = arith.addf %269, %272 : vector<8x128xf32>
    %c107 = arith.constant 107 : index
    %274 = memref.load %arg2[%c107] : memref<128xf32, #tpu.memory_space<smem>>
    %275 = vector.broadcast %274 : f32 to vector<8x128xf32>
    %276 = arith.mulf %275, %213 : vector<8x128xf32>
    %277 = arith.addf %273, %276 : vector<8x128xf32>
    %c12 = arith.constant 12 : index
    %278 = memref.load %arg2[%c12] : memref<128xf32, #tpu.memory_space<smem>>
    %279 = vector.broadcast %278 : f32 to vector<8x128xf32>
    %280 = arith.mulf %279, %205 : vector<8x128xf32>
    %281 = arith.addf %155, %280 : vector<8x128xf32>
    %c44 = arith.constant 44 : index
    %282 = memref.load %arg2[%c44] : memref<128xf32, #tpu.memory_space<smem>>
    %283 = vector.broadcast %282 : f32 to vector<8x128xf32>
    %284 = arith.mulf %283, %208 : vector<8x128xf32>
    %285 = arith.addf %281, %284 : vector<8x128xf32>
    %c76 = arith.constant 76 : index
    %286 = memref.load %arg2[%c76] : memref<128xf32, #tpu.memory_space<smem>>
    %287 = vector.broadcast %286 : f32 to vector<8x128xf32>
    %288 = arith.mulf %287, %210 : vector<8x128xf32>
    %289 = arith.addf %285, %288 : vector<8x128xf32>
    %c108 = arith.constant 108 : index
    %290 = memref.load %arg2[%c108] : memref<128xf32, #tpu.memory_space<smem>>
    %291 = vector.broadcast %290 : f32 to vector<8x128xf32>
    %292 = arith.mulf %291, %213 : vector<8x128xf32>
    %293 = arith.addf %289, %292 : vector<8x128xf32>
    %c13 = arith.constant 13 : index
    %294 = memref.load %arg2[%c13] : memref<128xf32, #tpu.memory_space<smem>>
    %295 = vector.broadcast %294 : f32 to vector<8x128xf32>
    %296 = arith.mulf %295, %205 : vector<8x128xf32>
    %297 = arith.addf %171, %296 : vector<8x128xf32>
    %c45 = arith.constant 45 : index
    %298 = memref.load %arg2[%c45] : memref<128xf32, #tpu.memory_space<smem>>
    %299 = vector.broadcast %298 : f32 to vector<8x128xf32>
    %300 = arith.mulf %299, %208 : vector<8x128xf32>
    %301 = arith.addf %297, %300 : vector<8x128xf32>
    %c77 = arith.constant 77 : index
    %302 = memref.load %arg2[%c77] : memref<128xf32, #tpu.memory_space<smem>>
    %303 = vector.broadcast %302 : f32 to vector<8x128xf32>
    %304 = arith.mulf %303, %210 : vector<8x128xf32>
    %305 = arith.addf %301, %304 : vector<8x128xf32>
    %c109 = arith.constant 109 : index
    %306 = memref.load %arg2[%c109] : memref<128xf32, #tpu.memory_space<smem>>
    %307 = vector.broadcast %306 : f32 to vector<8x128xf32>
    %308 = arith.mulf %307, %213 : vector<8x128xf32>
    %309 = arith.addf %305, %308 : vector<8x128xf32>
    %c14 = arith.constant 14 : index
    %310 = memref.load %arg2[%c14] : memref<128xf32, #tpu.memory_space<smem>>
    %311 = vector.broadcast %310 : f32 to vector<8x128xf32>
    %312 = arith.mulf %311, %205 : vector<8x128xf32>
    %313 = arith.addf %187, %312 : vector<8x128xf32>
    %c46 = arith.constant 46 : index
    %314 = memref.load %arg2[%c46] : memref<128xf32, #tpu.memory_space<smem>>
    %315 = vector.broadcast %314 : f32 to vector<8x128xf32>
    %316 = arith.mulf %315, %208 : vector<8x128xf32>
    %317 = arith.addf %313, %316 : vector<8x128xf32>
    %c78 = arith.constant 78 : index
    %318 = memref.load %arg2[%c78] : memref<128xf32, #tpu.memory_space<smem>>
    %319 = vector.broadcast %318 : f32 to vector<8x128xf32>
    %320 = arith.mulf %319, %210 : vector<8x128xf32>
    %321 = arith.addf %317, %320 : vector<8x128xf32>
    %c110 = arith.constant 110 : index
    %322 = memref.load %arg2[%c110] : memref<128xf32, #tpu.memory_space<smem>>
    %323 = vector.broadcast %322 : f32 to vector<8x128xf32>
    %324 = arith.mulf %323, %213 : vector<8x128xf32>
    %325 = arith.addf %321, %324 : vector<8x128xf32>
    %c15 = arith.constant 15 : index
    %326 = memref.load %arg2[%c15] : memref<128xf32, #tpu.memory_space<smem>>
    %327 = vector.broadcast %326 : f32 to vector<8x128xf32>
    %328 = arith.mulf %327, %205 : vector<8x128xf32>
    %329 = arith.addf %203, %328 : vector<8x128xf32>
    %c47 = arith.constant 47 : index
    %330 = memref.load %arg2[%c47] : memref<128xf32, #tpu.memory_space<smem>>
    %331 = vector.broadcast %330 : f32 to vector<8x128xf32>
    %332 = arith.mulf %331, %208 : vector<8x128xf32>
    %333 = arith.addf %329, %332 : vector<8x128xf32>
    %c79 = arith.constant 79 : index
    %334 = memref.load %arg2[%c79] : memref<128xf32, #tpu.memory_space<smem>>
    %335 = vector.broadcast %334 : f32 to vector<8x128xf32>
    %336 = arith.mulf %335, %210 : vector<8x128xf32>
    %337 = arith.addf %333, %336 : vector<8x128xf32>
    %c111 = arith.constant 111 : index
    %338 = memref.load %arg2[%c111] : memref<128xf32, #tpu.memory_space<smem>>
    %339 = vector.broadcast %338 : f32 to vector<8x128xf32>
    %340 = arith.mulf %339, %213 : vector<8x128xf32>
    %341 = arith.addf %337, %340 : vector<8x128xf32>
    %c0_54 = arith.constant 0 : index
    %c2_55 = arith.constant 2 : index
    %c0_56 = arith.constant 0 : index
    %c0_57 = arith.constant 0 : index
    %342 = vector.load %arg3[%c0_54, %c2_55, %c0_56, %c0_57] : memref<1x4x8x128xf32, #tpu.memory_space<vmem>>, vector<1x1x8x128xf32>
    %343 = vector.shape_cast %342 : vector<1x1x8x128xf32> to vector<8x128xf32>
    %c127_i32_58 = arith.constant 127 : i32
    %344 = tpu.dynamic_rotate %343 by %c127_i32_58 dim 1 : vector<8x128xf32>, i32 -> vector<8x128xf32>
    %345 = vector.broadcast %9 : vector<1x128xf32> to vector<8x128xf32>
    %346 = arith.mulf %344, %345 : vector<8x128xf32>
    %c0_59 = arith.constant 0 : index
    %c2_60 = arith.constant 2 : index
    %c0_61 = arith.constant 0 : index
    %c0_62 = arith.constant 0 : index
    %347 = vector.load %arg4[%c0_59, %c2_60, %c0_61, %c0_62] : memref<1x4x8x128xf32, #tpu.memory_space<vmem>>, vector<1x1x8x128xf32>
    %348 = vector.shape_cast %347 : vector<1x1x8x128xf32> to vector<8x128xf32>
    %c127_i32_63 = arith.constant 127 : i32
    %349 = tpu.dynamic_rotate %348 by %c127_i32_63 dim 1 : vector<8x128xf32>, i32 -> vector<8x128xf32>
    %350 = vector.broadcast %9 : vector<1x128xf32> to vector<8x128xf32>
    %351 = arith.mulf %349, %350 : vector<8x128xf32>
    %c16 = arith.constant 16 : index
    %352 = memref.load %arg2[%c16] : memref<128xf32, #tpu.memory_space<smem>>
    %353 = vector.broadcast %352 : f32 to vector<8x128xf32>
    %354 = arith.mulf %353, %343 : vector<8x128xf32>
    %355 = arith.addf %229, %354 : vector<8x128xf32>
    %c48 = arith.constant 48 : index
    %356 = memref.load %arg2[%c48] : memref<128xf32, #tpu.memory_space<smem>>
    %357 = vector.broadcast %356 : f32 to vector<8x128xf32>
    %358 = arith.mulf %357, %346 : vector<8x128xf32>
    %359 = arith.addf %355, %358 : vector<8x128xf32>
    %c80 = arith.constant 80 : index
    %360 = memref.load %arg2[%c80] : memref<128xf32, #tpu.memory_space<smem>>
    %361 = vector.broadcast %360 : f32 to vector<8x128xf32>
    %362 = arith.mulf %361, %348 : vector<8x128xf32>
    %363 = arith.addf %359, %362 : vector<8x128xf32>
    %c112 = arith.constant 112 : index
    %364 = memref.load %arg2[%c112] : memref<128xf32, #tpu.memory_space<smem>>
    %365 = vector.broadcast %364 : f32 to vector<8x128xf32>
    %366 = arith.mulf %365, %351 : vector<8x128xf32>
    %367 = arith.addf %363, %366 : vector<8x128xf32>
    %c17 = arith.constant 17 : index
    %368 = memref.load %arg2[%c17] : memref<128xf32, #tpu.memory_space<smem>>
    %369 = vector.broadcast %368 : f32 to vector<8x128xf32>
    %370 = arith.mulf %369, %343 : vector<8x128xf32>
    %371 = arith.addf %245, %370 : vector<8x128xf32>
    %c49 = arith.constant 49 : index
    %372 = memref.load %arg2[%c49] : memref<128xf32, #tpu.memory_space<smem>>
    %373 = vector.broadcast %372 : f32 to vector<8x128xf32>
    %374 = arith.mulf %373, %346 : vector<8x128xf32>
    %375 = arith.addf %371, %374 : vector<8x128xf32>
    %c81 = arith.constant 81 : index
    %376 = memref.load %arg2[%c81] : memref<128xf32, #tpu.memory_space<smem>>
    %377 = vector.broadcast %376 : f32 to vector<8x128xf32>
    %378 = arith.mulf %377, %348 : vector<8x128xf32>
    %379 = arith.addf %375, %378 : vector<8x128xf32>
    %c113 = arith.constant 113 : index
    %380 = memref.load %arg2[%c113] : memref<128xf32, #tpu.memory_space<smem>>
    %381 = vector.broadcast %380 : f32 to vector<8x128xf32>
    %382 = arith.mulf %381, %351 : vector<8x128xf32>
    %383 = arith.addf %379, %382 : vector<8x128xf32>
    %c18 = arith.constant 18 : index
    %384 = memref.load %arg2[%c18] : memref<128xf32, #tpu.memory_space<smem>>
    %385 = vector.broadcast %384 : f32 to vector<8x128xf32>
    %386 = arith.mulf %385, %343 : vector<8x128xf32>
    %387 = arith.addf %261, %386 : vector<8x128xf32>
    %c50 = arith.constant 50 : index
    %388 = memref.load %arg2[%c50] : memref<128xf32, #tpu.memory_space<smem>>
    %389 = vector.broadcast %388 : f32 to vector<8x128xf32>
    %390 = arith.mulf %389, %346 : vector<8x128xf32>
    %391 = arith.addf %387, %390 : vector<8x128xf32>
    %c82 = arith.constant 82 : index
    %392 = memref.load %arg2[%c82] : memref<128xf32, #tpu.memory_space<smem>>
    %393 = vector.broadcast %392 : f32 to vector<8x128xf32>
    %394 = arith.mulf %393, %348 : vector<8x128xf32>
    %395 = arith.addf %391, %394 : vector<8x128xf32>
    %c114 = arith.constant 114 : index
    %396 = memref.load %arg2[%c114] : memref<128xf32, #tpu.memory_space<smem>>
    %397 = vector.broadcast %396 : f32 to vector<8x128xf32>
    %398 = arith.mulf %397, %351 : vector<8x128xf32>
    %399 = arith.addf %395, %398 : vector<8x128xf32>
    %c19 = arith.constant 19 : index
    %400 = memref.load %arg2[%c19] : memref<128xf32, #tpu.memory_space<smem>>
    %401 = vector.broadcast %400 : f32 to vector<8x128xf32>
    %402 = arith.mulf %401, %343 : vector<8x128xf32>
    %403 = arith.addf %277, %402 : vector<8x128xf32>
    %c51 = arith.constant 51 : index
    %404 = memref.load %arg2[%c51] : memref<128xf32, #tpu.memory_space<smem>>
    %405 = vector.broadcast %404 : f32 to vector<8x128xf32>
    %406 = arith.mulf %405, %346 : vector<8x128xf32>
    %407 = arith.addf %403, %406 : vector<8x128xf32>
    %c83 = arith.constant 83 : index
    %408 = memref.load %arg2[%c83] : memref<128xf32, #tpu.memory_space<smem>>
    %409 = vector.broadcast %408 : f32 to vector<8x128xf32>
    %410 = arith.mulf %409, %348 : vector<8x128xf32>
    %411 = arith.addf %407, %410 : vector<8x128xf32>
    %c115 = arith.constant 115 : index
    %412 = memref.load %arg2[%c115] : memref<128xf32, #tpu.memory_space<smem>>
    %413 = vector.broadcast %412 : f32 to vector<8x128xf32>
    %414 = arith.mulf %413, %351 : vector<8x128xf32>
    %415 = arith.addf %411, %414 : vector<8x128xf32>
    %c20 = arith.constant 20 : index
    %416 = memref.load %arg2[%c20] : memref<128xf32, #tpu.memory_space<smem>>
    %417 = vector.broadcast %416 : f32 to vector<8x128xf32>
    %418 = arith.mulf %417, %343 : vector<8x128xf32>
    %419 = arith.addf %293, %418 : vector<8x128xf32>
    %c52 = arith.constant 52 : index
    %420 = memref.load %arg2[%c52] : memref<128xf32, #tpu.memory_space<smem>>
    %421 = vector.broadcast %420 : f32 to vector<8x128xf32>
    %422 = arith.mulf %421, %346 : vector<8x128xf32>
    %423 = arith.addf %419, %422 : vector<8x128xf32>
    %c84 = arith.constant 84 : index
    %424 = memref.load %arg2[%c84] : memref<128xf32, #tpu.memory_space<smem>>
    %425 = vector.broadcast %424 : f32 to vector<8x128xf32>
    %426 = arith.mulf %425, %348 : vector<8x128xf32>
    %427 = arith.addf %423, %426 : vector<8x128xf32>
    %c116 = arith.constant 116 : index
    %428 = memref.load %arg2[%c116] : memref<128xf32, #tpu.memory_space<smem>>
    %429 = vector.broadcast %428 : f32 to vector<8x128xf32>
    %430 = arith.mulf %429, %351 : vector<8x128xf32>
    %431 = arith.addf %427, %430 : vector<8x128xf32>
    %c21 = arith.constant 21 : index
    %432 = memref.load %arg2[%c21] : memref<128xf32, #tpu.memory_space<smem>>
    %433 = vector.broadcast %432 : f32 to vector<8x128xf32>
    %434 = arith.mulf %433, %343 : vector<8x128xf32>
    %435 = arith.addf %309, %434 : vector<8x128xf32>
    %c53 = arith.constant 53 : index
    %436 = memref.load %arg2[%c53] : memref<128xf32, #tpu.memory_space<smem>>
    %437 = vector.broadcast %436 : f32 to vector<8x128xf32>
    %438 = arith.mulf %437, %346 : vector<8x128xf32>
    %439 = arith.addf %435, %438 : vector<8x128xf32>
    %c85 = arith.constant 85 : index
    %440 = memref.load %arg2[%c85] : memref<128xf32, #tpu.memory_space<smem>>
    %441 = vector.broadcast %440 : f32 to vector<8x128xf32>
    %442 = arith.mulf %441, %348 : vector<8x128xf32>
    %443 = arith.addf %439, %442 : vector<8x128xf32>
    %c117 = arith.constant 117 : index
    %444 = memref.load %arg2[%c117] : memref<128xf32, #tpu.memory_space<smem>>
    %445 = vector.broadcast %444 : f32 to vector<8x128xf32>
    %446 = arith.mulf %445, %351 : vector<8x128xf32>
    %447 = arith.addf %443, %446 : vector<8x128xf32>
    %c22 = arith.constant 22 : index
    %448 = memref.load %arg2[%c22] : memref<128xf32, #tpu.memory_space<smem>>
    %449 = vector.broadcast %448 : f32 to vector<8x128xf32>
    %450 = arith.mulf %449, %343 : vector<8x128xf32>
    %451 = arith.addf %325, %450 : vector<8x128xf32>
    %c54 = arith.constant 54 : index
    %452 = memref.load %arg2[%c54] : memref<128xf32, #tpu.memory_space<smem>>
    %453 = vector.broadcast %452 : f32 to vector<8x128xf32>
    %454 = arith.mulf %453, %346 : vector<8x128xf32>
    %455 = arith.addf %451, %454 : vector<8x128xf32>
    %c86 = arith.constant 86 : index
    %456 = memref.load %arg2[%c86] : memref<128xf32, #tpu.memory_space<smem>>
    %457 = vector.broadcast %456 : f32 to vector<8x128xf32>
    %458 = arith.mulf %457, %348 : vector<8x128xf32>
    %459 = arith.addf %455, %458 : vector<8x128xf32>
    %c118 = arith.constant 118 : index
    %460 = memref.load %arg2[%c118] : memref<128xf32, #tpu.memory_space<smem>>
    %461 = vector.broadcast %460 : f32 to vector<8x128xf32>
    %462 = arith.mulf %461, %351 : vector<8x128xf32>
    %463 = arith.addf %459, %462 : vector<8x128xf32>
    %c23 = arith.constant 23 : index
    %464 = memref.load %arg2[%c23] : memref<128xf32, #tpu.memory_space<smem>>
    %465 = vector.broadcast %464 : f32 to vector<8x128xf32>
    %466 = arith.mulf %465, %343 : vector<8x128xf32>
    %467 = arith.addf %341, %466 : vector<8x128xf32>
    %c55 = arith.constant 55 : index
    %468 = memref.load %arg2[%c55] : memref<128xf32, #tpu.memory_space<smem>>
    %469 = vector.broadcast %468 : f32 to vector<8x128xf32>
    %470 = arith.mulf %469, %346 : vector<8x128xf32>
    %471 = arith.addf %467, %470 : vector<8x128xf32>
    %c87 = arith.constant 87 : index
    %472 = memref.load %arg2[%c87] : memref<128xf32, #tpu.memory_space<smem>>
    %473 = vector.broadcast %472 : f32 to vector<8x128xf32>
    %474 = arith.mulf %473, %348 : vector<8x128xf32>
    %475 = arith.addf %471, %474 : vector<8x128xf32>
    %c119 = arith.constant 119 : index
    %476 = memref.load %arg2[%c119] : memref<128xf32, #tpu.memory_space<smem>>
    %477 = vector.broadcast %476 : f32 to vector<8x128xf32>
    %478 = arith.mulf %477, %351 : vector<8x128xf32>
    %479 = arith.addf %475, %478 : vector<8x128xf32>
    %c0_64 = arith.constant 0 : index
    %c3_65 = arith.constant 3 : index
    %c0_66 = arith.constant 0 : index
    %c0_67 = arith.constant 0 : index
    %480 = vector.load %arg3[%c0_64, %c3_65, %c0_66, %c0_67] : memref<1x4x8x128xf32, #tpu.memory_space<vmem>>, vector<1x1x8x128xf32>
    %481 = vector.shape_cast %480 : vector<1x1x8x128xf32> to vector<8x128xf32>
    %c127_i32_68 = arith.constant 127 : i32
    %482 = tpu.dynamic_rotate %481 by %c127_i32_68 dim 1 : vector<8x128xf32>, i32 -> vector<8x128xf32>
    %483 = vector.broadcast %9 : vector<1x128xf32> to vector<8x128xf32>
    %484 = arith.mulf %482, %483 : vector<8x128xf32>
    %c0_69 = arith.constant 0 : index
    %c3_70 = arith.constant 3 : index
    %c0_71 = arith.constant 0 : index
    %c0_72 = arith.constant 0 : index
    %485 = vector.load %arg4[%c0_69, %c3_70, %c0_71, %c0_72] : memref<1x4x8x128xf32, #tpu.memory_space<vmem>>, vector<1x1x8x128xf32>
    %486 = vector.shape_cast %485 : vector<1x1x8x128xf32> to vector<8x128xf32>
    %c127_i32_73 = arith.constant 127 : i32
    %487 = tpu.dynamic_rotate %486 by %c127_i32_73 dim 1 : vector<8x128xf32>, i32 -> vector<8x128xf32>
    %488 = vector.broadcast %9 : vector<1x128xf32> to vector<8x128xf32>
    %489 = arith.mulf %487, %488 : vector<8x128xf32>
    %c24 = arith.constant 24 : index
    %490 = memref.load %arg2[%c24] : memref<128xf32, #tpu.memory_space<smem>>
    %491 = vector.broadcast %490 : f32 to vector<8x128xf32>
    %492 = arith.mulf %491, %481 : vector<8x128xf32>
    %493 = arith.addf %367, %492 : vector<8x128xf32>
    %c56 = arith.constant 56 : index
    %494 = memref.load %arg2[%c56] : memref<128xf32, #tpu.memory_space<smem>>
    %495 = vector.broadcast %494 : f32 to vector<8x128xf32>
    %496 = arith.mulf %495, %484 : vector<8x128xf32>
    %497 = arith.addf %493, %496 : vector<8x128xf32>
    %c88 = arith.constant 88 : index
    %498 = memref.load %arg2[%c88] : memref<128xf32, #tpu.memory_space<smem>>
    %499 = vector.broadcast %498 : f32 to vector<8x128xf32>
    %500 = arith.mulf %499, %486 : vector<8x128xf32>
    %501 = arith.addf %497, %500 : vector<8x128xf32>
    %c120 = arith.constant 120 : index
    %502 = memref.load %arg2[%c120] : memref<128xf32, #tpu.memory_space<smem>>
    %503 = vector.broadcast %502 : f32 to vector<8x128xf32>
    %504 = arith.mulf %503, %489 : vector<8x128xf32>
    %505 = arith.addf %501, %504 : vector<8x128xf32>
    %c25 = arith.constant 25 : index
    %506 = memref.load %arg2[%c25] : memref<128xf32, #tpu.memory_space<smem>>
    %507 = vector.broadcast %506 : f32 to vector<8x128xf32>
    %508 = arith.mulf %507, %481 : vector<8x128xf32>
    %509 = arith.addf %383, %508 : vector<8x128xf32>
    %c57 = arith.constant 57 : index
    %510 = memref.load %arg2[%c57] : memref<128xf32, #tpu.memory_space<smem>>
    %511 = vector.broadcast %510 : f32 to vector<8x128xf32>
    %512 = arith.mulf %511, %484 : vector<8x128xf32>
    %513 = arith.addf %509, %512 : vector<8x128xf32>
    %c89 = arith.constant 89 : index
    %514 = memref.load %arg2[%c89] : memref<128xf32, #tpu.memory_space<smem>>
    %515 = vector.broadcast %514 : f32 to vector<8x128xf32>
    %516 = arith.mulf %515, %486 : vector<8x128xf32>
    %517 = arith.addf %513, %516 : vector<8x128xf32>
    %c121 = arith.constant 121 : index
    %518 = memref.load %arg2[%c121] : memref<128xf32, #tpu.memory_space<smem>>
    %519 = vector.broadcast %518 : f32 to vector<8x128xf32>
    %520 = arith.mulf %519, %489 : vector<8x128xf32>
    %521 = arith.addf %517, %520 : vector<8x128xf32>
    %c26 = arith.constant 26 : index
    %522 = memref.load %arg2[%c26] : memref<128xf32, #tpu.memory_space<smem>>
    %523 = vector.broadcast %522 : f32 to vector<8x128xf32>
    %524 = arith.mulf %523, %481 : vector<8x128xf32>
    %525 = arith.addf %399, %524 : vector<8x128xf32>
    %c58 = arith.constant 58 : index
    %526 = memref.load %arg2[%c58] : memref<128xf32, #tpu.memory_space<smem>>
    %527 = vector.broadcast %526 : f32 to vector<8x128xf32>
    %528 = arith.mulf %527, %484 : vector<8x128xf32>
    %529 = arith.addf %525, %528 : vector<8x128xf32>
    %c90 = arith.constant 90 : index
    %530 = memref.load %arg2[%c90] : memref<128xf32, #tpu.memory_space<smem>>
    %531 = vector.broadcast %530 : f32 to vector<8x128xf32>
    %532 = arith.mulf %531, %486 : vector<8x128xf32>
    %533 = arith.addf %529, %532 : vector<8x128xf32>
    %c122 = arith.constant 122 : index
    %534 = memref.load %arg2[%c122] : memref<128xf32, #tpu.memory_space<smem>>
    %535 = vector.broadcast %534 : f32 to vector<8x128xf32>
    %536 = arith.mulf %535, %489 : vector<8x128xf32>
    %537 = arith.addf %533, %536 : vector<8x128xf32>
    %c27 = arith.constant 27 : index
    %538 = memref.load %arg2[%c27] : memref<128xf32, #tpu.memory_space<smem>>
    %539 = vector.broadcast %538 : f32 to vector<8x128xf32>
    %540 = arith.mulf %539, %481 : vector<8x128xf32>
    %541 = arith.addf %415, %540 : vector<8x128xf32>
    %c59 = arith.constant 59 : index
    %542 = memref.load %arg2[%c59] : memref<128xf32, #tpu.memory_space<smem>>
    %543 = vector.broadcast %542 : f32 to vector<8x128xf32>
    %544 = arith.mulf %543, %484 : vector<8x128xf32>
    %545 = arith.addf %541, %544 : vector<8x128xf32>
    %c91 = arith.constant 91 : index
    %546 = memref.load %arg2[%c91] : memref<128xf32, #tpu.memory_space<smem>>
    %547 = vector.broadcast %546 : f32 to vector<8x128xf32>
    %548 = arith.mulf %547, %486 : vector<8x128xf32>
    %549 = arith.addf %545, %548 : vector<8x128xf32>
    %c123 = arith.constant 123 : index
    %550 = memref.load %arg2[%c123] : memref<128xf32, #tpu.memory_space<smem>>
    %551 = vector.broadcast %550 : f32 to vector<8x128xf32>
    %552 = arith.mulf %551, %489 : vector<8x128xf32>
    %553 = arith.addf %549, %552 : vector<8x128xf32>
    %c28 = arith.constant 28 : index
    %554 = memref.load %arg2[%c28] : memref<128xf32, #tpu.memory_space<smem>>
    %555 = vector.broadcast %554 : f32 to vector<8x128xf32>
    %556 = arith.mulf %555, %481 : vector<8x128xf32>
    %557 = arith.addf %431, %556 : vector<8x128xf32>
    %c60 = arith.constant 60 : index
    %558 = memref.load %arg2[%c60] : memref<128xf32, #tpu.memory_space<smem>>
    %559 = vector.broadcast %558 : f32 to vector<8x128xf32>
    %560 = arith.mulf %559, %484 : vector<8x128xf32>
    %561 = arith.addf %557, %560 : vector<8x128xf32>
    %c92 = arith.constant 92 : index
    %562 = memref.load %arg2[%c92] : memref<128xf32, #tpu.memory_space<smem>>
    %563 = vector.broadcast %562 : f32 to vector<8x128xf32>
    %564 = arith.mulf %563, %486 : vector<8x128xf32>
    %565 = arith.addf %561, %564 : vector<8x128xf32>
    %c124 = arith.constant 124 : index
    %566 = memref.load %arg2[%c124] : memref<128xf32, #tpu.memory_space<smem>>
    %567 = vector.broadcast %566 : f32 to vector<8x128xf32>
    %568 = arith.mulf %567, %489 : vector<8x128xf32>
    %569 = arith.addf %565, %568 : vector<8x128xf32>
    %c29 = arith.constant 29 : index
    %570 = memref.load %arg2[%c29] : memref<128xf32, #tpu.memory_space<smem>>
    %571 = vector.broadcast %570 : f32 to vector<8x128xf32>
    %572 = arith.mulf %571, %481 : vector<8x128xf32>
    %573 = arith.addf %447, %572 : vector<8x128xf32>
    %c61 = arith.constant 61 : index
    %574 = memref.load %arg2[%c61] : memref<128xf32, #tpu.memory_space<smem>>
    %575 = vector.broadcast %574 : f32 to vector<8x128xf32>
    %576 = arith.mulf %575, %484 : vector<8x128xf32>
    %577 = arith.addf %573, %576 : vector<8x128xf32>
    %c93 = arith.constant 93 : index
    %578 = memref.load %arg2[%c93] : memref<128xf32, #tpu.memory_space<smem>>
    %579 = vector.broadcast %578 : f32 to vector<8x128xf32>
    %580 = arith.mulf %579, %486 : vector<8x128xf32>
    %581 = arith.addf %577, %580 : vector<8x128xf32>
    %c125 = arith.constant 125 : index
    %582 = memref.load %arg2[%c125] : memref<128xf32, #tpu.memory_space<smem>>
    %583 = vector.broadcast %582 : f32 to vector<8x128xf32>
    %584 = arith.mulf %583, %489 : vector<8x128xf32>
    %585 = arith.addf %581, %584 : vector<8x128xf32>
    %c30 = arith.constant 30 : index
    %586 = memref.load %arg2[%c30] : memref<128xf32, #tpu.memory_space<smem>>
    %587 = vector.broadcast %586 : f32 to vector<8x128xf32>
    %588 = arith.mulf %587, %481 : vector<8x128xf32>
    %589 = arith.addf %463, %588 : vector<8x128xf32>
    %c62 = arith.constant 62 : index
    %590 = memref.load %arg2[%c62] : memref<128xf32, #tpu.memory_space<smem>>
    %591 = vector.broadcast %590 : f32 to vector<8x128xf32>
    %592 = arith.mulf %591, %484 : vector<8x128xf32>
    %593 = arith.addf %589, %592 : vector<8x128xf32>
    %c94 = arith.constant 94 : index
    %594 = memref.load %arg2[%c94] : memref<128xf32, #tpu.memory_space<smem>>
    %595 = vector.broadcast %594 : f32 to vector<8x128xf32>
    %596 = arith.mulf %595, %486 : vector<8x128xf32>
    %597 = arith.addf %593, %596 : vector<8x128xf32>
    %c126 = arith.constant 126 : index
    %598 = memref.load %arg2[%c126] : memref<128xf32, #tpu.memory_space<smem>>
    %599 = vector.broadcast %598 : f32 to vector<8x128xf32>
    %600 = arith.mulf %599, %489 : vector<8x128xf32>
    %601 = arith.addf %597, %600 : vector<8x128xf32>
    %c31 = arith.constant 31 : index
    %602 = memref.load %arg2[%c31] : memref<128xf32, #tpu.memory_space<smem>>
    %603 = vector.broadcast %602 : f32 to vector<8x128xf32>
    %604 = arith.mulf %603, %481 : vector<8x128xf32>
    %605 = arith.addf %479, %604 : vector<8x128xf32>
    %c63 = arith.constant 63 : index
    %606 = memref.load %arg2[%c63] : memref<128xf32, #tpu.memory_space<smem>>
    %607 = vector.broadcast %606 : f32 to vector<8x128xf32>
    %608 = arith.mulf %607, %484 : vector<8x128xf32>
    %609 = arith.addf %605, %608 : vector<8x128xf32>
    %c95 = arith.constant 95 : index
    %610 = memref.load %arg2[%c95] : memref<128xf32, #tpu.memory_space<smem>>
    %611 = vector.broadcast %610 : f32 to vector<8x128xf32>
    %612 = arith.mulf %611, %486 : vector<8x128xf32>
    %613 = arith.addf %609, %612 : vector<8x128xf32>
    %c127 = arith.constant 127 : index
    %614 = memref.load %arg2[%c127] : memref<128xf32, #tpu.memory_space<smem>>
    %615 = vector.broadcast %614 : f32 to vector<8x128xf32>
    %616 = arith.mulf %615, %489 : vector<8x128xf32>
    %617 = arith.addf %613, %616 : vector<8x128xf32>
    %cst_74 = arith.constant dense<0.000000e+00> : vector<128xf32>
    %618 = vector.multi_reduction <add>, %505, %cst_74 [0] : vector<8x128xf32> to vector<128xf32>
    %619 = vector.shape_cast %618 : vector<128xf32> to vector<1x128xf32>
    %c0_75 = arith.constant 0 : index
    %c0_76 = arith.constant 0 : index
    %c0_77 = arith.constant 0 : index
    %c0_78 = arith.constant 0 : index
    %620 = vector.load %arg8[%c0_75, %c0_76, %c0_77, %c0_78] : memref<1x1x16x128xf32, #tpu.memory_space<vmem>>, vector<1x1x1x128xf32>
    %621 = vector.shape_cast %620 : vector<1x1x1x128xf32> to vector<1x128xf32>
    %622 = vector.shape_cast %619 : vector<1x128xf32> to vector<1x1x1x128xf32>
    tpu.vector_store %arg8[%c0_75, %c0_76, %c0_77, %c0_78], %622 {strides = array<i32>} : memref<1x1x16x128xf32, #tpu.memory_space<vmem>>, vector<1x1x1x128xf32>,
    %623 = arith.mulf %505, %505 : vector<8x128xf32>
    %cst_79 = arith.constant dense<0.000000e+00> : vector<128xf32>
    %624 = vector.multi_reduction <add>, %623, %cst_79 [0] : vector<8x128xf32> to vector<128xf32>
    %625 = vector.shape_cast %624 : vector<128xf32> to vector<1x128xf32>
    %c0_80 = arith.constant 0 : index
    %c0_81 = arith.constant 0 : index
    %c8_82 = arith.constant 8 : index
    %c0_83 = arith.constant 0 : index
    %626 = vector.load %arg8[%c0_80, %c0_81, %c8_82, %c0_83] : memref<1x1x16x128xf32, #tpu.memory_space<vmem>>, vector<1x1x1x128xf32>
    %627 = vector.shape_cast %626 : vector<1x1x1x128xf32> to vector<1x128xf32>
    %628 = vector.shape_cast %625 : vector<1x128xf32> to vector<1x1x1x128xf32>
    tpu.vector_store %arg8[%c0_80, %c0_81, %c8_82, %c0_83], %628 {strides = array<i32>} : memref<1x1x16x128xf32, #tpu.memory_space<vmem>>, vector<1x1x1x128xf32>,
    %cst_84 = arith.constant dense<0.000000e+00> : vector<128xf32>
    %629 = vector.multi_reduction <add>, %521, %cst_84 [0] : vector<8x128xf32> to vector<128xf32>
    %630 = vector.shape_cast %629 : vector<128xf32> to vector<1x128xf32>
    %c0_85 = arith.constant 0 : index
    %c0_86 = arith.constant 0 : index
    %c1_87 = arith.constant 1 : index
    %c0_88 = arith.constant 0 : index
    %631 = vector.load %arg8[%c0_85, %c0_86, %c1_87, %c0_88] : memref<1x1x16x128xf32, #tpu.memory_space<vmem>>, vector<1x1x1x128xf32>
    %632 = vector.shape_cast %631 : vector<1x1x1x128xf32> to vector<1x128xf32>
    %633 = vector.shape_cast %630 : vector<1x128xf32> to vector<1x1x1x128xf32>
    tpu.vector_store %arg8[%c0_85, %c0_86, %c1_87, %c0_88], %633 {strides = array<i32>} : memref<1x1x16x128xf32, #tpu.memory_space<vmem>>, vector<1x1x1x128xf32>,
    %634 = arith.mulf %521, %521 : vector<8x128xf32>
    %cst_89 = arith.constant dense<0.000000e+00> : vector<128xf32>
    %635 = vector.multi_reduction <add>, %634, %cst_89 [0] : vector<8x128xf32> to vector<128xf32>
    %636 = vector.shape_cast %635 : vector<128xf32> to vector<1x128xf32>
    %c0_90 = arith.constant 0 : index
    %c0_91 = arith.constant 0 : index
    %c9_92 = arith.constant 9 : index
    %c0_93 = arith.constant 0 : index
    %637 = vector.load %arg8[%c0_90, %c0_91, %c9_92, %c0_93] : memref<1x1x16x128xf32, #tpu.memory_space<vmem>>, vector<1x1x1x128xf32>
    %638 = vector.shape_cast %637 : vector<1x1x1x128xf32> to vector<1x128xf32>
    %639 = vector.shape_cast %636 : vector<1x128xf32> to vector<1x1x1x128xf32>
    tpu.vector_store %arg8[%c0_90, %c0_91, %c9_92, %c0_93], %639 {strides = array<i32>} : memref<1x1x16x128xf32, #tpu.memory_space<vmem>>, vector<1x1x1x128xf32>,
    %cst_94 = arith.constant dense<0.000000e+00> : vector<128xf32>
    %640 = vector.multi_reduction <add>, %537, %cst_94 [0] : vector<8x128xf32> to vector<128xf32>
    %641 = vector.shape_cast %640 : vector<128xf32> to vector<1x128xf32>
    %c0_95 = arith.constant 0 : index
    %c0_96 = arith.constant 0 : index
    %c2_97 = arith.constant 2 : index
    %c0_98 = arith.constant 0 : index
    %642 = vector.load %arg8[%c0_95, %c0_96, %c2_97, %c0_98] : memref<1x1x16x128xf32, #tpu.memory_space<vmem>>, vector<1x1x1x128xf32>
    %643 = vector.shape_cast %642 : vector<1x1x1x128xf32> to vector<1x128xf32>
    %644 = vector.shape_cast %641 : vector<1x128xf32> to vector<1x1x1x128xf32>
    tpu.vector_store %arg8[%c0_95, %c0_96, %c2_97, %c0_98], %644 {strides = array<i32>} : memref<1x1x16x128xf32, #tpu.memory_space<vmem>>, vector<1x1x1x128xf32>,
    %645 = arith.mulf %537, %537 : vector<8x128xf32>
    %cst_99 = arith.constant dense<0.000000e+00> : vector<128xf32>
    %646 = vector.multi_reduction <add>, %645, %cst_99 [0] : vector<8x128xf32> to vector<128xf32>
    %647 = vector.shape_cast %646 : vector<128xf32> to vector<1x128xf32>
    %c0_100 = arith.constant 0 : index
    %c0_101 = arith.constant 0 : index
    %c10_102 = arith.constant 10 : index
    %c0_103 = arith.constant 0 : index
    %648 = vector.load %arg8[%c0_100, %c0_101, %c10_102, %c0_103] : memref<1x1x16x128xf32, #tpu.memory_space<vmem>>, vector<1x1x1x128xf32>
    %649 = vector.shape_cast %648 : vector<1x1x1x128xf32> to vector<1x128xf32>
    %650 = vector.shape_cast %647 : vector<1x128xf32> to vector<1x1x1x128xf32>
    tpu.vector_store %arg8[%c0_100, %c0_101, %c10_102, %c0_103], %650 {strides = array<i32>} : memref<1x1x16x128xf32, #tpu.memory_space<vmem>>, vector<1x1x1x128xf32>,
    %cst_104 = arith.constant dense<0.000000e+00> : vector<128xf32>
    %651 = vector.multi_reduction <add>, %553, %cst_104 [0] : vector<8x128xf32> to vector<128xf32>
    %652 = vector.shape_cast %651 : vector<128xf32> to vector<1x128xf32>
    %c0_105 = arith.constant 0 : index
    %c0_106 = arith.constant 0 : index
    %c3_107 = arith.constant 3 : index
    %c0_108 = arith.constant 0 : index
    %653 = vector.load %arg8[%c0_105, %c0_106, %c3_107, %c0_108] : memref<1x1x16x128xf32, #tpu.memory_space<vmem>>, vector<1x1x1x128xf32>
    %654 = vector.shape_cast %653 : vector<1x1x1x128xf32> to vector<1x128xf32>
    %655 = vector.shape_cast %652 : vector<1x128xf32> to vector<1x1x1x128xf32>
    tpu.vector_store %arg8[%c0_105, %c0_106, %c3_107, %c0_108], %655 {strides = array<i32>} : memref<1x1x16x128xf32, #tpu.memory_space<vmem>>, vector<1x1x1x128xf32>,
    %656 = arith.mulf %553, %553 : vector<8x128xf32>
    %cst_109 = arith.constant dense<0.000000e+00> : vector<128xf32>
    %657 = vector.multi_reduction <add>, %656, %cst_109 [0] : vector<8x128xf32> to vector<128xf32>
    %658 = vector.shape_cast %657 : vector<128xf32> to vector<1x128xf32>
    %c0_110 = arith.constant 0 : index
    %c0_111 = arith.constant 0 : index
    %c11_112 = arith.constant 11 : index
    %c0_113 = arith.constant 0 : index
    %659 = vector.load %arg8[%c0_110, %c0_111, %c11_112, %c0_113] : memref<1x1x16x128xf32, #tpu.memory_space<vmem>>, vector<1x1x1x128xf32>
    %660 = vector.shape_cast %659 : vector<1x1x1x128xf32> to vector<1x128xf32>
    %661 = vector.shape_cast %658 : vector<1x128xf32> to vector<1x1x1x128xf32>
    tpu.vector_store %arg8[%c0_110, %c0_111, %c11_112, %c0_113], %661 {strides = array<i32>} : memref<1x1x16x128xf32, #tpu.memory_space<vmem>>, vector<1x1x1x128xf32>,
    %cst_114 = arith.constant dense<0.000000e+00> : vector<128xf32>
    %662 = vector.multi_reduction <add>, %569, %cst_114 [0] : vector<8x128xf32> to vector<128xf32>
    %663 = vector.shape_cast %662 : vector<128xf32> to vector<1x128xf32>
    %c0_115 = arith.constant 0 : index
    %c0_116 = arith.constant 0 : index
    %c4_117 = arith.constant 4 : index
    %c0_118 = arith.constant 0 : index
    %664 = vector.load %arg8[%c0_115, %c0_116, %c4_117, %c0_118] : memref<1x1x16x128xf32, #tpu.memory_space<vmem>>, vector<1x1x1x128xf32>
    %665 = vector.shape_cast %664 : vector<1x1x1x128xf32> to vector<1x128xf32>
    %666 = vector.shape_cast %663 : vector<1x128xf32> to vector<1x1x1x128xf32>
    tpu.vector_store %arg8[%c0_115, %c0_116, %c4_117, %c0_118], %666 {strides = array<i32>} : memref<1x1x16x128xf32, #tpu.memory_space<vmem>>, vector<1x1x1x128xf32>,
    %667 = arith.mulf %569, %569 : vector<8x128xf32>
    %cst_119 = arith.constant dense<0.000000e+00> : vector<128xf32>
    %668 = vector.multi_reduction <add>, %667, %cst_119 [0] : vector<8x128xf32> to vector<128xf32>
    %669 = vector.shape_cast %668 : vector<128xf32> to vector<1x128xf32>
    %c0_120 = arith.constant 0 : index
    %c0_121 = arith.constant 0 : index
    %c12_122 = arith.constant 12 : index
    %c0_123 = arith.constant 0 : index
    %670 = vector.load %arg8[%c0_120, %c0_121, %c12_122, %c0_123] : memref<1x1x16x128xf32, #tpu.memory_space<vmem>>, vector<1x1x1x128xf32>
    %671 = vector.shape_cast %670 : vector<1x1x1x128xf32> to vector<1x128xf32>
    %672 = vector.shape_cast %669 : vector<1x128xf32> to vector<1x1x1x128xf32>
    tpu.vector_store %arg8[%c0_120, %c0_121, %c12_122, %c0_123], %672 {strides = array<i32>} : memref<1x1x16x128xf32, #tpu.memory_space<vmem>>, vector<1x1x1x128xf32>,
    %cst_124 = arith.constant dense<0.000000e+00> : vector<128xf32>
    %673 = vector.multi_reduction <add>, %585, %cst_124 [0] : vector<8x128xf32> to vector<128xf32>
    %674 = vector.shape_cast %673 : vector<128xf32> to vector<1x128xf32>
    %c0_125 = arith.constant 0 : index
    %c0_126 = arith.constant 0 : index
    %c5_127 = arith.constant 5 : index
    %c0_128 = arith.constant 0 : index
    %675 = vector.load %arg8[%c0_125, %c0_126, %c5_127, %c0_128] : memref<1x1x16x128xf32, #tpu.memory_space<vmem>>, vector<1x1x1x128xf32>
    %676 = vector.shape_cast %675 : vector<1x1x1x128xf32> to vector<1x128xf32>
    %677 = vector.shape_cast %674 : vector<1x128xf32> to vector<1x1x1x128xf32>
    tpu.vector_store %arg8[%c0_125, %c0_126, %c5_127, %c0_128], %677 {strides = array<i32>} : memref<1x1x16x128xf32, #tpu.memory_space<vmem>>, vector<1x1x1x128xf32>,
    %678 = arith.mulf %585, %585 : vector<8x128xf32>
    %cst_129 = arith.constant dense<0.000000e+00> : vector<128xf32>
    %679 = vector.multi_reduction <add>, %678, %cst_129 [0] : vector<8x128xf32> to vector<128xf32>
    %680 = vector.shape_cast %679 : vector<128xf32> to vector<1x128xf32>
    %c0_130 = arith.constant 0 : index
    %c0_131 = arith.constant 0 : index
    %c13_132 = arith.constant 13 : index
    %c0_133 = arith.constant 0 : index
    %681 = vector.load %arg8[%c0_130, %c0_131, %c13_132, %c0_133] : memref<1x1x16x128xf32, #tpu.memory_space<vmem>>, vector<1x1x1x128xf32>
    %682 = vector.shape_cast %681 : vector<1x1x1x128xf32> to vector<1x128xf32>
    %683 = vector.shape_cast %680 : vector<1x128xf32> to vector<1x1x1x128xf32>
    tpu.vector_store %arg8[%c0_130, %c0_131, %c13_132, %c0_133], %683 {strides = array<i32>} : memref<1x1x16x128xf32, #tpu.memory_space<vmem>>, vector<1x1x1x128xf32>,
    %cst_134 = arith.constant dense<0.000000e+00> : vector<128xf32>
    %684 = vector.multi_reduction <add>, %601, %cst_134 [0] : vector<8x128xf32> to vector<128xf32>
    %685 = vector.shape_cast %684 : vector<128xf32> to vector<1x128xf32>
    %c0_135 = arith.constant 0 : index
    %c0_136 = arith.constant 0 : index
    %c6_137 = arith.constant 6 : index
    %c0_138 = arith.constant 0 : index
    %686 = vector.load %arg8[%c0_135, %c0_136, %c6_137, %c0_138] : memref<1x1x16x128xf32, #tpu.memory_space<vmem>>, vector<1x1x1x128xf32>
    %687 = vector.shape_cast %686 : vector<1x1x1x128xf32> to vector<1x128xf32>
    %688 = vector.shape_cast %685 : vector<1x128xf32> to vector<1x1x1x128xf32>
    tpu.vector_store %arg8[%c0_135, %c0_136, %c6_137, %c0_138], %688 {strides = array<i32>} : memref<1x1x16x128xf32, #tpu.memory_space<vmem>>, vector<1x1x1x128xf32>,
    %689 = arith.mulf %601, %601 : vector<8x128xf32>
    %cst_139 = arith.constant dense<0.000000e+00> : vector<128xf32>
    %690 = vector.multi_reduction <add>, %689, %cst_139 [0] : vector<8x128xf32> to vector<128xf32>
    %691 = vector.shape_cast %690 : vector<128xf32> to vector<1x128xf32>
    %c0_140 = arith.constant 0 : index
    %c0_141 = arith.constant 0 : index
    %c14_142 = arith.constant 14 : index
    %c0_143 = arith.constant 0 : index
    %692 = vector.load %arg8[%c0_140, %c0_141, %c14_142, %c0_143] : memref<1x1x16x128xf32, #tpu.memory_space<vmem>>, vector<1x1x1x128xf32>
    %693 = vector.shape_cast %692 : vector<1x1x1x128xf32> to vector<1x128xf32>
    %694 = vector.shape_cast %691 : vector<1x128xf32> to vector<1x1x1x128xf32>
    tpu.vector_store %arg8[%c0_140, %c0_141, %c14_142, %c0_143], %694 {strides = array<i32>} : memref<1x1x16x128xf32, #tpu.memory_space<vmem>>, vector<1x1x1x128xf32>,
    %cst_144 = arith.constant dense<0.000000e+00> : vector<128xf32>
    %695 = vector.multi_reduction <add>, %617, %cst_144 [0] : vector<8x128xf32> to vector<128xf32>
    %696 = vector.shape_cast %695 : vector<128xf32> to vector<1x128xf32>
    %c0_145 = arith.constant 0 : index
    %c0_146 = arith.constant 0 : index
    %c7_147 = arith.constant 7 : index
    %c0_148 = arith.constant 0 : index
    %697 = vector.load %arg8[%c0_145, %c0_146, %c7_147, %c0_148] : memref<1x1x16x128xf32, #tpu.memory_space<vmem>>, vector<1x1x1x128xf32>
    %698 = vector.shape_cast %697 : vector<1x1x1x128xf32> to vector<1x128xf32>
    %699 = vector.shape_cast %696 : vector<1x128xf32> to vector<1x1x1x128xf32>
    tpu.vector_store %arg8[%c0_145, %c0_146, %c7_147, %c0_148], %699 {strides = array<i32>} : memref<1x1x16x128xf32, #tpu.memory_space<vmem>>, vector<1x1x1x128xf32>,
    %700 = arith.mulf %617, %617 : vector<8x128xf32>
    %cst_149 = arith.constant dense<0.000000e+00> : vector<128xf32>
    %701 = vector.multi_reduction <add>, %700, %cst_149 [0] : vector<8x128xf32> to vector<128xf32>
    %702 = vector.shape_cast %701 : vector<128xf32> to vector<1x128xf32>
    %c0_150 = arith.constant 0 : index
    %c0_151 = arith.constant 0 : index
    %c15_152 = arith.constant 15 : index
    %c0_153 = arith.constant 0 : index
    %703 = vector.load %arg8[%c0_150, %c0_151, %c15_152, %c0_153] : memref<1x1x16x128xf32, #tpu.memory_space<vmem>>, vector<1x1x1x128xf32>
    %704 = vector.shape_cast %703 : vector<1x1x1x128xf32> to vector<1x128xf32>
    %705 = vector.shape_cast %702 : vector<1x128xf32> to vector<1x1x1x128xf32>
    tpu.vector_store %arg8[%c0_150, %c0_151, %c15_152, %c0_153], %705 {strides = array<i32>} : memref<1x1x16x128xf32, #tpu.memory_space<vmem>>, vector<1x1x1x128xf32>,
    return
  }
  func.func @transform_0(%arg0: i32, %arg1: i32) -> i32 {
    %c0_i32 = arith.constant 0 : i32
    %c0_i32_0 = arith.constant 0 : i32
    return %c0_i32 : i32
  }
  func.func @transform_1(%arg0: i32, %arg1: i32) -> (i32, i32, i32, i32) {
    %c0_i32 = arith.constant 0 : i32
    %c0_i32_0 = arith.constant 0 : i32
    %c0_i32_1 = arith.constant 0 : i32
    return %arg0, %c0_i32, %arg1, %c0_i32_0 : i32, i32, i32, i32
  }
  func.func @transform_2(%arg0: i32, %arg1: i32) -> (i32, i32, i32, i32) {
    %c0_i32 = arith.constant 0 : i32
    %c0_i32_0 = arith.constant 0 : i32
    %c0_i32_1 = arith.constant 0 : i32
    return %arg0, %c0_i32, %arg1, %c0_i32_0 : i32, i32, i32, i32
  }
  func.func @transform_3(%arg0: i32, %arg1: i32) -> (i32, i32) {
    %c0_i32 = arith.constant 0 : i32
    %c0_i32_0 = arith.constant 0 : i32
    %c0_i32_1 = arith.constant 0 : i32
    return %c0_i32, %c0_i32_0 : i32, i32
  }
  func.func @transform_4(%arg0: i32, %arg1: i32) -> (i32, i32) {
    %c0_i32 = arith.constant 0 : i32
    %c0_i32_0 = arith.constant 0 : i32
    %c0_i32_1 = arith.constant 0 : i32
    return %c0_i32, %c0_i32_0 : i32, i32
  }
  func.func @transform_5(%arg0: i32, %arg1: i32) -> (i32, i32) {
    %c0_i32 = arith.constant 0 : i32
    %c0_i32_0 = arith.constant 0 : i32
    %c0_i32_1 = arith.constant 0 : i32
    return %c0_i32, %c0_i32_0 : i32, i32
  }
  func.func @transform_6(%arg0: i32, %arg1: i32) -> (i32, i32, i32, i32) {
    %c0_i32 = arith.constant 0 : i32
    %c0_i32_0 = arith.constant 0 : i32
    %c0_i32_1 = arith.constant 0 : i32
    return %arg0, %arg1, %c0_i32, %c0_i32_0 : i32, i32, i32, i32
  }
}

module attributes {stable_mosaic.version = 11 : i64} {
  func.func @_conv_out_kernel(%arg0: i32, %arg1: i32, %arg2: memref<128xf32, #tpu.memory_space<smem>>, %arg3: memref<1x4x8x128xf32, #tpu.memory_space<vmem>>, %arg4: memref<1x4x8x128xf32, #tpu.memory_space<vmem>>, %arg5: memref<1x128xf32, #tpu.memory_space<vmem>>, %arg6: memref<8x128xf32, #tpu.memory_space<vmem>>, %arg7: memref<8x128xf32, #tpu.memory_space<vmem>>, %arg8: memref<1x8x8x128xf32, #tpu.memory_space<vmem>>) attributes {dimension_semantics = [#tpu.dimension_semantics<parallel>, #tpu.dimension_semantics<parallel>], iteration_bounds = array<i64: 2, 1>, scalar_prefetch = 0 : i64, scratch_operands = 0 : i64, tpu.core_type = #tpu.core_type<tc>, window_params = [{transform_indices = @transform_0, window_bounds = array<i64: 128>}, {transform_indices = @transform_1, window_bounds = array<i64: 1, 4, 8, 128>}, {transform_indices = @transform_2, window_bounds = array<i64: 1, 4, 8, 128>}, {pipeline_mode = #tpu.pipeline_mode<synchronous>, transform_indices = @transform_3, window_bounds = array<i64: 1, 128>}, {pipeline_mode = #tpu.pipeline_mode<synchronous>, transform_indices = @transform_4, window_bounds = array<i64: 8, 128>}, {pipeline_mode = #tpu.pipeline_mode<synchronous>, transform_indices = @transform_5, window_bounds = array<i64: 8, 128>}, {transform_indices = @transform_6, window_bounds = array<i64: 1, 8, 8, 128>}]} {
    %0 = tpu.iota {dimensions = array<i32: 0>} : vector<8x1xi32>
    %c0_i32 = arith.constant 0 : i32
    %1 = arith.cmpi eq, %arg1, %c0_i32 : i32
    %c7_i32 = arith.constant 7 : i32
    %2 = vector.broadcast %c7_i32 : i32 to vector<8x1xi32>
    %3 = arith.cmpi eq, %0, %2 : vector<8x1xi32>
    %4 = vector.broadcast %1 : i1 to vector<8x1xi1>
    %5 = arith.andi %4, %3 : vector<8x1xi1>
    %cst = arith.constant 1.000000e+00 : f32
    %cst_0 = arith.constant 0.000000e+00 : f32
    %6 = vector.broadcast %cst : f32 to vector<8x1xf32>
    %7 = vector.broadcast %cst_0 : f32 to vector<8x1xf32>
    %8 = arith.select %5, %6, %7 : vector<8x1xi1>, vector<8x1xf32>
    %c0 = arith.constant 0 : index
    %c0_1 = arith.constant 0 : index
    %9 = vector.load %arg5[%c0, %c0_1] : memref<1x128xf32, #tpu.memory_space<vmem>>, vector<1x128xf32>
    %c0_2 = arith.constant 0 : index
    %c0_3 = arith.constant 0 : index
    %10 = vector.load %arg6[%c0_2, %c0_3] : memref<8x128xf32, #tpu.memory_space<vmem>>, vector<1x128xf32>
    %c0_4 = arith.constant 0 : index
    %c0_5 = arith.constant 0 : index
    %11 = vector.load %arg7[%c0_4, %c0_5] : memref<8x128xf32, #tpu.memory_space<vmem>>, vector<1x128xf32>
    %12 = vector.broadcast %8 : vector<8x1xf32> to vector<8x128xf32>
    %13 = vector.broadcast %11 : vector<1x128xf32> to vector<8x128xf32>
    %14 = arith.mulf %12, %13 : vector<8x128xf32>
    %15 = vector.broadcast %10 : vector<1x128xf32> to vector<8x128xf32>
    %16 = arith.addf %15, %14 : vector<8x128xf32>
    %c1 = arith.constant 1 : index
    %c0_6 = arith.constant 0 : index
    %17 = vector.load %arg6[%c1, %c0_6] : memref<8x128xf32, #tpu.memory_space<vmem>>, vector<1x128xf32>
    %c1_7 = arith.constant 1 : index
    %c0_8 = arith.constant 0 : index
    %18 = vector.load %arg7[%c1_7, %c0_8] : memref<8x128xf32, #tpu.memory_space<vmem>>, vector<1x128xf32>
    %19 = vector.broadcast %8 : vector<8x1xf32> to vector<8x128xf32>
    %20 = vector.broadcast %18 : vector<1x128xf32> to vector<8x128xf32>
    %21 = arith.mulf %19, %20 : vector<8x128xf32>
    %22 = vector.broadcast %17 : vector<1x128xf32> to vector<8x128xf32>
    %23 = arith.addf %22, %21 : vector<8x128xf32>
    %c2 = arith.constant 2 : index
    %c0_9 = arith.constant 0 : index
    %24 = vector.load %arg6[%c2, %c0_9] : memref<8x128xf32, #tpu.memory_space<vmem>>, vector<1x128xf32>
    %c2_10 = arith.constant 2 : index
    %c0_11 = arith.constant 0 : index
    %25 = vector.load %arg7[%c2_10, %c0_11] : memref<8x128xf32, #tpu.memory_space<vmem>>, vector<1x128xf32>
    %26 = vector.broadcast %8 : vector<8x1xf32> to vector<8x128xf32>
    %27 = vector.broadcast %25 : vector<1x128xf32> to vector<8x128xf32>
    %28 = arith.mulf %26, %27 : vector<8x128xf32>
    %29 = vector.broadcast %24 : vector<1x128xf32> to vector<8x128xf32>
    %30 = arith.addf %29, %28 : vector<8x128xf32>
    %c3 = arith.constant 3 : index
    %c0_12 = arith.constant 0 : index
    %31 = vector.load %arg6[%c3, %c0_12] : memref<8x128xf32, #tpu.memory_space<vmem>>, vector<1x128xf32>
    %c3_13 = arith.constant 3 : index
    %c0_14 = arith.constant 0 : index
    %32 = vector.load %arg7[%c3_13, %c0_14] : memref<8x128xf32, #tpu.memory_space<vmem>>, vector<1x128xf32>
    %33 = vector.broadcast %8 : vector<8x1xf32> to vector<8x128xf32>
    %34 = vector.broadcast %32 : vector<1x128xf32> to vector<8x128xf32>
    %35 = arith.mulf %33, %34 : vector<8x128xf32>
    %36 = vector.broadcast %31 : vector<1x128xf32> to vector<8x128xf32>
    %37 = arith.addf %36, %35 : vector<8x128xf32>
    %c4 = arith.constant 4 : index
    %c0_15 = arith.constant 0 : index
    %38 = vector.load %arg6[%c4, %c0_15] : memref<8x128xf32, #tpu.memory_space<vmem>>, vector<1x128xf32>
    %c4_16 = arith.constant 4 : index
    %c0_17 = arith.constant 0 : index
    %39 = vector.load %arg7[%c4_16, %c0_17] : memref<8x128xf32, #tpu.memory_space<vmem>>, vector<1x128xf32>
    %40 = vector.broadcast %8 : vector<8x1xf32> to vector<8x128xf32>
    %41 = vector.broadcast %39 : vector<1x128xf32> to vector<8x128xf32>
    %42 = arith.mulf %40, %41 : vector<8x128xf32>
    %43 = vector.broadcast %38 : vector<1x128xf32> to vector<8x128xf32>
    %44 = arith.addf %43, %42 : vector<8x128xf32>
    %c5 = arith.constant 5 : index
    %c0_18 = arith.constant 0 : index
    %45 = vector.load %arg6[%c5, %c0_18] : memref<8x128xf32, #tpu.memory_space<vmem>>, vector<1x128xf32>
    %c5_19 = arith.constant 5 : index
    %c0_20 = arith.constant 0 : index
    %46 = vector.load %arg7[%c5_19, %c0_20] : memref<8x128xf32, #tpu.memory_space<vmem>>, vector<1x128xf32>
    %47 = vector.broadcast %8 : vector<8x1xf32> to vector<8x128xf32>
    %48 = vector.broadcast %46 : vector<1x128xf32> to vector<8x128xf32>
    %49 = arith.mulf %47, %48 : vector<8x128xf32>
    %50 = vector.broadcast %45 : vector<1x128xf32> to vector<8x128xf32>
    %51 = arith.addf %50, %49 : vector<8x128xf32>
    %c6 = arith.constant 6 : index
    %c0_21 = arith.constant 0 : index
    %52 = vector.load %arg6[%c6, %c0_21] : memref<8x128xf32, #tpu.memory_space<vmem>>, vector<1x128xf32>
    %c6_22 = arith.constant 6 : index
    %c0_23 = arith.constant 0 : index
    %53 = vector.load %arg7[%c6_22, %c0_23] : memref<8x128xf32, #tpu.memory_space<vmem>>, vector<1x128xf32>
    %54 = vector.broadcast %8 : vector<8x1xf32> to vector<8x128xf32>
    %55 = vector.broadcast %53 : vector<1x128xf32> to vector<8x128xf32>
    %56 = arith.mulf %54, %55 : vector<8x128xf32>
    %57 = vector.broadcast %52 : vector<1x128xf32> to vector<8x128xf32>
    %58 = arith.addf %57, %56 : vector<8x128xf32>
    %c7 = arith.constant 7 : index
    %c0_24 = arith.constant 0 : index
    %59 = vector.load %arg6[%c7, %c0_24] : memref<8x128xf32, #tpu.memory_space<vmem>>, vector<1x128xf32>
    %c7_25 = arith.constant 7 : index
    %c0_26 = arith.constant 0 : index
    %60 = vector.load %arg7[%c7_25, %c0_26] : memref<8x128xf32, #tpu.memory_space<vmem>>, vector<1x128xf32>
    %61 = vector.broadcast %8 : vector<8x1xf32> to vector<8x128xf32>
    %62 = vector.broadcast %60 : vector<1x128xf32> to vector<8x128xf32>
    %63 = arith.mulf %61, %62 : vector<8x128xf32>
    %64 = vector.broadcast %59 : vector<1x128xf32> to vector<8x128xf32>
    %65 = arith.addf %64, %63 : vector<8x128xf32>
    %c0_27 = arith.constant 0 : index
    %c0_28 = arith.constant 0 : index
    %c0_29 = arith.constant 0 : index
    %c0_30 = arith.constant 0 : index
    %66 = vector.load %arg3[%c0_27, %c0_28, %c0_29, %c0_30] : memref<1x4x8x128xf32, #tpu.memory_space<vmem>>, vector<1x1x8x128xf32>
    %67 = vector.shape_cast %66 : vector<1x1x8x128xf32> to vector<8x128xf32>
    %c127_i32 = arith.constant 127 : i32
    %68 = tpu.dynamic_rotate %67 by %c127_i32 dim 1 : vector<8x128xf32>, i32 -> vector<8x128xf32>
    %69 = vector.broadcast %9 : vector<1x128xf32> to vector<8x128xf32>
    %70 = arith.mulf %68, %69 : vector<8x128xf32>
    %c0_31 = arith.constant 0 : index
    %c0_32 = arith.constant 0 : index
    %c0_33 = arith.constant 0 : index
    %c0_34 = arith.constant 0 : index
    %71 = vector.load %arg4[%c0_31, %c0_32, %c0_33, %c0_34] : memref<1x4x8x128xf32, #tpu.memory_space<vmem>>, vector<1x1x8x128xf32>
    %72 = vector.shape_cast %71 : vector<1x1x8x128xf32> to vector<8x128xf32>
    %c127_i32_35 = arith.constant 127 : i32
    %73 = tpu.dynamic_rotate %72 by %c127_i32_35 dim 1 : vector<8x128xf32>, i32 -> vector<8x128xf32>
    %74 = vector.broadcast %9 : vector<1x128xf32> to vector<8x128xf32>
    %75 = arith.mulf %73, %74 : vector<8x128xf32>
    %c0_36 = arith.constant 0 : index
    %76 = memref.load %arg2[%c0_36] : memref<128xf32, #tpu.memory_space<smem>>
    %77 = vector.broadcast %76 : f32 to vector<8x128xf32>
    %78 = arith.mulf %77, %67 : vector<8x128xf32>
    %79 = arith.addf %16, %78 : vector<8x128xf32>
    %c32 = arith.constant 32 : index
    %80 = memref.load %arg2[%c32] : memref<128xf32, #tpu.memory_space<smem>>
    %81 = vector.broadcast %80 : f32 to vector<8x128xf32>
    %82 = arith.mulf %81, %70 : vector<8x128xf32>
    %83 = arith.addf %79, %82 : vector<8x128xf32>
    %c64 = arith.constant 64 : index
    %84 = memref.load %arg2[%c64] : memref<128xf32, #tpu.memory_space<smem>>
    %85 = vector.broadcast %84 : f32 to vector<8x128xf32>
    %86 = arith.mulf %85, %72 : vector<8x128xf32>
    %87 = arith.addf %83, %86 : vector<8x128xf32>
    %c96 = arith.constant 96 : index
    %88 = memref.load %arg2[%c96] : memref<128xf32, #tpu.memory_space<smem>>
    %89 = vector.broadcast %88 : f32 to vector<8x128xf32>
    %90 = arith.mulf %89, %75 : vector<8x128xf32>
    %91 = arith.addf %87, %90 : vector<8x128xf32>
    %c1_37 = arith.constant 1 : index
    %92 = memref.load %arg2[%c1_37] : memref<128xf32, #tpu.memory_space<smem>>
    %93 = vector.broadcast %92 : f32 to vector<8x128xf32>
    %94 = arith.mulf %93, %67 : vector<8x128xf32>
    %95 = arith.addf %23, %94 : vector<8x128xf32>
    %c33 = arith.constant 33 : index
    %96 = memref.load %arg2[%c33] : memref<128xf32, #tpu.memory_space<smem>>
    %97 = vector.broadcast %96 : f32 to vector<8x128xf32>
    %98 = arith.mulf %97, %70 : vector<8x128xf32>
    %99 = arith.addf %95, %98 : vector<8x128xf32>
    %c65 = arith.constant 65 : index
    %100 = memref.load %arg2[%c65] : memref<128xf32, #tpu.memory_space<smem>>
    %101 = vector.broadcast %100 : f32 to vector<8x128xf32>
    %102 = arith.mulf %101, %72 : vector<8x128xf32>
    %103 = arith.addf %99, %102 : vector<8x128xf32>
    %c97 = arith.constant 97 : index
    %104 = memref.load %arg2[%c97] : memref<128xf32, #tpu.memory_space<smem>>
    %105 = vector.broadcast %104 : f32 to vector<8x128xf32>
    %106 = arith.mulf %105, %75 : vector<8x128xf32>
    %107 = arith.addf %103, %106 : vector<8x128xf32>
    %c2_38 = arith.constant 2 : index
    %108 = memref.load %arg2[%c2_38] : memref<128xf32, #tpu.memory_space<smem>>
    %109 = vector.broadcast %108 : f32 to vector<8x128xf32>
    %110 = arith.mulf %109, %67 : vector<8x128xf32>
    %111 = arith.addf %30, %110 : vector<8x128xf32>
    %c34 = arith.constant 34 : index
    %112 = memref.load %arg2[%c34] : memref<128xf32, #tpu.memory_space<smem>>
    %113 = vector.broadcast %112 : f32 to vector<8x128xf32>
    %114 = arith.mulf %113, %70 : vector<8x128xf32>
    %115 = arith.addf %111, %114 : vector<8x128xf32>
    %c66 = arith.constant 66 : index
    %116 = memref.load %arg2[%c66] : memref<128xf32, #tpu.memory_space<smem>>
    %117 = vector.broadcast %116 : f32 to vector<8x128xf32>
    %118 = arith.mulf %117, %72 : vector<8x128xf32>
    %119 = arith.addf %115, %118 : vector<8x128xf32>
    %c98 = arith.constant 98 : index
    %120 = memref.load %arg2[%c98] : memref<128xf32, #tpu.memory_space<smem>>
    %121 = vector.broadcast %120 : f32 to vector<8x128xf32>
    %122 = arith.mulf %121, %75 : vector<8x128xf32>
    %123 = arith.addf %119, %122 : vector<8x128xf32>
    %c3_39 = arith.constant 3 : index
    %124 = memref.load %arg2[%c3_39] : memref<128xf32, #tpu.memory_space<smem>>
    %125 = vector.broadcast %124 : f32 to vector<8x128xf32>
    %126 = arith.mulf %125, %67 : vector<8x128xf32>
    %127 = arith.addf %37, %126 : vector<8x128xf32>
    %c35 = arith.constant 35 : index
    %128 = memref.load %arg2[%c35] : memref<128xf32, #tpu.memory_space<smem>>
    %129 = vector.broadcast %128 : f32 to vector<8x128xf32>
    %130 = arith.mulf %129, %70 : vector<8x128xf32>
    %131 = arith.addf %127, %130 : vector<8x128xf32>
    %c67 = arith.constant 67 : index
    %132 = memref.load %arg2[%c67] : memref<128xf32, #tpu.memory_space<smem>>
    %133 = vector.broadcast %132 : f32 to vector<8x128xf32>
    %134 = arith.mulf %133, %72 : vector<8x128xf32>
    %135 = arith.addf %131, %134 : vector<8x128xf32>
    %c99 = arith.constant 99 : index
    %136 = memref.load %arg2[%c99] : memref<128xf32, #tpu.memory_space<smem>>
    %137 = vector.broadcast %136 : f32 to vector<8x128xf32>
    %138 = arith.mulf %137, %75 : vector<8x128xf32>
    %139 = arith.addf %135, %138 : vector<8x128xf32>
    %c4_40 = arith.constant 4 : index
    %140 = memref.load %arg2[%c4_40] : memref<128xf32, #tpu.memory_space<smem>>
    %141 = vector.broadcast %140 : f32 to vector<8x128xf32>
    %142 = arith.mulf %141, %67 : vector<8x128xf32>
    %143 = arith.addf %44, %142 : vector<8x128xf32>
    %c36 = arith.constant 36 : index
    %144 = memref.load %arg2[%c36] : memref<128xf32, #tpu.memory_space<smem>>
    %145 = vector.broadcast %144 : f32 to vector<8x128xf32>
    %146 = arith.mulf %145, %70 : vector<8x128xf32>
    %147 = arith.addf %143, %146 : vector<8x128xf32>
    %c68 = arith.constant 68 : index
    %148 = memref.load %arg2[%c68] : memref<128xf32, #tpu.memory_space<smem>>
    %149 = vector.broadcast %148 : f32 to vector<8x128xf32>
    %150 = arith.mulf %149, %72 : vector<8x128xf32>
    %151 = arith.addf %147, %150 : vector<8x128xf32>
    %c100 = arith.constant 100 : index
    %152 = memref.load %arg2[%c100] : memref<128xf32, #tpu.memory_space<smem>>
    %153 = vector.broadcast %152 : f32 to vector<8x128xf32>
    %154 = arith.mulf %153, %75 : vector<8x128xf32>
    %155 = arith.addf %151, %154 : vector<8x128xf32>
    %c5_41 = arith.constant 5 : index
    %156 = memref.load %arg2[%c5_41] : memref<128xf32, #tpu.memory_space<smem>>
    %157 = vector.broadcast %156 : f32 to vector<8x128xf32>
    %158 = arith.mulf %157, %67 : vector<8x128xf32>
    %159 = arith.addf %51, %158 : vector<8x128xf32>
    %c37 = arith.constant 37 : index
    %160 = memref.load %arg2[%c37] : memref<128xf32, #tpu.memory_space<smem>>
    %161 = vector.broadcast %160 : f32 to vector<8x128xf32>
    %162 = arith.mulf %161, %70 : vector<8x128xf32>
    %163 = arith.addf %159, %162 : vector<8x128xf32>
    %c69 = arith.constant 69 : index
    %164 = memref.load %arg2[%c69] : memref<128xf32, #tpu.memory_space<smem>>
    %165 = vector.broadcast %164 : f32 to vector<8x128xf32>
    %166 = arith.mulf %165, %72 : vector<8x128xf32>
    %167 = arith.addf %163, %166 : vector<8x128xf32>
    %c101 = arith.constant 101 : index
    %168 = memref.load %arg2[%c101] : memref<128xf32, #tpu.memory_space<smem>>
    %169 = vector.broadcast %168 : f32 to vector<8x128xf32>
    %170 = arith.mulf %169, %75 : vector<8x128xf32>
    %171 = arith.addf %167, %170 : vector<8x128xf32>
    %c6_42 = arith.constant 6 : index
    %172 = memref.load %arg2[%c6_42] : memref<128xf32, #tpu.memory_space<smem>>
    %173 = vector.broadcast %172 : f32 to vector<8x128xf32>
    %174 = arith.mulf %173, %67 : vector<8x128xf32>
    %175 = arith.addf %58, %174 : vector<8x128xf32>
    %c38 = arith.constant 38 : index
    %176 = memref.load %arg2[%c38] : memref<128xf32, #tpu.memory_space<smem>>
    %177 = vector.broadcast %176 : f32 to vector<8x128xf32>
    %178 = arith.mulf %177, %70 : vector<8x128xf32>
    %179 = arith.addf %175, %178 : vector<8x128xf32>
    %c70 = arith.constant 70 : index
    %180 = memref.load %arg2[%c70] : memref<128xf32, #tpu.memory_space<smem>>
    %181 = vector.broadcast %180 : f32 to vector<8x128xf32>
    %182 = arith.mulf %181, %72 : vector<8x128xf32>
    %183 = arith.addf %179, %182 : vector<8x128xf32>
    %c102 = arith.constant 102 : index
    %184 = memref.load %arg2[%c102] : memref<128xf32, #tpu.memory_space<smem>>
    %185 = vector.broadcast %184 : f32 to vector<8x128xf32>
    %186 = arith.mulf %185, %75 : vector<8x128xf32>
    %187 = arith.addf %183, %186 : vector<8x128xf32>
    %c7_43 = arith.constant 7 : index
    %188 = memref.load %arg2[%c7_43] : memref<128xf32, #tpu.memory_space<smem>>
    %189 = vector.broadcast %188 : f32 to vector<8x128xf32>
    %190 = arith.mulf %189, %67 : vector<8x128xf32>
    %191 = arith.addf %65, %190 : vector<8x128xf32>
    %c39 = arith.constant 39 : index
    %192 = memref.load %arg2[%c39] : memref<128xf32, #tpu.memory_space<smem>>
    %193 = vector.broadcast %192 : f32 to vector<8x128xf32>
    %194 = arith.mulf %193, %70 : vector<8x128xf32>
    %195 = arith.addf %191, %194 : vector<8x128xf32>
    %c71 = arith.constant 71 : index
    %196 = memref.load %arg2[%c71] : memref<128xf32, #tpu.memory_space<smem>>
    %197 = vector.broadcast %196 : f32 to vector<8x128xf32>
    %198 = arith.mulf %197, %72 : vector<8x128xf32>
    %199 = arith.addf %195, %198 : vector<8x128xf32>
    %c103 = arith.constant 103 : index
    %200 = memref.load %arg2[%c103] : memref<128xf32, #tpu.memory_space<smem>>
    %201 = vector.broadcast %200 : f32 to vector<8x128xf32>
    %202 = arith.mulf %201, %75 : vector<8x128xf32>
    %203 = arith.addf %199, %202 : vector<8x128xf32>
    %c0_44 = arith.constant 0 : index
    %c1_45 = arith.constant 1 : index
    %c0_46 = arith.constant 0 : index
    %c0_47 = arith.constant 0 : index
    %204 = vector.load %arg3[%c0_44, %c1_45, %c0_46, %c0_47] : memref<1x4x8x128xf32, #tpu.memory_space<vmem>>, vector<1x1x8x128xf32>
    %205 = vector.shape_cast %204 : vector<1x1x8x128xf32> to vector<8x128xf32>
    %c127_i32_48 = arith.constant 127 : i32
    %206 = tpu.dynamic_rotate %205 by %c127_i32_48 dim 1 : vector<8x128xf32>, i32 -> vector<8x128xf32>
    %207 = vector.broadcast %9 : vector<1x128xf32> to vector<8x128xf32>
    %208 = arith.mulf %206, %207 : vector<8x128xf32>
    %c0_49 = arith.constant 0 : index
    %c1_50 = arith.constant 1 : index
    %c0_51 = arith.constant 0 : index
    %c0_52 = arith.constant 0 : index
    %209 = vector.load %arg4[%c0_49, %c1_50, %c0_51, %c0_52] : memref<1x4x8x128xf32, #tpu.memory_space<vmem>>, vector<1x1x8x128xf32>
    %210 = vector.shape_cast %209 : vector<1x1x8x128xf32> to vector<8x128xf32>
    %c127_i32_53 = arith.constant 127 : i32
    %211 = tpu.dynamic_rotate %210 by %c127_i32_53 dim 1 : vector<8x128xf32>, i32 -> vector<8x128xf32>
    %212 = vector.broadcast %9 : vector<1x128xf32> to vector<8x128xf32>
    %213 = arith.mulf %211, %212 : vector<8x128xf32>
    %c8 = arith.constant 8 : index
    %214 = memref.load %arg2[%c8] : memref<128xf32, #tpu.memory_space<smem>>
    %215 = vector.broadcast %214 : f32 to vector<8x128xf32>
    %216 = arith.mulf %215, %205 : vector<8x128xf32>
    %217 = arith.addf %91, %216 : vector<8x128xf32>
    %c40 = arith.constant 40 : index
    %218 = memref.load %arg2[%c40] : memref<128xf32, #tpu.memory_space<smem>>
    %219 = vector.broadcast %218 : f32 to vector<8x128xf32>
    %220 = arith.mulf %219, %208 : vector<8x128xf32>
    %221 = arith.addf %217, %220 : vector<8x128xf32>
    %c72 = arith.constant 72 : index
    %222 = memref.load %arg2[%c72] : memref<128xf32, #tpu.memory_space<smem>>
    %223 = vector.broadcast %222 : f32 to vector<8x128xf32>
    %224 = arith.mulf %223, %210 : vector<8x128xf32>
    %225 = arith.addf %221, %224 : vector<8x128xf32>
    %c104 = arith.constant 104 : index
    %226 = memref.load %arg2[%c104] : memref<128xf32, #tpu.memory_space<smem>>
    %227 = vector.broadcast %226 : f32 to vector<8x128xf32>
    %228 = arith.mulf %227, %213 : vector<8x128xf32>
    %229 = arith.addf %225, %228 : vector<8x128xf32>
    %c9 = arith.constant 9 : index
    %230 = memref.load %arg2[%c9] : memref<128xf32, #tpu.memory_space<smem>>
    %231 = vector.broadcast %230 : f32 to vector<8x128xf32>
    %232 = arith.mulf %231, %205 : vector<8x128xf32>
    %233 = arith.addf %107, %232 : vector<8x128xf32>
    %c41 = arith.constant 41 : index
    %234 = memref.load %arg2[%c41] : memref<128xf32, #tpu.memory_space<smem>>
    %235 = vector.broadcast %234 : f32 to vector<8x128xf32>
    %236 = arith.mulf %235, %208 : vector<8x128xf32>
    %237 = arith.addf %233, %236 : vector<8x128xf32>
    %c73 = arith.constant 73 : index
    %238 = memref.load %arg2[%c73] : memref<128xf32, #tpu.memory_space<smem>>
    %239 = vector.broadcast %238 : f32 to vector<8x128xf32>
    %240 = arith.mulf %239, %210 : vector<8x128xf32>
    %241 = arith.addf %237, %240 : vector<8x128xf32>
    %c105 = arith.constant 105 : index
    %242 = memref.load %arg2[%c105] : memref<128xf32, #tpu.memory_space<smem>>
    %243 = vector.broadcast %242 : f32 to vector<8x128xf32>
    %244 = arith.mulf %243, %213 : vector<8x128xf32>
    %245 = arith.addf %241, %244 : vector<8x128xf32>
    %c10 = arith.constant 10 : index
    %246 = memref.load %arg2[%c10] : memref<128xf32, #tpu.memory_space<smem>>
    %247 = vector.broadcast %246 : f32 to vector<8x128xf32>
    %248 = arith.mulf %247, %205 : vector<8x128xf32>
    %249 = arith.addf %123, %248 : vector<8x128xf32>
    %c42 = arith.constant 42 : index
    %250 = memref.load %arg2[%c42] : memref<128xf32, #tpu.memory_space<smem>>
    %251 = vector.broadcast %250 : f32 to vector<8x128xf32>
    %252 = arith.mulf %251, %208 : vector<8x128xf32>
    %253 = arith.addf %249, %252 : vector<8x128xf32>
    %c74 = arith.constant 74 : index
    %254 = memref.load %arg2[%c74] : memref<128xf32, #tpu.memory_space<smem>>
    %255 = vector.broadcast %254 : f32 to vector<8x128xf32>
    %256 = arith.mulf %255, %210 : vector<8x128xf32>
    %257 = arith.addf %253, %256 : vector<8x128xf32>
    %c106 = arith.constant 106 : index
    %258 = memref.load %arg2[%c106] : memref<128xf32, #tpu.memory_space<smem>>
    %259 = vector.broadcast %258 : f32 to vector<8x128xf32>
    %260 = arith.mulf %259, %213 : vector<8x128xf32>
    %261 = arith.addf %257, %260 : vector<8x128xf32>
    %c11 = arith.constant 11 : index
    %262 = memref.load %arg2[%c11] : memref<128xf32, #tpu.memory_space<smem>>
    %263 = vector.broadcast %262 : f32 to vector<8x128xf32>
    %264 = arith.mulf %263, %205 : vector<8x128xf32>
    %265 = arith.addf %139, %264 : vector<8x128xf32>
    %c43 = arith.constant 43 : index
    %266 = memref.load %arg2[%c43] : memref<128xf32, #tpu.memory_space<smem>>
    %267 = vector.broadcast %266 : f32 to vector<8x128xf32>
    %268 = arith.mulf %267, %208 : vector<8x128xf32>
    %269 = arith.addf %265, %268 : vector<8x128xf32>
    %c75 = arith.constant 75 : index
    %270 = memref.load %arg2[%c75] : memref<128xf32, #tpu.memory_space<smem>>
    %271 = vector.broadcast %270 : f32 to vector<8x128xf32>
    %272 = arith.mulf %271, %210 : vector<8x128xf32>
    %273 = arith.addf %269, %272 : vector<8x128xf32>
    %c107 = arith.constant 107 : index
    %274 = memref.load %arg2[%c107] : memref<128xf32, #tpu.memory_space<smem>>
    %275 = vector.broadcast %274 : f32 to vector<8x128xf32>
    %276 = arith.mulf %275, %213 : vector<8x128xf32>
    %277 = arith.addf %273, %276 : vector<8x128xf32>
    %c12 = arith.constant 12 : index
    %278 = memref.load %arg2[%c12] : memref<128xf32, #tpu.memory_space<smem>>
    %279 = vector.broadcast %278 : f32 to vector<8x128xf32>
    %280 = arith.mulf %279, %205 : vector<8x128xf32>
    %281 = arith.addf %155, %280 : vector<8x128xf32>
    %c44 = arith.constant 44 : index
    %282 = memref.load %arg2[%c44] : memref<128xf32, #tpu.memory_space<smem>>
    %283 = vector.broadcast %282 : f32 to vector<8x128xf32>
    %284 = arith.mulf %283, %208 : vector<8x128xf32>
    %285 = arith.addf %281, %284 : vector<8x128xf32>
    %c76 = arith.constant 76 : index
    %286 = memref.load %arg2[%c76] : memref<128xf32, #tpu.memory_space<smem>>
    %287 = vector.broadcast %286 : f32 to vector<8x128xf32>
    %288 = arith.mulf %287, %210 : vector<8x128xf32>
    %289 = arith.addf %285, %288 : vector<8x128xf32>
    %c108 = arith.constant 108 : index
    %290 = memref.load %arg2[%c108] : memref<128xf32, #tpu.memory_space<smem>>
    %291 = vector.broadcast %290 : f32 to vector<8x128xf32>
    %292 = arith.mulf %291, %213 : vector<8x128xf32>
    %293 = arith.addf %289, %292 : vector<8x128xf32>
    %c13 = arith.constant 13 : index
    %294 = memref.load %arg2[%c13] : memref<128xf32, #tpu.memory_space<smem>>
    %295 = vector.broadcast %294 : f32 to vector<8x128xf32>
    %296 = arith.mulf %295, %205 : vector<8x128xf32>
    %297 = arith.addf %171, %296 : vector<8x128xf32>
    %c45 = arith.constant 45 : index
    %298 = memref.load %arg2[%c45] : memref<128xf32, #tpu.memory_space<smem>>
    %299 = vector.broadcast %298 : f32 to vector<8x128xf32>
    %300 = arith.mulf %299, %208 : vector<8x128xf32>
    %301 = arith.addf %297, %300 : vector<8x128xf32>
    %c77 = arith.constant 77 : index
    %302 = memref.load %arg2[%c77] : memref<128xf32, #tpu.memory_space<smem>>
    %303 = vector.broadcast %302 : f32 to vector<8x128xf32>
    %304 = arith.mulf %303, %210 : vector<8x128xf32>
    %305 = arith.addf %301, %304 : vector<8x128xf32>
    %c109 = arith.constant 109 : index
    %306 = memref.load %arg2[%c109] : memref<128xf32, #tpu.memory_space<smem>>
    %307 = vector.broadcast %306 : f32 to vector<8x128xf32>
    %308 = arith.mulf %307, %213 : vector<8x128xf32>
    %309 = arith.addf %305, %308 : vector<8x128xf32>
    %c14 = arith.constant 14 : index
    %310 = memref.load %arg2[%c14] : memref<128xf32, #tpu.memory_space<smem>>
    %311 = vector.broadcast %310 : f32 to vector<8x128xf32>
    %312 = arith.mulf %311, %205 : vector<8x128xf32>
    %313 = arith.addf %187, %312 : vector<8x128xf32>
    %c46 = arith.constant 46 : index
    %314 = memref.load %arg2[%c46] : memref<128xf32, #tpu.memory_space<smem>>
    %315 = vector.broadcast %314 : f32 to vector<8x128xf32>
    %316 = arith.mulf %315, %208 : vector<8x128xf32>
    %317 = arith.addf %313, %316 : vector<8x128xf32>
    %c78 = arith.constant 78 : index
    %318 = memref.load %arg2[%c78] : memref<128xf32, #tpu.memory_space<smem>>
    %319 = vector.broadcast %318 : f32 to vector<8x128xf32>
    %320 = arith.mulf %319, %210 : vector<8x128xf32>
    %321 = arith.addf %317, %320 : vector<8x128xf32>
    %c110 = arith.constant 110 : index
    %322 = memref.load %arg2[%c110] : memref<128xf32, #tpu.memory_space<smem>>
    %323 = vector.broadcast %322 : f32 to vector<8x128xf32>
    %324 = arith.mulf %323, %213 : vector<8x128xf32>
    %325 = arith.addf %321, %324 : vector<8x128xf32>
    %c15 = arith.constant 15 : index
    %326 = memref.load %arg2[%c15] : memref<128xf32, #tpu.memory_space<smem>>
    %327 = vector.broadcast %326 : f32 to vector<8x128xf32>
    %328 = arith.mulf %327, %205 : vector<8x128xf32>
    %329 = arith.addf %203, %328 : vector<8x128xf32>
    %c47 = arith.constant 47 : index
    %330 = memref.load %arg2[%c47] : memref<128xf32, #tpu.memory_space<smem>>
    %331 = vector.broadcast %330 : f32 to vector<8x128xf32>
    %332 = arith.mulf %331, %208 : vector<8x128xf32>
    %333 = arith.addf %329, %332 : vector<8x128xf32>
    %c79 = arith.constant 79 : index
    %334 = memref.load %arg2[%c79] : memref<128xf32, #tpu.memory_space<smem>>
    %335 = vector.broadcast %334 : f32 to vector<8x128xf32>
    %336 = arith.mulf %335, %210 : vector<8x128xf32>
    %337 = arith.addf %333, %336 : vector<8x128xf32>
    %c111 = arith.constant 111 : index
    %338 = memref.load %arg2[%c111] : memref<128xf32, #tpu.memory_space<smem>>
    %339 = vector.broadcast %338 : f32 to vector<8x128xf32>
    %340 = arith.mulf %339, %213 : vector<8x128xf32>
    %341 = arith.addf %337, %340 : vector<8x128xf32>
    %c0_54 = arith.constant 0 : index
    %c2_55 = arith.constant 2 : index
    %c0_56 = arith.constant 0 : index
    %c0_57 = arith.constant 0 : index
    %342 = vector.load %arg3[%c0_54, %c2_55, %c0_56, %c0_57] : memref<1x4x8x128xf32, #tpu.memory_space<vmem>>, vector<1x1x8x128xf32>
    %343 = vector.shape_cast %342 : vector<1x1x8x128xf32> to vector<8x128xf32>
    %c127_i32_58 = arith.constant 127 : i32
    %344 = tpu.dynamic_rotate %343 by %c127_i32_58 dim 1 : vector<8x128xf32>, i32 -> vector<8x128xf32>
    %345 = vector.broadcast %9 : vector<1x128xf32> to vector<8x128xf32>
    %346 = arith.mulf %344, %345 : vector<8x128xf32>
    %c0_59 = arith.constant 0 : index
    %c2_60 = arith.constant 2 : index
    %c0_61 = arith.constant 0 : index
    %c0_62 = arith.constant 0 : index
    %347 = vector.load %arg4[%c0_59, %c2_60, %c0_61, %c0_62] : memref<1x4x8x128xf32, #tpu.memory_space<vmem>>, vector<1x1x8x128xf32>
    %348 = vector.shape_cast %347 : vector<1x1x8x128xf32> to vector<8x128xf32>
    %c127_i32_63 = arith.constant 127 : i32
    %349 = tpu.dynamic_rotate %348 by %c127_i32_63 dim 1 : vector<8x128xf32>, i32 -> vector<8x128xf32>
    %350 = vector.broadcast %9 : vector<1x128xf32> to vector<8x128xf32>
    %351 = arith.mulf %349, %350 : vector<8x128xf32>
    %c16 = arith.constant 16 : index
    %352 = memref.load %arg2[%c16] : memref<128xf32, #tpu.memory_space<smem>>
    %353 = vector.broadcast %352 : f32 to vector<8x128xf32>
    %354 = arith.mulf %353, %343 : vector<8x128xf32>
    %355 = arith.addf %229, %354 : vector<8x128xf32>
    %c48 = arith.constant 48 : index
    %356 = memref.load %arg2[%c48] : memref<128xf32, #tpu.memory_space<smem>>
    %357 = vector.broadcast %356 : f32 to vector<8x128xf32>
    %358 = arith.mulf %357, %346 : vector<8x128xf32>
    %359 = arith.addf %355, %358 : vector<8x128xf32>
    %c80 = arith.constant 80 : index
    %360 = memref.load %arg2[%c80] : memref<128xf32, #tpu.memory_space<smem>>
    %361 = vector.broadcast %360 : f32 to vector<8x128xf32>
    %362 = arith.mulf %361, %348 : vector<8x128xf32>
    %363 = arith.addf %359, %362 : vector<8x128xf32>
    %c112 = arith.constant 112 : index
    %364 = memref.load %arg2[%c112] : memref<128xf32, #tpu.memory_space<smem>>
    %365 = vector.broadcast %364 : f32 to vector<8x128xf32>
    %366 = arith.mulf %365, %351 : vector<8x128xf32>
    %367 = arith.addf %363, %366 : vector<8x128xf32>
    %c17 = arith.constant 17 : index
    %368 = memref.load %arg2[%c17] : memref<128xf32, #tpu.memory_space<smem>>
    %369 = vector.broadcast %368 : f32 to vector<8x128xf32>
    %370 = arith.mulf %369, %343 : vector<8x128xf32>
    %371 = arith.addf %245, %370 : vector<8x128xf32>
    %c49 = arith.constant 49 : index
    %372 = memref.load %arg2[%c49] : memref<128xf32, #tpu.memory_space<smem>>
    %373 = vector.broadcast %372 : f32 to vector<8x128xf32>
    %374 = arith.mulf %373, %346 : vector<8x128xf32>
    %375 = arith.addf %371, %374 : vector<8x128xf32>
    %c81 = arith.constant 81 : index
    %376 = memref.load %arg2[%c81] : memref<128xf32, #tpu.memory_space<smem>>
    %377 = vector.broadcast %376 : f32 to vector<8x128xf32>
    %378 = arith.mulf %377, %348 : vector<8x128xf32>
    %379 = arith.addf %375, %378 : vector<8x128xf32>
    %c113 = arith.constant 113 : index
    %380 = memref.load %arg2[%c113] : memref<128xf32, #tpu.memory_space<smem>>
    %381 = vector.broadcast %380 : f32 to vector<8x128xf32>
    %382 = arith.mulf %381, %351 : vector<8x128xf32>
    %383 = arith.addf %379, %382 : vector<8x128xf32>
    %c18 = arith.constant 18 : index
    %384 = memref.load %arg2[%c18] : memref<128xf32, #tpu.memory_space<smem>>
    %385 = vector.broadcast %384 : f32 to vector<8x128xf32>
    %386 = arith.mulf %385, %343 : vector<8x128xf32>
    %387 = arith.addf %261, %386 : vector<8x128xf32>
    %c50 = arith.constant 50 : index
    %388 = memref.load %arg2[%c50] : memref<128xf32, #tpu.memory_space<smem>>
    %389 = vector.broadcast %388 : f32 to vector<8x128xf32>
    %390 = arith.mulf %389, %346 : vector<8x128xf32>
    %391 = arith.addf %387, %390 : vector<8x128xf32>
    %c82 = arith.constant 82 : index
    %392 = memref.load %arg2[%c82] : memref<128xf32, #tpu.memory_space<smem>>
    %393 = vector.broadcast %392 : f32 to vector<8x128xf32>
    %394 = arith.mulf %393, %348 : vector<8x128xf32>
    %395 = arith.addf %391, %394 : vector<8x128xf32>
    %c114 = arith.constant 114 : index
    %396 = memref.load %arg2[%c114] : memref<128xf32, #tpu.memory_space<smem>>
    %397 = vector.broadcast %396 : f32 to vector<8x128xf32>
    %398 = arith.mulf %397, %351 : vector<8x128xf32>
    %399 = arith.addf %395, %398 : vector<8x128xf32>
    %c19 = arith.constant 19 : index
    %400 = memref.load %arg2[%c19] : memref<128xf32, #tpu.memory_space<smem>>
    %401 = vector.broadcast %400 : f32 to vector<8x128xf32>
    %402 = arith.mulf %401, %343 : vector<8x128xf32>
    %403 = arith.addf %277, %402 : vector<8x128xf32>
    %c51 = arith.constant 51 : index
    %404 = memref.load %arg2[%c51] : memref<128xf32, #tpu.memory_space<smem>>
    %405 = vector.broadcast %404 : f32 to vector<8x128xf32>
    %406 = arith.mulf %405, %346 : vector<8x128xf32>
    %407 = arith.addf %403, %406 : vector<8x128xf32>
    %c83 = arith.constant 83 : index
    %408 = memref.load %arg2[%c83] : memref<128xf32, #tpu.memory_space<smem>>
    %409 = vector.broadcast %408 : f32 to vector<8x128xf32>
    %410 = arith.mulf %409, %348 : vector<8x128xf32>
    %411 = arith.addf %407, %410 : vector<8x128xf32>
    %c115 = arith.constant 115 : index
    %412 = memref.load %arg2[%c115] : memref<128xf32, #tpu.memory_space<smem>>
    %413 = vector.broadcast %412 : f32 to vector<8x128xf32>
    %414 = arith.mulf %413, %351 : vector<8x128xf32>
    %415 = arith.addf %411, %414 : vector<8x128xf32>
    %c20 = arith.constant 20 : index
    %416 = memref.load %arg2[%c20] : memref<128xf32, #tpu.memory_space<smem>>
    %417 = vector.broadcast %416 : f32 to vector<8x128xf32>
    %418 = arith.mulf %417, %343 : vector<8x128xf32>
    %419 = arith.addf %293, %418 : vector<8x128xf32>
    %c52 = arith.constant 52 : index
    %420 = memref.load %arg2[%c52] : memref<128xf32, #tpu.memory_space<smem>>
    %421 = vector.broadcast %420 : f32 to vector<8x128xf32>
    %422 = arith.mulf %421, %346 : vector<8x128xf32>
    %423 = arith.addf %419, %422 : vector<8x128xf32>
    %c84 = arith.constant 84 : index
    %424 = memref.load %arg2[%c84] : memref<128xf32, #tpu.memory_space<smem>>
    %425 = vector.broadcast %424 : f32 to vector<8x128xf32>
    %426 = arith.mulf %425, %348 : vector<8x128xf32>
    %427 = arith.addf %423, %426 : vector<8x128xf32>
    %c116 = arith.constant 116 : index
    %428 = memref.load %arg2[%c116] : memref<128xf32, #tpu.memory_space<smem>>
    %429 = vector.broadcast %428 : f32 to vector<8x128xf32>
    %430 = arith.mulf %429, %351 : vector<8x128xf32>
    %431 = arith.addf %427, %430 : vector<8x128xf32>
    %c21 = arith.constant 21 : index
    %432 = memref.load %arg2[%c21] : memref<128xf32, #tpu.memory_space<smem>>
    %433 = vector.broadcast %432 : f32 to vector<8x128xf32>
    %434 = arith.mulf %433, %343 : vector<8x128xf32>
    %435 = arith.addf %309, %434 : vector<8x128xf32>
    %c53 = arith.constant 53 : index
    %436 = memref.load %arg2[%c53] : memref<128xf32, #tpu.memory_space<smem>>
    %437 = vector.broadcast %436 : f32 to vector<8x128xf32>
    %438 = arith.mulf %437, %346 : vector<8x128xf32>
    %439 = arith.addf %435, %438 : vector<8x128xf32>
    %c85 = arith.constant 85 : index
    %440 = memref.load %arg2[%c85] : memref<128xf32, #tpu.memory_space<smem>>
    %441 = vector.broadcast %440 : f32 to vector<8x128xf32>
    %442 = arith.mulf %441, %348 : vector<8x128xf32>
    %443 = arith.addf %439, %442 : vector<8x128xf32>
    %c117 = arith.constant 117 : index
    %444 = memref.load %arg2[%c117] : memref<128xf32, #tpu.memory_space<smem>>
    %445 = vector.broadcast %444 : f32 to vector<8x128xf32>
    %446 = arith.mulf %445, %351 : vector<8x128xf32>
    %447 = arith.addf %443, %446 : vector<8x128xf32>
    %c22 = arith.constant 22 : index
    %448 = memref.load %arg2[%c22] : memref<128xf32, #tpu.memory_space<smem>>
    %449 = vector.broadcast %448 : f32 to vector<8x128xf32>
    %450 = arith.mulf %449, %343 : vector<8x128xf32>
    %451 = arith.addf %325, %450 : vector<8x128xf32>
    %c54 = arith.constant 54 : index
    %452 = memref.load %arg2[%c54] : memref<128xf32, #tpu.memory_space<smem>>
    %453 = vector.broadcast %452 : f32 to vector<8x128xf32>
    %454 = arith.mulf %453, %346 : vector<8x128xf32>
    %455 = arith.addf %451, %454 : vector<8x128xf32>
    %c86 = arith.constant 86 : index
    %456 = memref.load %arg2[%c86] : memref<128xf32, #tpu.memory_space<smem>>
    %457 = vector.broadcast %456 : f32 to vector<8x128xf32>
    %458 = arith.mulf %457, %348 : vector<8x128xf32>
    %459 = arith.addf %455, %458 : vector<8x128xf32>
    %c118 = arith.constant 118 : index
    %460 = memref.load %arg2[%c118] : memref<128xf32, #tpu.memory_space<smem>>
    %461 = vector.broadcast %460 : f32 to vector<8x128xf32>
    %462 = arith.mulf %461, %351 : vector<8x128xf32>
    %463 = arith.addf %459, %462 : vector<8x128xf32>
    %c23 = arith.constant 23 : index
    %464 = memref.load %arg2[%c23] : memref<128xf32, #tpu.memory_space<smem>>
    %465 = vector.broadcast %464 : f32 to vector<8x128xf32>
    %466 = arith.mulf %465, %343 : vector<8x128xf32>
    %467 = arith.addf %341, %466 : vector<8x128xf32>
    %c55 = arith.constant 55 : index
    %468 = memref.load %arg2[%c55] : memref<128xf32, #tpu.memory_space<smem>>
    %469 = vector.broadcast %468 : f32 to vector<8x128xf32>
    %470 = arith.mulf %469, %346 : vector<8x128xf32>
    %471 = arith.addf %467, %470 : vector<8x128xf32>
    %c87 = arith.constant 87 : index
    %472 = memref.load %arg2[%c87] : memref<128xf32, #tpu.memory_space<smem>>
    %473 = vector.broadcast %472 : f32 to vector<8x128xf32>
    %474 = arith.mulf %473, %348 : vector<8x128xf32>
    %475 = arith.addf %471, %474 : vector<8x128xf32>
    %c119 = arith.constant 119 : index
    %476 = memref.load %arg2[%c119] : memref<128xf32, #tpu.memory_space<smem>>
    %477 = vector.broadcast %476 : f32 to vector<8x128xf32>
    %478 = arith.mulf %477, %351 : vector<8x128xf32>
    %479 = arith.addf %475, %478 : vector<8x128xf32>
    %c0_64 = arith.constant 0 : index
    %c3_65 = arith.constant 3 : index
    %c0_66 = arith.constant 0 : index
    %c0_67 = arith.constant 0 : index
    %480 = vector.load %arg3[%c0_64, %c3_65, %c0_66, %c0_67] : memref<1x4x8x128xf32, #tpu.memory_space<vmem>>, vector<1x1x8x128xf32>
    %481 = vector.shape_cast %480 : vector<1x1x8x128xf32> to vector<8x128xf32>
    %c127_i32_68 = arith.constant 127 : i32
    %482 = tpu.dynamic_rotate %481 by %c127_i32_68 dim 1 : vector<8x128xf32>, i32 -> vector<8x128xf32>
    %483 = vector.broadcast %9 : vector<1x128xf32> to vector<8x128xf32>
    %484 = arith.mulf %482, %483 : vector<8x128xf32>
    %c0_69 = arith.constant 0 : index
    %c3_70 = arith.constant 3 : index
    %c0_71 = arith.constant 0 : index
    %c0_72 = arith.constant 0 : index
    %485 = vector.load %arg4[%c0_69, %c3_70, %c0_71, %c0_72] : memref<1x4x8x128xf32, #tpu.memory_space<vmem>>, vector<1x1x8x128xf32>
    %486 = vector.shape_cast %485 : vector<1x1x8x128xf32> to vector<8x128xf32>
    %c127_i32_73 = arith.constant 127 : i32
    %487 = tpu.dynamic_rotate %486 by %c127_i32_73 dim 1 : vector<8x128xf32>, i32 -> vector<8x128xf32>
    %488 = vector.broadcast %9 : vector<1x128xf32> to vector<8x128xf32>
    %489 = arith.mulf %487, %488 : vector<8x128xf32>
    %c24 = arith.constant 24 : index
    %490 = memref.load %arg2[%c24] : memref<128xf32, #tpu.memory_space<smem>>
    %491 = vector.broadcast %490 : f32 to vector<8x128xf32>
    %492 = arith.mulf %491, %481 : vector<8x128xf32>
    %493 = arith.addf %367, %492 : vector<8x128xf32>
    %c56 = arith.constant 56 : index
    %494 = memref.load %arg2[%c56] : memref<128xf32, #tpu.memory_space<smem>>
    %495 = vector.broadcast %494 : f32 to vector<8x128xf32>
    %496 = arith.mulf %495, %484 : vector<8x128xf32>
    %497 = arith.addf %493, %496 : vector<8x128xf32>
    %c88 = arith.constant 88 : index
    %498 = memref.load %arg2[%c88] : memref<128xf32, #tpu.memory_space<smem>>
    %499 = vector.broadcast %498 : f32 to vector<8x128xf32>
    %500 = arith.mulf %499, %486 : vector<8x128xf32>
    %501 = arith.addf %497, %500 : vector<8x128xf32>
    %c120 = arith.constant 120 : index
    %502 = memref.load %arg2[%c120] : memref<128xf32, #tpu.memory_space<smem>>
    %503 = vector.broadcast %502 : f32 to vector<8x128xf32>
    %504 = arith.mulf %503, %489 : vector<8x128xf32>
    %505 = arith.addf %501, %504 : vector<8x128xf32>
    %c25 = arith.constant 25 : index
    %506 = memref.load %arg2[%c25] : memref<128xf32, #tpu.memory_space<smem>>
    %507 = vector.broadcast %506 : f32 to vector<8x128xf32>
    %508 = arith.mulf %507, %481 : vector<8x128xf32>
    %509 = arith.addf %383, %508 : vector<8x128xf32>
    %c57 = arith.constant 57 : index
    %510 = memref.load %arg2[%c57] : memref<128xf32, #tpu.memory_space<smem>>
    %511 = vector.broadcast %510 : f32 to vector<8x128xf32>
    %512 = arith.mulf %511, %484 : vector<8x128xf32>
    %513 = arith.addf %509, %512 : vector<8x128xf32>
    %c89 = arith.constant 89 : index
    %514 = memref.load %arg2[%c89] : memref<128xf32, #tpu.memory_space<smem>>
    %515 = vector.broadcast %514 : f32 to vector<8x128xf32>
    %516 = arith.mulf %515, %486 : vector<8x128xf32>
    %517 = arith.addf %513, %516 : vector<8x128xf32>
    %c121 = arith.constant 121 : index
    %518 = memref.load %arg2[%c121] : memref<128xf32, #tpu.memory_space<smem>>
    %519 = vector.broadcast %518 : f32 to vector<8x128xf32>
    %520 = arith.mulf %519, %489 : vector<8x128xf32>
    %521 = arith.addf %517, %520 : vector<8x128xf32>
    %c26 = arith.constant 26 : index
    %522 = memref.load %arg2[%c26] : memref<128xf32, #tpu.memory_space<smem>>
    %523 = vector.broadcast %522 : f32 to vector<8x128xf32>
    %524 = arith.mulf %523, %481 : vector<8x128xf32>
    %525 = arith.addf %399, %524 : vector<8x128xf32>
    %c58 = arith.constant 58 : index
    %526 = memref.load %arg2[%c58] : memref<128xf32, #tpu.memory_space<smem>>
    %527 = vector.broadcast %526 : f32 to vector<8x128xf32>
    %528 = arith.mulf %527, %484 : vector<8x128xf32>
    %529 = arith.addf %525, %528 : vector<8x128xf32>
    %c90 = arith.constant 90 : index
    %530 = memref.load %arg2[%c90] : memref<128xf32, #tpu.memory_space<smem>>
    %531 = vector.broadcast %530 : f32 to vector<8x128xf32>
    %532 = arith.mulf %531, %486 : vector<8x128xf32>
    %533 = arith.addf %529, %532 : vector<8x128xf32>
    %c122 = arith.constant 122 : index
    %534 = memref.load %arg2[%c122] : memref<128xf32, #tpu.memory_space<smem>>
    %535 = vector.broadcast %534 : f32 to vector<8x128xf32>
    %536 = arith.mulf %535, %489 : vector<8x128xf32>
    %537 = arith.addf %533, %536 : vector<8x128xf32>
    %c27 = arith.constant 27 : index
    %538 = memref.load %arg2[%c27] : memref<128xf32, #tpu.memory_space<smem>>
    %539 = vector.broadcast %538 : f32 to vector<8x128xf32>
    %540 = arith.mulf %539, %481 : vector<8x128xf32>
    %541 = arith.addf %415, %540 : vector<8x128xf32>
    %c59 = arith.constant 59 : index
    %542 = memref.load %arg2[%c59] : memref<128xf32, #tpu.memory_space<smem>>
    %543 = vector.broadcast %542 : f32 to vector<8x128xf32>
    %544 = arith.mulf %543, %484 : vector<8x128xf32>
    %545 = arith.addf %541, %544 : vector<8x128xf32>
    %c91 = arith.constant 91 : index
    %546 = memref.load %arg2[%c91] : memref<128xf32, #tpu.memory_space<smem>>
    %547 = vector.broadcast %546 : f32 to vector<8x128xf32>
    %548 = arith.mulf %547, %486 : vector<8x128xf32>
    %549 = arith.addf %545, %548 : vector<8x128xf32>
    %c123 = arith.constant 123 : index
    %550 = memref.load %arg2[%c123] : memref<128xf32, #tpu.memory_space<smem>>
    %551 = vector.broadcast %550 : f32 to vector<8x128xf32>
    %552 = arith.mulf %551, %489 : vector<8x128xf32>
    %553 = arith.addf %549, %552 : vector<8x128xf32>
    %c28 = arith.constant 28 : index
    %554 = memref.load %arg2[%c28] : memref<128xf32, #tpu.memory_space<smem>>
    %555 = vector.broadcast %554 : f32 to vector<8x128xf32>
    %556 = arith.mulf %555, %481 : vector<8x128xf32>
    %557 = arith.addf %431, %556 : vector<8x128xf32>
    %c60 = arith.constant 60 : index
    %558 = memref.load %arg2[%c60] : memref<128xf32, #tpu.memory_space<smem>>
    %559 = vector.broadcast %558 : f32 to vector<8x128xf32>
    %560 = arith.mulf %559, %484 : vector<8x128xf32>
    %561 = arith.addf %557, %560 : vector<8x128xf32>
    %c92 = arith.constant 92 : index
    %562 = memref.load %arg2[%c92] : memref<128xf32, #tpu.memory_space<smem>>
    %563 = vector.broadcast %562 : f32 to vector<8x128xf32>
    %564 = arith.mulf %563, %486 : vector<8x128xf32>
    %565 = arith.addf %561, %564 : vector<8x128xf32>
    %c124 = arith.constant 124 : index
    %566 = memref.load %arg2[%c124] : memref<128xf32, #tpu.memory_space<smem>>
    %567 = vector.broadcast %566 : f32 to vector<8x128xf32>
    %568 = arith.mulf %567, %489 : vector<8x128xf32>
    %569 = arith.addf %565, %568 : vector<8x128xf32>
    %c29 = arith.constant 29 : index
    %570 = memref.load %arg2[%c29] : memref<128xf32, #tpu.memory_space<smem>>
    %571 = vector.broadcast %570 : f32 to vector<8x128xf32>
    %572 = arith.mulf %571, %481 : vector<8x128xf32>
    %573 = arith.addf %447, %572 : vector<8x128xf32>
    %c61 = arith.constant 61 : index
    %574 = memref.load %arg2[%c61] : memref<128xf32, #tpu.memory_space<smem>>
    %575 = vector.broadcast %574 : f32 to vector<8x128xf32>
    %576 = arith.mulf %575, %484 : vector<8x128xf32>
    %577 = arith.addf %573, %576 : vector<8x128xf32>
    %c93 = arith.constant 93 : index
    %578 = memref.load %arg2[%c93] : memref<128xf32, #tpu.memory_space<smem>>
    %579 = vector.broadcast %578 : f32 to vector<8x128xf32>
    %580 = arith.mulf %579, %486 : vector<8x128xf32>
    %581 = arith.addf %577, %580 : vector<8x128xf32>
    %c125 = arith.constant 125 : index
    %582 = memref.load %arg2[%c125] : memref<128xf32, #tpu.memory_space<smem>>
    %583 = vector.broadcast %582 : f32 to vector<8x128xf32>
    %584 = arith.mulf %583, %489 : vector<8x128xf32>
    %585 = arith.addf %581, %584 : vector<8x128xf32>
    %c30 = arith.constant 30 : index
    %586 = memref.load %arg2[%c30] : memref<128xf32, #tpu.memory_space<smem>>
    %587 = vector.broadcast %586 : f32 to vector<8x128xf32>
    %588 = arith.mulf %587, %481 : vector<8x128xf32>
    %589 = arith.addf %463, %588 : vector<8x128xf32>
    %c62 = arith.constant 62 : index
    %590 = memref.load %arg2[%c62] : memref<128xf32, #tpu.memory_space<smem>>
    %591 = vector.broadcast %590 : f32 to vector<8x128xf32>
    %592 = arith.mulf %591, %484 : vector<8x128xf32>
    %593 = arith.addf %589, %592 : vector<8x128xf32>
    %c94 = arith.constant 94 : index
    %594 = memref.load %arg2[%c94] : memref<128xf32, #tpu.memory_space<smem>>
    %595 = vector.broadcast %594 : f32 to vector<8x128xf32>
    %596 = arith.mulf %595, %486 : vector<8x128xf32>
    %597 = arith.addf %593, %596 : vector<8x128xf32>
    %c126 = arith.constant 126 : index
    %598 = memref.load %arg2[%c126] : memref<128xf32, #tpu.memory_space<smem>>
    %599 = vector.broadcast %598 : f32 to vector<8x128xf32>
    %600 = arith.mulf %599, %489 : vector<8x128xf32>
    %601 = arith.addf %597, %600 : vector<8x128xf32>
    %c31 = arith.constant 31 : index
    %602 = memref.load %arg2[%c31] : memref<128xf32, #tpu.memory_space<smem>>
    %603 = vector.broadcast %602 : f32 to vector<8x128xf32>
    %604 = arith.mulf %603, %481 : vector<8x128xf32>
    %605 = arith.addf %479, %604 : vector<8x128xf32>
    %c63 = arith.constant 63 : index
    %606 = memref.load %arg2[%c63] : memref<128xf32, #tpu.memory_space<smem>>
    %607 = vector.broadcast %606 : f32 to vector<8x128xf32>
    %608 = arith.mulf %607, %484 : vector<8x128xf32>
    %609 = arith.addf %605, %608 : vector<8x128xf32>
    %c95 = arith.constant 95 : index
    %610 = memref.load %arg2[%c95] : memref<128xf32, #tpu.memory_space<smem>>
    %611 = vector.broadcast %610 : f32 to vector<8x128xf32>
    %612 = arith.mulf %611, %486 : vector<8x128xf32>
    %613 = arith.addf %609, %612 : vector<8x128xf32>
    %c127 = arith.constant 127 : index
    %614 = memref.load %arg2[%c127] : memref<128xf32, #tpu.memory_space<smem>>
    %615 = vector.broadcast %614 : f32 to vector<8x128xf32>
    %616 = arith.mulf %615, %489 : vector<8x128xf32>
    %617 = arith.addf %613, %616 : vector<8x128xf32>
    %c0_74 = arith.constant 0 : index
    %c0_75 = arith.constant 0 : index
    %c0_76 = arith.constant 0 : index
    %c0_77 = arith.constant 0 : index
    %618 = vector.load %arg8[%c0_74, %c0_75, %c0_76, %c0_77] : memref<1x8x8x128xf32, #tpu.memory_space<vmem>>, vector<1x1x8x128xf32>
    %619 = vector.shape_cast %618 : vector<1x1x8x128xf32> to vector<8x128xf32>
    %620 = vector.shape_cast %505 : vector<8x128xf32> to vector<1x1x8x128xf32>
    tpu.vector_store %arg8[%c0_74, %c0_75, %c0_76, %c0_77], %620 {strides = array<i32>} : memref<1x8x8x128xf32, #tpu.memory_space<vmem>>, vector<1x1x8x128xf32>,
    %c0_78 = arith.constant 0 : index
    %c1_79 = arith.constant 1 : index
    %c0_80 = arith.constant 0 : index
    %c0_81 = arith.constant 0 : index
    %621 = vector.load %arg8[%c0_78, %c1_79, %c0_80, %c0_81] : memref<1x8x8x128xf32, #tpu.memory_space<vmem>>, vector<1x1x8x128xf32>
    %622 = vector.shape_cast %621 : vector<1x1x8x128xf32> to vector<8x128xf32>
    %623 = vector.shape_cast %521 : vector<8x128xf32> to vector<1x1x8x128xf32>
    tpu.vector_store %arg8[%c0_78, %c1_79, %c0_80, %c0_81], %623 {strides = array<i32>} : memref<1x8x8x128xf32, #tpu.memory_space<vmem>>, vector<1x1x8x128xf32>,
    %c0_82 = arith.constant 0 : index
    %c2_83 = arith.constant 2 : index
    %c0_84 = arith.constant 0 : index
    %c0_85 = arith.constant 0 : index
    %624 = vector.load %arg8[%c0_82, %c2_83, %c0_84, %c0_85] : memref<1x8x8x128xf32, #tpu.memory_space<vmem>>, vector<1x1x8x128xf32>
    %625 = vector.shape_cast %624 : vector<1x1x8x128xf32> to vector<8x128xf32>
    %626 = vector.shape_cast %537 : vector<8x128xf32> to vector<1x1x8x128xf32>
    tpu.vector_store %arg8[%c0_82, %c2_83, %c0_84, %c0_85], %626 {strides = array<i32>} : memref<1x8x8x128xf32, #tpu.memory_space<vmem>>, vector<1x1x8x128xf32>,
    %c0_86 = arith.constant 0 : index
    %c3_87 = arith.constant 3 : index
    %c0_88 = arith.constant 0 : index
    %c0_89 = arith.constant 0 : index
    %627 = vector.load %arg8[%c0_86, %c3_87, %c0_88, %c0_89] : memref<1x8x8x128xf32, #tpu.memory_space<vmem>>, vector<1x1x8x128xf32>
    %628 = vector.shape_cast %627 : vector<1x1x8x128xf32> to vector<8x128xf32>
    %629 = vector.shape_cast %553 : vector<8x128xf32> to vector<1x1x8x128xf32>
    tpu.vector_store %arg8[%c0_86, %c3_87, %c0_88, %c0_89], %629 {strides = array<i32>} : memref<1x8x8x128xf32, #tpu.memory_space<vmem>>, vector<1x1x8x128xf32>,
    %c0_90 = arith.constant 0 : index
    %c4_91 = arith.constant 4 : index
    %c0_92 = arith.constant 0 : index
    %c0_93 = arith.constant 0 : index
    %630 = vector.load %arg8[%c0_90, %c4_91, %c0_92, %c0_93] : memref<1x8x8x128xf32, #tpu.memory_space<vmem>>, vector<1x1x8x128xf32>
    %631 = vector.shape_cast %630 : vector<1x1x8x128xf32> to vector<8x128xf32>
    %632 = vector.shape_cast %569 : vector<8x128xf32> to vector<1x1x8x128xf32>
    tpu.vector_store %arg8[%c0_90, %c4_91, %c0_92, %c0_93], %632 {strides = array<i32>} : memref<1x8x8x128xf32, #tpu.memory_space<vmem>>, vector<1x1x8x128xf32>,
    %c0_94 = arith.constant 0 : index
    %c5_95 = arith.constant 5 : index
    %c0_96 = arith.constant 0 : index
    %c0_97 = arith.constant 0 : index
    %633 = vector.load %arg8[%c0_94, %c5_95, %c0_96, %c0_97] : memref<1x8x8x128xf32, #tpu.memory_space<vmem>>, vector<1x1x8x128xf32>
    %634 = vector.shape_cast %633 : vector<1x1x8x128xf32> to vector<8x128xf32>
    %635 = vector.shape_cast %585 : vector<8x128xf32> to vector<1x1x8x128xf32>
    tpu.vector_store %arg8[%c0_94, %c5_95, %c0_96, %c0_97], %635 {strides = array<i32>} : memref<1x8x8x128xf32, #tpu.memory_space<vmem>>, vector<1x1x8x128xf32>,
    %c0_98 = arith.constant 0 : index
    %c6_99 = arith.constant 6 : index
    %c0_100 = arith.constant 0 : index
    %c0_101 = arith.constant 0 : index
    %636 = vector.load %arg8[%c0_98, %c6_99, %c0_100, %c0_101] : memref<1x8x8x128xf32, #tpu.memory_space<vmem>>, vector<1x1x8x128xf32>
    %637 = vector.shape_cast %636 : vector<1x1x8x128xf32> to vector<8x128xf32>
    %638 = vector.shape_cast %601 : vector<8x128xf32> to vector<1x1x8x128xf32>
    tpu.vector_store %arg8[%c0_98, %c6_99, %c0_100, %c0_101], %638 {strides = array<i32>} : memref<1x8x8x128xf32, #tpu.memory_space<vmem>>, vector<1x1x8x128xf32>,
    %c0_102 = arith.constant 0 : index
    %c7_103 = arith.constant 7 : index
    %c0_104 = arith.constant 0 : index
    %c0_105 = arith.constant 0 : index
    %639 = vector.load %arg8[%c0_102, %c7_103, %c0_104, %c0_105] : memref<1x8x8x128xf32, #tpu.memory_space<vmem>>, vector<1x1x8x128xf32>
    %640 = vector.shape_cast %639 : vector<1x1x8x128xf32> to vector<8x128xf32>
    %641 = vector.shape_cast %617 : vector<8x128xf32> to vector<1x1x8x128xf32>
    tpu.vector_store %arg8[%c0_102, %c7_103, %c0_104, %c0_105], %641 {strides = array<i32>} : memref<1x8x8x128xf32, #tpu.memory_space<vmem>>, vector<1x1x8x128xf32>,
    return
  }
  func.func @transform_0(%arg0: i32, %arg1: i32) -> i32 {
    %c0_i32 = arith.constant 0 : i32
    %c0_i32_0 = arith.constant 0 : i32
    return %c0_i32 : i32
  }
  func.func @transform_1(%arg0: i32, %arg1: i32) -> (i32, i32, i32, i32) {
    %c0_i32 = arith.constant 0 : i32
    %c0_i32_0 = arith.constant 0 : i32
    %c0_i32_1 = arith.constant 0 : i32
    return %arg0, %c0_i32, %arg1, %c0_i32_0 : i32, i32, i32, i32
  }
  func.func @transform_2(%arg0: i32, %arg1: i32) -> (i32, i32, i32, i32) {
    %c0_i32 = arith.constant 0 : i32
    %c0_i32_0 = arith.constant 0 : i32
    %c0_i32_1 = arith.constant 0 : i32
    return %arg0, %c0_i32, %arg1, %c0_i32_0 : i32, i32, i32, i32
  }
  func.func @transform_3(%arg0: i32, %arg1: i32) -> (i32, i32) {
    %c0_i32 = arith.constant 0 : i32
    %c0_i32_0 = arith.constant 0 : i32
    %c0_i32_1 = arith.constant 0 : i32
    return %c0_i32, %c0_i32_0 : i32, i32
  }
  func.func @transform_4(%arg0: i32, %arg1: i32) -> (i32, i32) {
    %c0_i32 = arith.constant 0 : i32
    %c0_i32_0 = arith.constant 0 : i32
    %c0_i32_1 = arith.constant 0 : i32
    return %c0_i32, %c0_i32_0 : i32, i32
  }
  func.func @transform_5(%arg0: i32, %arg1: i32) -> (i32, i32) {
    %c0_i32 = arith.constant 0 : i32
    %c0_i32_0 = arith.constant 0 : i32
    %c0_i32_1 = arith.constant 0 : i32
    return %c0_i32, %c0_i32_0 : i32, i32
  }
  func.func @transform_6(%arg0: i32, %arg1: i32) -> (i32, i32, i32, i32) {
    %c0_i32 = arith.constant 0 : i32
    %c0_i32_0 = arith.constant 0 : i32
    %c0_i32_1 = arith.constant 0 : i32
    return %arg0, %c0_i32, %arg1, %c0_i32_0 : i32, i32, i32, i32
  }
}

</mosaic_0001>

<bundles_post_ra>
// kernel: upconv_forward.2
= control target key start
LH: loop header
LB: loop body
LE: loop exit
PB: predicated region body
PF: predicated region fallthrough
CT: control target
= control target key end

     0   :  { %s2313_s0 = inlined_call_operand.vmem [shape: f32[128], index: 0, kind: input, shape index: {}]   ;;  %s2314_s1 = inlined_call_operand.vmem [shape: f32[2,4,8,128], index: 1, kind: input, shape index: {}]   ;;  %s2315_s2 = inlined_call_operand.vmem [shape: f32[2,4,8,128], index: 2, kind: input, shape index: {}]   ;;  %s2316_s3 = inlined_call_operand.vmem [shape: f32[1,128], index: 3, kind: input, shape index: {}]   ;;  %s2317_s4 = inlined_call_operand.vmem [shape: f32[8,128], index: 4, kind: input, shape index: {}]   ;;  %s2318_s5 = inlined_call_operand.vmem [shape: f32[8,128], index: 5, kind: input, shape index: {}]   ;;  %s2319_s6 = inlined_call_operand.vmem [shape: f32[2,1,16,128], index: 6, kind: output, shape index: {}]  }
   0x1   :  { %2353 = sst [smem:[#allocation65_spill]] %s2313_s0 }
   0x2   :  { %2354 = sst [smem:[#allocation66_spill]] %s2314_s1 }
   0x3   :  { %2355 = sst [smem:[#allocation67_spill]] %s2315_s2 }
   0x4   :  { %2356 = sst [smem:[#allocation68_spill]] %s2316_s3 }
   0x5   :  { %2357 = sst [smem:[#allocation69_spill]] %s2317_s4 }
   0x6   :  { %2358 = sst [smem:[#allocation70_spill]] %s2318_s5 }
   0x7   :  { %2359 = sst [smem:[#allocation71_spill]] %s2319_s6 }
   0x8   :  { %11 = vsyncpa [#allocation3], 0  ;;  %s1468_s21 = smov 0   ;;  %s1470_s22 = smov 0  }
   0x9   :  { %s1472_s23 = smov 0  }
   0xa LB: > { %2360 = sst [smem:[#allocation5_spill]] %s1424_s22  ;;  %s1181_s24 = sadd.s32 4294967295, %s1428_s23   ;;  %s1428_s23 = sphi %s1472_s23, %s17_s23   ;;  %s1424_s22 = sphi %s1470_s22, %s2541_s22   ;;  %s1420_s21 = sphi %s1468_s21, %s2540_s21  }
   0xb   : > { %2361 = sst [smem:[#allocation6_spill]] %s1428_s23  ;;  %s29_s25 = sadd.s32 1, %s1424_s22 }
   0xc   : > { %p31_p0 = scmp.ge.s32.totalorder %s29_s25, 2  ;;  %p1183_p1 = scmp.ge.s32.totalorder %s1428_s23, 1 }
   0xd   : > { %p202_p2 = scmp.lt.s32.totalorder %s1428_s23, 3  ;;  %p1340_p4 = scmp.eq.s32.totalorder %s1181_s24, 0 }
   0xe   : > { %s2543_s25 = smov (%p31_p0, %s29_s25), 0  ;;  %s2363_s0 = sld [smem:[#allocation65_spill]] }
   0xf   : > { %2362 = sst [smem:[#allocation7_spill]] %s2543_s25  ;;  %p203_p3 = pnand %p1183_p1, %p202_p2 }
  0x10   : > { %s1430_s29 = smov [#allocation2]  }
  0x11   : > { %p1336_p5 = pneg %p203_p3  ;;  %258 = sbr.rel (%p203_p3) target bundleno = 307 (0x133), region = 44 }
  0x13   : > { %p1337_p6 = pnand %p1340_p4, %p1336_p5 }
  0x14   : > { %s214_s28 = sshll.u32 %s2363_s0, 4  ;;  %s215_s28 = int_to_ptr.vmem [resolvable:$true] %s214_s28 }
  0x15   : > { %1339 = dma.vmem_to_smem (!%p1337_p6), %s215_s28, 16, %s1430_s29, [#allocation3]  }
  0x16   : > { %1415 = dma.done.wait (%p1340_p4), [#allocation3], 16  }
  0x17   : > { %1417 = vsyncadd (%p1340_p4), [#allocation3], 4294967280 }
  0x18   : > { %265 = sfence }
  0x19   : > { %p305_p7 = scmp.lt.s32.totalorder %s1420_s21, 1  ;;  %s2365_s1 = sld [smem:[#allocation66_spill]]  ;;  %v330_v8 = vlaneseq  ;;  %v1432_v12 = vmov 0.0  }
  0x1a   : > { %s1431_s10 = smov 127   ;;  %s2366_s2 = sld [smem:[#allocation67_spill]] }
  0x1b   : > { %s2545_s21 = smov (!%p305_p7, %s1420_s21), 1  ;;  %s1526_s14 = sld [smem:[#allocation2]]  ;;  %v331_v9 = vshrl.u32 %v330_v8, 7 }
  0x1c   : > { %2364 = sst [smem:[#allocation8_spill]] %s2545_s21  ;;  %s1329_s30 = sshll.u32 %s2545_s21, 5 }
  0x1d   : > { %s1528_s15 = sld [smem:[#allocation2 + $0x20]]  ;;  %vm333_vm0 = vcmp.eq.s32.totalorder %v331_v9, 7 }
  0x1e   : > { %s1530_s16 = sld [smem:[#allocation2 + $0x1]]  ;;  %v338_v13 = vsel %vm333_vm0, 1.0, %v1432_v12 }
  0x1f   : > { %s312_s9 = scalar_lea.vmem %s2365_s1, %s1329_s30  ;;  %s1532_s17 = sld [smem:[#allocation2 + $0x21]] }
  0x20   : > { %v1496_v0 = vld [vmem:[%s312_s9] sm:$0xff]  ;;  %v1498_v1 = vld [vmem:[%s312_s9 + $0x8] sm:$0xff]  ;;  %s1505_s13 = scalar_lea.vmem %s2366_s2, %s1329_s30  ;;  %v1507_v2 = vld [vmem:[%s312_s9 + $0x10] sm:$0xff]  ;;  %s1534_s18 = sld [smem:[#allocation2 + $0x2]] }
  0x21   : > { %389 = vrot.lane.b32.xlu0 %v1496_v0, %s1431_s10  ;;  %529 = vrot.lane.b32.xlu1 %v1498_v1, %s1431_s10  ;;  %2367 = sst [smem:[#allocation9_spill]] %s1505_s13  ;;  %v1511_v3 = vld [vmem:[%s1505_s13] sm:$0xff]  ;;  %v1514_v4 = vld [vmem:[%s1505_s13 + $0x8] sm:$0xff] }
  0x22   : > { %667 = vrot.lane.b32.xlu2 %v1507_v2, %s1431_s10  ;;  %v1517_v5 = vld [vmem:[%s1505_s13 + $0x10] sm:$0xff]  ;;  %v1522_v6 = vld [vmem:[%s312_s9 + $0x18] sm:$0xff]  ;;  %s1536_s19 = sld [smem:[#allocation2 + $0x22]]  ;;  %v400_v39 = vstv %s1526_s14 }
  0x23   : > { %2368 = vst [vmem:[#allocation10_spill] sm:$0xff] %v1522_v6  ;;  %v1294_v7 = vld [vmem:[%s1505_s13 + $0x18] sm:$0xff]  ;;  %2369 = sst [smem:[#allocation11_spill]] %s1528_s15  ;;  %v401_v56 = vmul.f32 %v400_v39, %v1496_v0 }
  0x24   : > { %s1538_s20 = sld [smem:[#allocation2 + $0x3]]  ;;  %v416_v43 = vstv %s1530_s16 }
  0x25   : > { %2370 = sst [smem:[#allocation12_spill]] %s1532_s17  ;;  %v417_v57 = vmul.f32 %v416_v43, %v1496_v0 }
  0x26   : > { %s1540_s24 = sld [smem:[#allocation2 + $0x23]]  ;;  %v432_v46 = vstv %s1534_s18 }
  0x27   : > { %s1542_s26 = sld [smem:[#allocation2 + $0x4]]  ;;  %v433_v58 = vmul.f32 %v432_v46, %v1496_v0 }
  0x28   : > { %2371 = sst [smem:[#allocation13_spill]] %s1536_s19 }
  0x29   : > { %396 = vrot.lane.b32.xlu0 %v1511_v3, %s1431_s10  ;;  %534 = vrot.lane.b32.xlu1 %v1514_v4, %s1431_s10  ;;  %s1544_s27 = sld [smem:[#allocation2 + $0x24]] }
  0x2a   : > { %672 = vrot.lane.b32.xlu2 %v1517_v5, %s1431_s10  ;;  %s1546_s28 = sld [smem:[#allocation2 + $0x5]]  ;;  %v448_v47 = vstv %s1538_s20 }
  0x2b   : > { %s1548_s29 = sld [smem:[#allocation2 + $0x25]]  ;;  %v449_v59 = vmul.f32 %v448_v47, %v1496_v0 }
  0x2c   : > { %2372 = sst [smem:[#allocation14_spill]] %s1540_s24 }
  0x2d   : > { %s1550_s30 = sld [smem:[#allocation2 + $0x6]]  ;;  %v464_v48 = vstv %s1542_s26 }
  0x2e   : > { %s1552_s7 = sld [smem:[#allocation2 + $0x26]]  ;;  %v465_v60 = vmul.f32 %v464_v48, %v1496_v0 }
  0x2f   : > { %2373 = sst [smem:[#allocation15_spill]] %s1544_s27 }
  0x30   : > { %s1554_s8 = sld [smem:[#allocation2 + $0x7]]  ;;  %v480_v49 = vstv %s1546_s28 }
  0x31   : > { %805 = vrot.lane.b32.xlu0 %v1522_v6, %s1431_s10  ;;  %810 = vrot.lane.b32.xlu1 %v1294_v7, %s1431_s10  ;;  %2374 = sst [smem:[#allocation16_spill]] %s1548_s29  ;;  %v481_v61 = vmul.f32 %v480_v49, %v1496_v0 }
  0x32   : > { %s1556_s9 = sld [smem:[#allocation2 + $0x27]] }
  0x33   : > { %s1558_s10 = sld [smem:[#allocation2 + $0x28]]  ;;  %v496_v50 = vstv %s1550_s30 }
  0x34   : > { %2375 = sst [smem:[#allocation17_spill]] %s1552_s7  ;;  %v497_v62 = vmul.f32 %v496_v50, %v1496_v0 }
  0x35   : > { %s1560_s11 = sld [smem:[#allocation2 + $0x29]] }
  0x36   : > { %s1562_s12 = sld [smem:[#allocation2 + $0x2a]]  ;;  %v512_v51 = vstv %s1554_s8 }
  0x37   : > { %s1564_s0 = sld [smem:[#allocation2 + $0x2b]]  ;;  %v513_v63 = vmul.f32 %v512_v51, %v1496_v0 }
  0x38   : > { %2376 = sst [smem:[#allocation18_spill]] %s1556_s9 }
  0x39   : > { %2377 = sst [smem:[#allocation19_spill]] %s1558_s10 }
  0x3a   : > { %s1566_s1 = sld [smem:[#allocation2 + $0x2c]] }
  0x3b   : > { %2378 = sst [smem:[#allocation20_spill]] %s1560_s11 }
  0x3c   : > { %2379 = sst [smem:[#allocation21_spill]] %s1562_s12 }
  0x3d   : > { %2380 = sst [smem:[#allocation22_spill]] %s1564_s0 }
  0x3e   : > { %s1568_s2 = sld [smem:[#allocation2 + $0x2d]] }
  0x3f   : > { %s1570_s25 = sld [smem:[#allocation2 + $0x2e]] }
  0x40   : > { %2381 = sst [smem:[#allocation23_spill]] %s1566_s1 }
  0x41   : > { %s1572_s22 = sld [smem:[#allocation2 + $0x2f]] }
  0x42   : > { %s1574_s23 = sld [smem:[#allocation2 + $0x40]] }
  0x43   : > { %s1576_s6 = sld [smem:[#allocation2 + $0x60]] }
  0x44   : > { %2382 = sst [smem:[#allocation24_spill]] %s1568_s2 }
  0x45   : > { %2383 = sst [smem:[#allocation25_spill]] %s1570_s25 }
  0x46   : > { %s1578_s21 = sld [smem:[#allocation2 + $0x41]] }
  0x47   : > { %2384 = sst [smem:[#allocation26_spill]] %s1572_s22 }
  0x48   : > { %s1580_s13 = sld [smem:[#allocation2 + $0x61]] }
  0x49   : > { %2385 = sst [smem:[#allocation27_spill]] %s1576_s6 }
  0x4a   : > { %s1582_s3 = sld [smem:[#allocation2 + $0x42]] }
  0x4b   : > { %s1584_s12 = sld [smem:[#allocation2 + $0x62]] }
  0x4c   : > { %2386 = sst [smem:[#allocation28_spill]] %s1578_s21 }
  0x4d   : > { %s1586_s0 = sld [smem:[#allocation2 + $0x43]] }
  0x4e   : > { %2387 = sst [smem:[#allocation29_spill]] %s1580_s13 }
  0x4f   : > { %s1588_s1 = sld [smem:[#allocation2 + $0x63]] }
  0x50   : > { %2388 = sst [smem:[#allocation30_spill]] %s1582_s3 }
  0x51   : > { %2389 = sst [smem:[#allocation31_spill]] %s1584_s12 }
  0x52   : > { %s1590_s2 = sld [smem:[#allocation2 + $0x44]] }
  0x53   : > { %2390 = sst [smem:[#allocation32_spill]] %s1586_s0 }
  0x54   : > { %s1592_s25 = sld [smem:[#allocation2 + $0x64]] }
  0x55   : > { %2391 = sst [smem:[#allocation33_spill]] %s1588_s1 }
  0x56   : > { %s1594_s22 = sld [smem:[#allocation2 + $0x45]] }
  0x57   : > { %s1596_s11 = sld [smem:[#allocation2 + $0x65]] }
  0x58   : > { %2392 = sst [smem:[#allocation34_spill]] %s1590_s2 }
  0x59   : > { %s1598_s6 = sld [smem:[#allocation2 + $0x46]] }
  0x5a   : > { %2393 = sst [smem:[#allocation35_spill]] %s1592_s25 }
  0x5b   : > { %s1600_s13 = sld [smem:[#allocation2 + $0x66]] }
  0x5c   : > { %2394 = sst [smem:[#allocation36_spill]] %s1594_s22 }
  0x5d   : > { %2395 = sst [smem:[#allocation37_spill]] %s1596_s11 }
  0x5e   : > { %s1602_s10 = sld [smem:[#allocation2 + $0x47]] }
  0x5f   : > { %2396 = sst [smem:[#allocation38_spill]] %s1598_s6 }
  0x60   : > { %s1604_s12 = sld [smem:[#allocation2 + $0x67]] }
  0x61   : > { %2397 = sst [smem:[#allocation39_spill]] %s1600_s13 }
  0x62   : > { %s1606_s0 = sld [smem:[#allocation2 + $0x8]] }
  0x63   : > { %s1608_s1 = sld [smem:[#allocation2 + $0x9]] }
  0x64   : > { %2398 = sst [smem:[#allocation40_spill]] %s1602_s10 }
  0x65   : > { %s1610_s2 = sld [smem:[#allocation2 + $0xa]] }
  0x66   : > { %2399 = sst [smem:[#allocation41_spill]] %s1604_s12 }
  0x67   : > { %s1612_s25 = sld [smem:[#allocation2 + $0xb]] }
  0x68   : > { %2400 = sst [smem:[#allocation42_spill]] %s1606_s0 }
  0x69   : > { %2401 = sst [smem:[#allocation43_spill]] %s1608_s1 }
  0x6a   : > { %s1614_s22 = sld [smem:[#allocation2 + $0xc]] }
  0x6b   : > { %2402 = sst [smem:[#allocation44_spill]] %s1610_s2 }
  0x6c   : > { %s1616_s11 = sld [smem:[#allocation2 + $0xd]] }
  0x6d   : > { %2403 = sst [smem:[#allocation45_spill]] %s1612_s25 }
  0x6e   : > { %s1618_s6 = sld [smem:[#allocation2 + $0xe]] }
  0x6f   : > { %s2407_s5 = sld [smem:[#allocation70_spill]] }
  0x70   : > { %2404 = sst [smem:[#allocation46_spill]] %s1614_s22 }
  0x71   : > { %s1626_s1 = sld [smem:[#allocation2 + $0xf]] }
  0x72   : > { %2405 = sst [smem:[#allocation47_spill]] %s1616_s11 }
  0x73   : > { %s1631_s22 = sld [smem:[#allocation2 + $0x30]] }
  0x74   : > { %2406 = sst [smem:[#allocation48_spill]] %s1618_s6 }
  0x75   : > { %v1369_v10 = vld [vmem:[%s2407_s5] ss:$0 sm:$0xff]  ;;  %v1371_v11 = vld [vmem:[%s2407_s5 + $0x1] ss:$0 sm:$0xff]  ;;  %v1373_v14 = vld [vmem:[%s2407_s5 + $0x2] ss:$0 sm:$0xff] }
  0x76   : > { %v1375_v15 = vld [vmem:[%s2407_s5 + $0x3] ss:$0 sm:$0xff]  ;;  %v1377_v16 = vld [vmem:[%s2407_s5 + $0x4] ss:$0 sm:$0xff]  ;;  %s1639_s0 = sld [smem:[#allocation2 + $0x31]]  ;;  %v343_v19 = vmul.f32 %v1369_v10, %v338_v13  ;;  %v349_v22 = vmul.f32 %v1371_v11, %v338_v13  ;;  %v355_v23 = vmul.f32 %v1373_v14, %v338_v13 }
  0x77   : > { %2408 = sst [smem:[#allocation49_spill]] %s1626_s1  ;;  %v1379_v17 = vld [vmem:[%s2407_s5 + $0x5] ss:$0 sm:$0xff]  ;;  %v1381_v18 = vld [vmem:[%s2407_s5 + $0x6] ss:$0 sm:$0xff]  ;;  %v361_v26 = vmul.f32 %v1375_v15, %v338_v13  ;;  %v367_v28 = vmul.f32 %v1377_v16, %v338_v13 }
  0x78   : > { %s1647_s2 = sld [smem:[#allocation2 + $0x32]]  ;;  %v1383_v25 = vld [vmem:[%s2407_s5 + $0x7] ss:$0 sm:$0xff]  ;;  %v373_v30 = vmul.f32 %v1379_v17, %v338_v13  ;;  %v379_v32 = vmul.f32 %v1381_v18, %v338_v13  ;;  %v408_v18 = vstv %s1574_s23 }
  0x79   : > { %s2410_s4 = sld [smem:[#allocation69_spill]]  ;;  %v385_v37 = vmul.f32 %v1383_v25, %v338_v13 }
  0x7a   : > { %s1655_s10 = sld [smem:[#allocation2 + $0x33]] }
  0x7b   : > { %s1679_s25 = sld [smem:[#allocation2 + $0x36]] }
  0x7c   : > { %s1681_s6 = sld [smem:[#allocation2 + $0x37]] }
  0x7d   : > { %s1687_s1 = sld [smem:[#allocation2 + $0x48]] }
  0x7e   : > { %2409 = sst [smem:[#allocation50_spill]] %s1647_s2 }
  0x7f   : > { %v1370_v20 = vld [vmem:[%s2410_s4] ss:$0 sm:$0xff]  ;;  %v1372_v21 = vld [vmem:[%s2410_s4 + $0x1] ss:$0 sm:$0xff]  ;;  %v1374_v24 = vld [vmem:[%s2410_s4 + $0x2] ss:$0 sm:$0xff] }
  0x80   : > { %2411 = sst [smem:[#allocation51_spill]] %s1655_s10  ;;  %v1376_v27 = vld [vmem:[%s2410_s4 + $0x3] ss:$0 sm:$0xff]  ;;  %v1378_v29 = vld [vmem:[%s2410_s4 + $0x4] ss:$0 sm:$0xff]  ;;  %v345_v34 = vadd.f32 %v1370_v20, %v343_v19  ;;  %v351_v35 = vadd.f32 %v1372_v21, %v349_v22  ;;  %v357_v36 = vadd.f32 %v1374_v24, %v355_v23 }
  0x81   : > { %s1663_s2 = sld [smem:[#allocation2 + $0x34]]  ;;  %v1380_v31 = vld [vmem:[%s2410_s4 + $0x5] ss:$0 sm:$0xff]  ;;  %v1382_v33 = vld [vmem:[%s2410_s4 + $0x6] ss:$0 sm:$0xff]  ;;  %v363_v40 = vadd.f32 %v1376_v27, %v361_v26  ;;  %v369_v41 = vadd.f32 %v1378_v29, %v367_v28 }
  0x82   : > { %s1671_s10 = sld [smem:[#allocation2 + $0x35]]  ;;  %v1384_v38 = vld [vmem:[%s2410_s4 + $0x7] ss:$0 sm:$0xff]  ;;  %v375_v44 = vadd.f32 %v1380_v31, %v373_v30  ;;  %v381_v45 = vadd.f32 %v1382_v33, %v379_v32  ;;  %v1726_v11 = vadd.f32 %v401_v56, %v345_v34  ;;  %v1728_v12 = vadd.f32 %v417_v57, %v351_v35 }
  0x83   : > { %s1691_s12 = sld [smem:[#allocation2 + $0x68]]  ;;  %v387_v52 = vadd.f32 %v1384_v38, %v385_v37  ;;  %v1730_v0 = vadd.f32 %v433_v58, %v357_v36  ;;  %v1732_v13 = vadd.f32 %v449_v59, %v363_v40  ;;  %v1736_v14 = vadd.f32 %v465_v60, %v369_v41 }
  0x84   : > { %s1695_s3 = sld [smem:[#allocation2 + $0x49]]  ;;  %v1738_v15 = vadd.f32 %v481_v61, %v375_v44  ;;  %v1740_v16 = vadd.f32 %v497_v62, %v381_v45  ;;  %v1765_v30 = vmul.f32 %v408_v18, %v1511_v3 }
  0x85   : > { %s1701_s14 = sld [smem:[#allocation2 + $0x69]]  ;;  %v1742_v17 = vadd.f32 %v513_v63, %v387_v52 }
  0x86   : > { %s1706_s16 = sld [smem:[#allocation2 + $0x4a]] }
  0x87   : > { %s1712_s18 = sld [smem:[#allocation2 + $0x6a]] }
  0x88   : > { %s1718_s20 = sld [smem:[#allocation2 + $0x4b]] }
  0x89   : > { %s2415_s26 = sld [smem:[#allocation28_spill]] }
  0x8a   : > { %s2416_s28 = sld [smem:[#allocation30_spill]]  ;;  %v562_v48 = vstv %s1695_s3 }
  0x8b   : > { %s2417_s30 = sld [smem:[#allocation32_spill]]  ;;  %v1877_v40 = vmul.f32 %v1514_v4, %v562_v48 }
  0x8c   : > { %2412 = sst [smem:[#allocation52_spill]] %s1706_s16 }
  0x8d   : > { %2413 = sst [smem:[#allocation53_spill]] %s1712_s18 }
  0x8e   : > { %2414 = sst [smem:[#allocation54_spill]] %s1718_s20 }
  0x8f   : > { %s1724_s8 = sld [smem:[#allocation2 + $0x6b]]  ;;  %v424_v19 = vstv %s2415_s26 }
  0x90   : > { %s1734_s5 = sld [smem:[#allocation2 + $0x4c]]  ;;  %v440_v20 = vstv %s2416_s28  ;;  %v1769_v32 = vmul.f32 %v424_v19, %v1511_v3 }
  0x91   : > { %s1744_s24 = sld [smem:[#allocation2 + $0x6c]]  ;;  %v456_v21 = vstv %s2417_s30  ;;  %v1775_v34 = vmul.f32 %v440_v20, %v1511_v3 }
  0x92   : > { %s1750_s15 = sld [smem:[#allocation2 + $0x4d]]  ;;  %v1783_v38 = vmul.f32 %v456_v21, %v1511_v3 }
  0x93   : > { %s2432_s20 = sld [smem:[#allocation36_spill]]  ;;  %v530_v10 = vpop.permute.xlu1 %529 }
  0x94   : > { %s1756_s18 = sld [smem:[#allocation2 + $0x6d]] }
  0x95   : > { %2418 = sst [smem:[#allocation28_spill]] %s1724_s8 }
  0x96   : > { %2423 = sst [smem:[#allocation30_spill]] %s1734_s5 }
  0x97   : > { %s2431_s8 = sld [smem:[#allocation34_spill]] }
  0x98   : > { %s2433_s16 = sld [smem:[#allocation33_spill]] }
  0x99   : > { %s2435_s26 = sld [smem:[#allocation38_spill]]  ;;  %v488_v37 = vstv %s2432_s20 }
  0x9a   : > { %s1762_s28 = sld [smem:[#allocation2 + $0x4e]]  ;;  %v1799_v47 = vmul.f32 %v488_v37, %v1511_v3 }
  0x9b   : > { %s2436_s30 = sld [smem:[#allocation37_spill]] }
  0x9c   : > { %s2437_s13 = sld [smem:[#allocation40_spill]] }
  0x9d   : > { %s2438_s4 = sld [smem:[#allocation42_spill]]  ;;  %v472_v36 = vstv %s2431_s8 }
  0x9e   : > { %s1772_s29 = sld [smem:[#allocation2 + $0x6e]]  ;;  %v1791_v43 = vmul.f32 %v472_v36, %v1511_v3 }
  0x9f   : > { %s2440_s7 = sld [smem:[#allocation39_spill]]  ;;  %v504_v41 = vstv %s2435_s26 }
  0xa0   : > { %s2441_s27 = sld [smem:[#allocation43_spill]]  ;;  %v1807_v51 = vmul.f32 %v504_v41, %v1511_v3  ;;  %v680_v41 = vstv %s1631_s22  ;;  %v642_v29 = vstv %s1762_s28 }
  0xa1   : > { %s2442_s9 = sld [smem:[#allocation44_spill]] }
  0xa2   : > { %s1780_s11 = sld [smem:[#allocation2 + $0x4f]]  ;;  %v520_v45 = vstv %s2437_s13 }
  0xa3   : > { %s2443_s19 = sld [smem:[#allocation41_spill]]  ;;  %v538_v46 = vstv %s2438_s4  ;;  %v1815_v58 = vmul.f32 %v520_v45, %v1511_v3  ;;  %v696_v45 = vstv %s1639_s0 }
  0xa4   : > { %2439 = sst [smem:[#allocation32_spill]] %s1772_s29  ;;  %v1818_v59 = vmul.f32 %v1498_v1, %v538_v46 }
  0xa5   : > { %s2444_s21 = sld [smem:[#allocation45_spill]] }
  0xa6   : > { %s2445_s17 = sld [smem:[#allocation46_spill]]  ;;  %v554_v49 = vstv %s2441_s27 }
  0xa7   : > { %s1788_s29 = sld [smem:[#allocation2 + $0x6f]]  ;;  %v570_v50 = vstv %s2442_s9  ;;  %v1825_v62 = vmul.f32 %v1498_v1, %v554_v49 }
  0xa8   : > { %s2446_s8 = sld [smem:[#allocation47_spill]]  ;;  %v1828_v63 = vmul.f32 %v1498_v1, %v570_v50  ;;  %v668_v50 = vpop.permute.xlu2 %667  ;;  %v658_v28 = vstv %s1780_s11 }
  0xa9   : > { %s2447_s20 = sld [smem:[#allocation48_spill]] }
  0xaa   : > { %s1796_s5 = sld [smem:[#allocation2 + $0x10]] }
  0xab   : > { %s2448_s23 = sld [smem:[#allocation49_spill]]  ;;  %v586_v56 = vstv %s2444_s21 }
  0xac   : > { %s1804_s26 = sld [smem:[#allocation2 + $0x11]]  ;;  %v602_v57 = vstv %s2445_s17  ;;  %v1831_v3 = vmul.f32 %v1498_v1, %v586_v56  ;;  %v744_v56 = vstv %s1663_s2 }
  0xad   : > { %s1812_s13 = sld [smem:[#allocation2 + $0x12]]  ;;  %v1842_v20 = vmul.f32 %v1498_v1, %v602_v57  ;;  %v760_v57 = vstv %s1671_s10 }
  0xae   : > { %v618_v60 = vstv %s2446_s8  ;;  %s2449_s4 = sld [smem:[#allocation50_spill]] }
  0xaf   : > { %v634_v61 = vstv %s2447_s20  ;;  %s2450_s27 = sld [smem:[#allocation51_spill]]  ;;  %v1845_v21 = vmul.f32 %v1498_v1, %v618_v60  ;;  %v776_v60 = vstv %s1679_s25 }
  0xb0   : > { %s1822_s9 = sld [smem:[#allocation2 + $0x13]]  ;;  %v1848_v36 = vmul.f32 %v1498_v1, %v634_v61  ;;  %v792_v61 = vstv %s1681_s6  ;;  %v676_v26 = vstv %s1796_s5 }
  0xb1   : > { %v650_v18 = vstv %s2448_s23  ;;  %s1834_s17 = sld [smem:[#allocation2 + $0x14]] }
  0xb2   : > { %s2451_s20 = sld [smem:[#allocation68_spill]]  ;;  %v1851_v37 = vmul.f32 %v1498_v1, %v650_v18  ;;  %v546_v18 = vstv %s1687_s1 }
  0xb3   : > { %s1853_s23 = sld [smem:[#allocation2 + $0x15]]  ;;  %v1874_v44 = vmul.f32 %v1514_v4, %v546_v18  ;;  %v708_v25 = vstv %s1812_s13 }
  0xb4   : > { %v712_v46 = vstv %s2449_s4  ;;  %s2452_s21 = sld [smem:[#allocation52_spill]] }
  0xb5   : > { %v728_v49 = vstv %s2450_s27  ;;  %s1859_s8 = sld [smem:[#allocation2 + $0x16]] }
  0xb6   : > { %s1871_s22 = sld [smem:[#allocation2 + $0x50]]  ;;  %v724_v27 = vstv %s1822_s9 }
  0xb7   : > { %s2453_s0 = sld [smem:[#allocation53_spill]] }
  0xb8   : > { %v1839_v19 = vld [vmem:[%s2451_s20] ss:$0 sm:$0xff]  ;;  %s1865_s20 = sld [smem:[#allocation2 + $0x17]] }
  0xb9   : > { %v669_v1 = vmul.f32 %v1839_v19, %v668_v50  ;;  %s2454_s2 = sld [smem:[#allocation54_spill]]  ;;  %v531_v7 = vmul.f32 %v1839_v19, %v530_v10 }
  0xba   : > { %s2455_s10 = sld [smem:[#allocation28_spill]]  ;;  %v578_v35 = vstv %s2452_s21 }
  0xbb   : > { %s1881_s25 = sld [smem:[#allocation2 + $0x70]]  ;;  %v1883_v33 = vmul.f32 %v680_v41, %v669_v1  ;;  %v1885_v50 = vmul.f32 %v696_v45, %v669_v1  ;;  %v1887_v52 = vmul.f32 %v712_v46, %v669_v1  ;;  %v1889_v18 = vmul.f32 %v728_v49, %v669_v1 }
  0xbc   : > { %s2457_s6 = sld [smem:[#allocation30_spill]]  ;;  %v1893_v48 = vmul.f32 %v744_v56, %v669_v1  ;;  %v1895_v39 = vmul.f32 %v760_v57, %v669_v1  ;;  %v1897_v31 = vmul.f32 %v776_v60, %v669_v1  ;;  %v1899_v41 = vmul.f32 %v792_v61, %v669_v1 }
  0xbd   : > { %2456 = vst [vmem:[#allocation55_spill] sm:$0xff] %v1883_v33  ;;  %s1891_s1 = sld [smem:[#allocation2 + $0x51]]  ;;  %v1904_v45 = vmul.f32 %v1514_v4, %v578_v35  ;;  %v626_v1 = vstv %s1750_s15  ;;  %v1942_v56 = vmul.f32 %v1507_v2, %v676_v26  ;;  %v1952_v61 = vmul.f32 %v1507_v2, %v724_v27  ;;  %v390_v27 = vpop.permute.xlu0 %389 }
  0xbe   : > { %2458 = vst [vmem:[#allocation56_spill] sm:$0xff] %v1885_v50  ;;  %s1901_s3 = sld [smem:[#allocation2 + $0x71]]  ;;  %v1923_v46 = vmul.f32 %v1514_v4, %v626_v1  ;;  %v692_v1 = vstv %s1804_s26  ;;  %v772_v23 = vstv %s1859_s8  ;;  %v788_v22 = vstv %s1865_s20 }
  0xbf   : > { %2459 = vst [vmem:[#allocation57_spill] sm:$0xff] %v1887_v52  ;;  %s2465_s4 = sld [smem:[#allocation32_spill]]  ;;  %v594_v49 = vstv %s2454_s2  ;;  %v1945_v24 = vmul.f32 %v1507_v2, %v692_v1  ;;  %v1968_v9 = vmul.f32 %v1507_v2, %v788_v22 }
  0xc0   : > { %2460 = vst [vmem:[#allocation58_spill] sm:$0xff] %v1889_v18  ;;  %s1909_s27 = sld [smem:[#allocation2 + $0x52]]  ;;  %v1912_v57 = vmul.f32 %v1514_v4, %v594_v49  ;;  %v1930_v49 = vmul.f32 %v1514_v4, %v642_v29  ;;  %v1948_v29 = vmul.f32 %v1507_v2, %v708_v25  ;;  %v1964_v25 = vmul.f32 %v1507_v2, %v772_v23 }
  0xc1   : > { %2461 = vst [vmem:[#allocation59_spill] sm:$0xff] %v1893_v48  ;;  %s1917_s21 = sld [smem:[#allocation2 + $0x72]]  ;;  %v394_v23 = vmul.f32 %v1839_v19, %v390_v27 }
  0xc2   : > { %2462 = vst [vmem:[#allocation60_spill] sm:$0xff] %v1895_v39  ;;  %v610_v60 = vstv %s2457_s6  ;;  %s1927_s2 = sld [smem:[#allocation2 + $0x53]] }
  0xc3   : > { %2463 = vst [vmem:[#allocation61_spill] sm:$0xff] %v1897_v31  ;;  %v1920_v35 = vmul.f32 %v1514_v4, %v610_v60  ;;  %v1936_v60 = vmul.f32 %v1514_v4, %v658_v28  ;;  %v740_v4 = vstv %s1834_s17  ;;  %v756_v28 = vstv %s1853_s23  ;;  %s2466_s5 = sld [smem:[#allocation11_spill]] }
  0xc4   : > { %2464 = vst [vmem:[#allocation62_spill] sm:$0xff] %v1899_v41  ;;  %v1958_v26 = vmul.f32 %v1507_v2, %v740_v4  ;;  %v1961_v1 = vmul.f32 %v1507_v2, %v756_v28  ;;  %s2467_s15 = sld [smem:[#allocation12_spill]]  ;;  %v684_v4 = vstv %s1871_s22  ;;  %v700_v28 = vstv %s1891_s1 }
  0xc5   : > { %s2468_s11 = sld [smem:[#allocation13_spill]]  ;;  %v1976_v55 = vmul.f32 %v1517_v5, %v684_v4  ;;  %v1979_v54 = vmul.f32 %v1517_v5, %v700_v28 }
  0xc6   : > { %s2469_s28 = sld [smem:[#allocation14_spill]] }
  0xc7   : > { %s2470_s26 = sld [smem:[#allocation15_spill]]  ;;  %2474 = vst [vmem:[#allocation63_spill] sm:$0xff] %v1976_v55 }
  0xc8   : > { %s2471_s13 = sld [smem:[#allocation16_spill]]  ;;  %2475 = vst [vmem:[#allocation64_spill] sm:$0xff] %v1979_v54 }
  0xc9   : > { %s2472_s9 = sld [smem:[#allocation17_spill]]  ;;  %v2476_v6 = vstv %s2466_s5 }
  0xca   : > { %s2473_s17 = sld [smem:[#allocation18_spill]]  ;;  %v405_v41 = vmul.f32 %v2476_v6, %v394_v23  ;;  %v2477_v8 = vstv %s2467_s15 }
  0xcb   : > { %s2478_s23 = sld [smem:[#allocation19_spill]]  ;;  %v421_v31 = vmul.f32 %v2477_v8, %v394_v23  ;;  %v2479_v39 = vstv %s2468_s11 }
  0xcc   : > { %s2480_s8 = sld [smem:[#allocation20_spill]]  ;;  %v437_v27 = vmul.f32 %v2479_v39, %v394_v23  ;;  %v2481_v48 = vstv %s2469_s28  ;;  %v406_v8 = vadd.f32 %v405_v41, %v1726_v11 }
  0xcd   : > { %s2482_s20 = sld [smem:[#allocation21_spill]]  ;;  %v453_v10 = vmul.f32 %v2481_v48, %v394_v23  ;;  %v2483_v4 = vstv %s2470_s26  ;;  %v422_v39 = vadd.f32 %v421_v31, %v1728_v12 }
  0xce   : > { %s2484_s22 = sld [smem:[#allocation22_spill]]  ;;  %v469_v55 = vmul.f32 %v2483_v4, %v394_v23  ;;  %v2485_v28 = vstv %s2471_s13  ;;  %v438_v54 = vadd.f32 %v437_v27, %v1730_v0 }
  0xcf   : > { %s2486_s6 = sld [smem:[#allocation23_spill]]  ;;  %v485_v53 = vmul.f32 %v2485_v28, %v394_v23  ;;  %v2487_v2 = vstv %s2472_s9  ;;  %v454_v48 = vadd.f32 %v453_v10, %v1732_v13 }
  0xd0   : > { %s2488_s1 = sld [smem:[#allocation24_spill]]  ;;  %v501_v22 = vmul.f32 %v2487_v2, %v394_v23  ;;  %v2489_v42 = vstv %s2473_s17  ;;  %v470_v4 = vadd.f32 %v469_v55, %v1736_v14  ;;  %v442_v27 = vadd.f32 %v1775_v34, %v438_v54 }
  0xd1   : > { %s2490_s5 = sld [smem:[#allocation25_spill]]  ;;  %v517_v6 = vmul.f32 %v2489_v42, %v394_v23  ;;  %v486_v18 = vadd.f32 %v485_v53, %v1738_v15  ;;  %v2492_v52 = vstv %s2478_s23  ;;  %v458_v10 = vadd.f32 %v1783_v38, %v454_v48 }
  0xd2   : > { %s2491_s15 = sld [smem:[#allocation26_spill]]  ;;  %v502_v28 = vadd.f32 %v501_v22, %v1740_v16  ;;  %v543_v50 = vmul.f32 %v2492_v52, %v531_v7  ;;  %v2493_v42 = vstv %s2480_s8  ;;  %v410_v52 = vadd.f32 %v1765_v30, %v406_v8 }
  0xd3   : > { %v518_v2 = vadd.f32 %v517_v6, %v1742_v17  ;;  %v559_v23 = vmul.f32 %v2493_v42, %v531_v7  ;;  %v2494_v33 = vstv %s2482_s20  ;;  %s2497_s11 = sld [smem:[#allocation27_spill]]  ;;  %v397_v17 = vpop.permute.xlu0 %396  ;;  %v426_v22 = vadd.f32 %v1769_v32, %v422_v39 }
  0xd4   : > { %v575_v11 = vmul.f32 %v2494_v33, %v531_v7  ;;  %v2495_v41 = vstv %s2484_s22  ;;  %s2499_s28 = sld [smem:[#allocation29_spill]]  ;;  %v398_v33 = vmul.f32 %v1839_v19, %v397_v17  ;;  %v474_v6 = vadd.f32 %v1791_v43, %v470_v4 }
  0xd5   : > { %v591_v12 = vmul.f32 %v2495_v41, %v531_v7  ;;  %v2496_v31 = vstv %s2486_s6  ;;  %s2501_s26 = sld [smem:[#allocation31_spill]]  ;;  %v506_v42 = vadd.f32 %v1807_v51, %v502_v28  ;;  %v2507_v39 = vstv %s2433_s16 }
  0xd6   : > { %v607_v0 = vmul.f32 %v2496_v31, %v531_v7  ;;  %v2498_v13 = vstv %s2488_s1  ;;  %s2503_s13 = sld [smem:[#allocation35_spill]]  ;;  %v461_v54 = vmul.f32 %v2507_v39, %v398_v33  ;;  %v2509_v43 = vstv %s2436_s30 }
  0xd7   : > { %v623_v55 = vmul.f32 %v2498_v13, %v531_v7  ;;  %v2500_v14 = vstv %s2490_s5  ;;  %s2033_s9 = sld [smem:[#allocation2 + $0x73]]  ;;  %v493_v48 = vmul.f32 %v2509_v43, %v398_v33  ;;  %v522_v51 = vadd.f32 %v1815_v58, %v518_v2 }
  0xd8   : > { %v2023_v53 = vmul.f32 %v2500_v14, %v531_v7  ;;  %v2502_v15 = vstv %s2491_s15  ;;  %s2039_s17 = sld [smem:[#allocation2 + $0x54]] }
  0xd9   : > { %v2027_v16 = vmul.f32 %v2502_v15, %v531_v7  ;;  %v490_v7 = vadd.f32 %v1799_v47, %v486_v18  ;;  %v2504_v41 = vstv %s2497_s11  ;;  %s2049_s23 = sld [smem:[#allocation2 + $0x74]]  ;;  %v2510_v47 = vstv %s2440_s7 }
  0xda   : > { %v413_v31 = vmul.f32 %v2504_v41, %v398_v33  ;;  %v2505_v30 = vstv %s2499_s28  ;;  %v509_v18 = vmul.f32 %v2510_v47, %v398_v33  ;;  %s2058_s8 = sld [smem:[#allocation2 + $0x55]]  ;;  %v462_v15 = vadd.f32 %v461_v54, %v458_v10 }
  0xdb   : > { %v429_v8 = vmul.f32 %v2505_v30, %v398_v33  ;;  %v2506_v13 = vstv %s2501_s26  ;;  %s2060_s20 = sld [smem:[#allocation2 + $0x75]]  ;;  %v494_v41 = vadd.f32 %v493_v48, %v490_v7 }
  0xdc   : > { %v445_v32 = vmul.f32 %v2506_v13, %v398_v33  ;;  %v2508_v34 = vstv %s2503_s13  ;;  %v414_v4 = vadd.f32 %v413_v31, %v410_v52  ;;  %v510_v30 = vadd.f32 %v509_v18, %v506_v42  ;;  %s2064_s16 = sld [smem:[#allocation2 + $0x56]] }
  0xdd   : > { %v477_v38 = vmul.f32 %v2508_v34, %v398_v33  ;;  %v430_v28 = vadd.f32 %v429_v8, %v426_v22  ;;  %v2511_v13 = vstv %s2443_s19  ;;  %v535_v34 = vpop.permute.xlu1 %534  ;;  %v588_v52 = vadd.f32 %v1831_v3, %v462_v15  ;;  %s2070_s7 = sld [smem:[#allocation2 + $0x76]] }
  0xde   : > { %v446_v14 = vadd.f32 %v445_v32, %v442_v27  ;;  %v525_v39 = vmul.f32 %v2511_v13, %v398_v33  ;;  %v540_v43 = vadd.f32 %v1818_v59, %v414_v4  ;;  %v620_v10 = vadd.f32 %v1845_v21, %v494_v41  ;;  %s2075_s19 = sld [smem:[#allocation2 + $0x57]] }
  0xdf   : > { %v478_v17 = vadd.f32 %v477_v38, %v474_v6  ;;  %v556_v58 = vadd.f32 %v1825_v62, %v430_v28  ;;  %v636_v33 = vadd.f32 %v1848_v36, %v510_v30  ;;  %v536_v59 = vmul.f32 %v1839_v19, %v535_v34  ;;  %s2078_s30 = sld [smem:[#allocation2 + $0x77]] }
  0xe0   : > { %v572_v2 = vadd.f32 %v1828_v63, %v446_v14  ;;  %v526_v22 = vadd.f32 %v525_v39, %v522_v51  ;;  %v544_v62 = vadd.f32 %v543_v50, %v540_v43  ;;  %v592_v7 = vadd.f32 %v591_v12, %v588_v52  ;;  %s2081_s22 = sld [smem:[#allocation2 + $0x18]] }
  0xe1   : > { %v604_v27 = vadd.f32 %v1842_v20, %v478_v17  ;;  %v560_v63 = vadd.f32 %v559_v23, %v556_v58  ;;  %v624_v21 = vadd.f32 %v623_v55, %v620_v10  ;;  %v2512_v42 = vstv %s1691_s12  ;;  %s2089_s6 = sld [smem:[#allocation2 + $0x38]]  ;;  %v673_v10 = vpop.permute.xlu2 %672 }
  0xe2   : > { %v576_v3 = vadd.f32 %v575_v11, %v572_v2  ;;  %v652_v6 = vadd.f32 %v1851_v37, %v526_v22  ;;  %v548_v36 = vadd.f32 %v1874_v44, %v544_v62  ;;  %v551_v31 = vmul.f32 %v2512_v42, %v536_v59  ;;  %s2097_s1 = sld [smem:[#allocation2 + $0x19]]  ;;  %v2523_v42 = vld [vmem:[#allocation56_spill] sm:$0xff] }
  0xe3   : > { %v608_v20 = vadd.f32 %v607_v0, %v604_v27  ;;  %v564_v8 = vadd.f32 %v1877_v40, %v560_v63  ;;  %v2513_v50 = vstv %s1701_s14  ;;  %v2514_v37 = vstv %s2453_s0  ;;  %s2102_s12 = sld [smem:[#allocation2 + $0x39]] }
  0xe4   : > { %v567_v23 = vmul.f32 %v2513_v50, %v536_v59  ;;  %v580_v11 = vadd.f32 %v1904_v45, %v576_v3  ;;  %v583_v12 = vmul.f32 %v2514_v37, %v536_v59  ;;  %v596_v0 = vadd.f32 %v1912_v57, %v592_v7  ;;  %s2107_s14 = sld [smem:[#allocation2 + $0x1a]]  ;;  %v2526_v37 = vld [vmem:[#allocation59_spill] sm:$0xff] }
  0xe5   : > { %v2515_v55 = vstv %s2455_s10  ;;  %v552_v44 = vadd.f32 %v551_v31, %v548_v36  ;;  %v612_v40 = vadd.f32 %v1920_v35, %v608_v20  ;;  %v2516_v38 = vstv %s1744_s24  ;;  %s2113_s24 = sld [smem:[#allocation2 + $0x3a]] }
  0xe6   : > { %v599_v32 = vmul.f32 %v2515_v55, %v536_v59  ;;  %v568_v54 = vadd.f32 %v567_v23, %v564_v8  ;;  %v615_v48 = vmul.f32 %v2516_v38, %v536_v59  ;;  %v584_v47 = vadd.f32 %v583_v12, %v580_v11  ;;  %s2135_s0 = sld [smem:[#allocation2 + $0x1c]]  ;;  %v2524_v8 = vld [vmem:[#allocation57_spill] sm:$0xff]  ;;  %v2525_v23 = vld [vmem:[#allocation58_spill] sm:$0xff] }
  0xe7   : > { %v628_v18 = vadd.f32 %v1923_v46, %v624_v21  ;;  %v2517_v51 = vstv %s1756_s18  ;;  %v640_v28 = vadd.f32 %v2023_v53, %v636_v33  ;;  %v2518_v14 = vstv %s2465_s4  ;;  %s2119_s18 = sld [smem:[#allocation2 + $0x1b]] }
  0xe8   : > { %v600_v45 = vadd.f32 %v599_v32, %v596_v0  ;;  %v631_v4 = vmul.f32 %v2517_v51, %v536_v59  ;;  %v616_v57 = vadd.f32 %v615_v48, %v612_v40  ;;  %v647_v15 = vmul.f32 %v2518_v14, %v536_v59  ;;  %s2139_s10 = sld [smem:[#allocation2 + $0x3c]]  ;;  %v2527_v0 = vld [vmem:[#allocation60_spill] sm:$0xff] }
  0xe9   : > { %v656_v35 = vadd.f32 %v2027_v16, %v652_v6  ;;  %v2519_v41 = vstv %s1788_s29  ;;  %v678_v46 = vadd.f32 %v1942_v56, %v552_v44  ;;  %v694_v13 = vadd.f32 %v1945_v24, %v568_v54  ;;  %s2125_s29 = sld [smem:[#allocation2 + $0x3b]]  ;;  %v2530_v40 = vld [vmem:[#allocation64_spill] sm:$0xff] }
  0xea   : > { %v632_v17 = vadd.f32 %v631_v4, %v628_v18  ;;  %v663_v30 = vmul.f32 %v2519_v41, %v536_v59  ;;  %v644_v53 = vadd.f32 %v1930_v49, %v640_v28  ;;  %v710_v16 = vadd.f32 %v1948_v29, %v584_v47  ;;  %s2145_s4 = sld [smem:[#allocation2 + $0x1d]] }
  0xeb   : > { %v660_v39 = vadd.f32 %v1936_v60, %v656_v35  ;;  %v726_v34 = vadd.f32 %v1952_v61, %v600_v45  ;;  %v742_v56 = vadd.f32 %v1958_v26, %v616_v57  ;;  %v2520_v24 = vstv %s1909_s27  ;;  %s2151_s27 = sld [smem:[#allocation2 + $0x3d]] }
  0xec   : > { %v758_v43 = vadd.f32 %v1961_v1, %v632_v17  ;;  %v717_v58 = vmul.f32 %v1517_v5, %v2520_v24  ;;  %v2521_v2 = vstv %s1927_s2  ;;  %v648_v60 = vadd.f32 %v647_v15, %v644_v53  ;;  %s2157_s2 = sld [smem:[#allocation2 + $0x1e]]  ;;  %v2533_v53 = vld [vmem:[#allocation61_spill] sm:$0xff] }
  0xed   : > { %v733_v49 = vmul.f32 %v1517_v5, %v2521_v2  ;;  %v664_v29 = vadd.f32 %v663_v30, %v660_v39  ;;  %v736_v52 = vstv %s2033_s9  ;;  %v748_v61 = vstv %s2039_s17  ;;  %s2163_s5 = sld [smem:[#allocation2 + $0x3e]] }
  0xee   : > { %v749_v26 = vmul.f32 %v1517_v5, %v748_v61  ;;  %v752_v1 = vstv %s2049_s23  ;;  %v764_v22 = vstv %s2058_s8  ;;  %v768_v27 = vstv %s2060_s20  ;;  %s2169_s15 = sld [smem:[#allocation2 + $0x1f]] }
  0xef   : > { %v774_v33 = vadd.f32 %v1964_v25, %v648_v60  ;;  %v790_v59 = vadd.f32 %v1968_v9, %v664_v29  ;;  %v765_v62 = vmul.f32 %v1517_v5, %v764_v22  ;;  %v780_v63 = vstv %s2064_s16  ;;  %v2522_v9 = vld [vmem:[#allocation55_spill] sm:$0xff]  ;;  %s2177_s11 = sld [smem:[#allocation2 + $0x3f]]  ;;  %v2535_v29 = vld [vmem:[#allocation10_spill] sm:$0xff] }
  0xf0   : > { %v781_v3 = vmul.f32 %v1517_v5, %v780_v63  ;;  %v784_v6 = vstv %s2070_s7  ;;  %v796_v7 = vstv %s2075_s19  ;;  %v800_v20 = vstv %s2078_s30  ;;  %s2181_s28 = sld [smem:[#allocation2 + $0x58]] }
  0xf1   : > { %v797_v21 = vmul.f32 %v1517_v5, %v796_v7  ;;  %v674_v25 = vmul.f32 %v1839_v19, %v673_v10  ;;  %v682_v36 = vadd.f32 %v2522_v9, %v678_v46  ;;  %v698_v31 = vadd.f32 %v2523_v42, %v694_v13  ;;  %v2528_v5 = vld [vmem:[#allocation63_spill] sm:$0xff]  ;;  %s2193_s26 = sld [smem:[#allocation2 + $0x5a]] }
  0xf2   : > { %v714_v50 = vadd.f32 %v2524_v8, %v710_v16  ;;  %v730_v11 = vadd.f32 %v2525_v23, %v726_v34  ;;  %v746_v12 = vadd.f32 %v2526_v37, %v742_v56  ;;  %v762_v55 = vadd.f32 %v2527_v0, %v758_v43  ;;  %v2534_v34 = vld [vmem:[#allocation62_spill] sm:$0xff]  ;;  %s2197_s13 = sld [smem:[#allocation2 + $0x7a]] }
  0xf3   : > { %v686_v32 = vadd.f32 %v2528_v5, %v682_v36  ;;  %v2529_v44 = vstv %s1881_s25  ;;  %v702_v38 = vadd.f32 %v2530_v40, %v698_v31  ;;  %v2531_v48 = vstv %s1901_s3  ;;  %s2183_s25 = sld [smem:[#allocation2 + $0x78]] }
  0xf4   : > { %v689_v54 = vmul.f32 %v2529_v44, %v674_v25  ;;  %v705_v47 = vmul.f32 %v2531_v48, %v674_v25  ;;  %v718_v45 = vadd.f32 %v717_v58, %v714_v50  ;;  %v2532_v18 = vstv %s1917_s21  ;;  %s2185_s3 = sld [smem:[#allocation2 + $0x59]] }
  0xf5   : > { %v721_v51 = vmul.f32 %v2532_v18, %v674_v25  ;;  %v734_v4 = vadd.f32 %v733_v49, %v730_v11  ;;  %v737_v57 = vmul.f32 %v736_v52, %v674_v25  ;;  %v750_v15 = vadd.f32 %v749_v26, %v746_v12  ;;  %s2189_s21 = sld [smem:[#allocation2 + $0x79]] }
  0xf6   : > { %v690_v28 = vadd.f32 %v689_v54, %v686_v32  ;;  %v706_v14 = vadd.f32 %v705_v47, %v702_v38  ;;  %v753_v35 = vmul.f32 %v752_v1, %v674_v25  ;;  %v766_v30 = vadd.f32 %v765_v62, %v762_v55  ;;  %s2203_s9 = sld [smem:[#allocation2 + $0x5b]] }
  0xf7   : > { %v722_v17 = vadd.f32 %v721_v51, %v718_v45  ;;  %v738_v41 = vadd.f32 %v737_v57, %v734_v4  ;;  %v769_v46 = vmul.f32 %v768_v27, %v674_v25  ;;  %v778_v39 = vadd.f32 %v2533_v53, %v774_v33  ;;  %s2207_s17 = sld [smem:[#allocation2 + $0x7b]] }
  0xf8   : > { %v754_v13 = vadd.f32 %v753_v35, %v750_v15  ;;  %v785_v16 = vmul.f32 %v784_v6, %v674_v25  ;;  %v794_v56 = vadd.f32 %v2534_v34, %v790_v59  ;;  %v801_v24 = vmul.f32 %v800_v20, %v674_v25  ;;  %v806_v20 = vpop.permute.xlu0 %805  ;;  %s2213_s23 = sld [smem:[#allocation2 + $0x5c]] }
  0xf9   : > { %v770_v43 = vadd.f32 %v769_v46, %v766_v30  ;;  %v814_v58 = vstv %s2081_s22  ;;  %v818_v2 = vstv %s2089_s6  ;;  %v782_v49 = vadd.f32 %v781_v3, %v778_v39  ;;  %s2219_s8 = sld [smem:[#allocation2 + $0x7c]] }
  0xfa   : > { %v798_v60 = vadd.f32 %v797_v21, %v794_v56  ;;  %v815_v52 = vmul.f32 %v2535_v29, %v814_v58  ;;  %v830_v61 = vstv %s2097_s1  ;;  %v834_v1 = vstv %s2102_s12  ;;  %s2225_s20 = sld [smem:[#allocation2 + $0x5d]] }
  0xfb   : > { %v831_v26 = vmul.f32 %v2535_v29, %v830_v61  ;;  %v846_v22 = vstv %s2107_s14  ;;  %v850_v27 = vstv %s2113_s24  ;;  %v786_v10 = vadd.f32 %v785_v16, %v782_v49  ;;  %s2230_s16 = sld [smem:[#allocation2 + $0x7d]]  ;;  %v811_v61 = vpop.permute.xlu1 %810 }
  0xfc   : > { %v802_v33 = vadd.f32 %v801_v24, %v798_v60  ;;  %v847_v59 = vmul.f32 %v2535_v29, %v846_v22  ;;  %v862_v62 = vstv %s2119_s18  ;;  %v866_v3 = vstv %s2125_s29  ;;  %s2232_s7 = sld [smem:[#allocation2 + $0x5e]] }
  0xfd   : > { %v863_v63 = vmul.f32 %v2535_v29, %v862_v62  ;;  %v878_v6 = vstv %s2135_s0  ;;  %v882_v7 = vstv %s2139_s10  ;;  %v894_v25 = vstv %s2145_s4  ;;  %s2234_s19 = sld [smem:[#allocation2 + $0x7e]] }
  0xfe   : > { %v879_v21 = vmul.f32 %v2535_v29, %v878_v6  ;;  %v898_v9 = vstv %s2151_s27  ;;  %v910_v36 = vstv %s2157_s2  ;;  %v895_v42 = vmul.f32 %v2535_v29, %v894_v25  ;;  %s2536_s30 = sld [smem:[#allocation9_spill]] }
  0xff   : > { %v911_v31 = vmul.f32 %v2535_v29, %v910_v36  ;;  %v914_v8 = vstv %s2163_s5  ;;  %v926_v50 = vstv %s2169_s15  ;;  %v930_v11 = vstv %s2177_s11  ;;  %s2236_s22 = sld [smem:[#allocation2 + $0x5f]] }
 0x100   : > { %v927_v23 = vmul.f32 %v2535_v29, %v926_v50  ;;  %v807_v37 = vmul.f32 %v1839_v19, %v806_v20  ;;  %v816_v12 = vadd.f32 %v815_v52, %v690_v28  ;;  %v832_v0 = vadd.f32 %v831_v26, %v706_v14  ;;  %s2238_s6 = sld [smem:[#allocation2 + $0x7f]] }
 0x101   : > { %v848_v55 = vadd.f32 %v847_v59, %v722_v17  ;;  %v864_v5 = vadd.f32 %v863_v63, %v738_v41  ;;  %v880_v32 = vadd.f32 %v879_v21, %v754_v13  ;;  %v896_v47 = vadd.f32 %v895_v42, %v770_v43  ;;  %s2537_s1 = sld [smem:[#allocation8_spill]] }
 0x102   : > { %v819_v44 = vmul.f32 %v818_v2, %v807_v37  ;;  %v835_v54 = vmul.f32 %v834_v1, %v807_v37  ;;  %v851_v40 = vmul.f32 %v850_v27, %v807_v37  ;;  %v867_v38 = vmul.f32 %v866_v3, %v807_v37  ;;  %s2538_s18 = sld [smem:[#allocation71_spill]] }
 0x103   : > { %v883_v48 = vmul.f32 %v882_v7, %v807_v37  ;;  %v899_v45 = vmul.f32 %v898_v9, %v807_v37  ;;  %v912_v18 = vadd.f32 %v911_v31, %v786_v10  ;;  %v915_v35 = vmul.f32 %v914_v8, %v807_v37 }
 0x104   : > { %v820_v51 = vadd.f32 %v819_v44, %v816_v12  ;;  %v836_v4 = vadd.f32 %v835_v54, %v832_v0  ;;  %v852_v57 = vadd.f32 %v851_v40, %v848_v55  ;;  %v868_v28 = vadd.f32 %v867_v38, %v864_v5  ;;  %v1386_v39 = vld [vmem:[%s2536_s30 + $0x18] sm:$0xff] }
 0x105   : > { %v884_v14 = vadd.f32 %v883_v48, %v880_v32  ;;  %v900_v15 = vadd.f32 %v899_v45, %v896_v47  ;;  %v928_v17 = vadd.f32 %v927_v23, %v802_v33  ;;  %v931_v41 = vmul.f32 %v930_v11, %v807_v37 }
 0x106   : > { %v822_v30 = vstv %s2181_s28  ;;  %v826_v46 = vstv %s2183_s25  ;;  %v838_v13 = vstv %s2185_s3  ;;  %v916_v53 = vadd.f32 %v915_v35, %v912_v18 }
 0x107   : > { %v823_v16 = vmul.f32 %v1386_v39, %v822_v30  ;;  %v839_v34 = vmul.f32 %v1386_v39, %v838_v13  ;;  %v842_v56 = vstv %s2189_s21  ;;  %v932_v43 = vadd.f32 %v931_v41, %v928_v17  ;;  %s1331_s12 = sshll.u32 %s2537_s1, 4 }
 0x108   : > { %v854_v24 = vstv %s2193_s26  ;;  %v858_v58 = vstv %s2197_s13  ;;  %v870_v2 = vstv %s2203_s9  ;;  %v874_v29 = vstv %s2207_s17  ;;  %s2270_s29 = scalar_lea.vmem %s2538_s18, %s1331_s12 }
 0x109   : > { %v855_v49 = vmul.f32 %v1386_v39, %v854_v24  ;;  %v871_v60 = vmul.f32 %v1386_v39, %v870_v2  ;;  %v886_v52 = vstv %s2213_s23  ;;  %v890_v1 = vstv %s2219_s8 }
 0x10a   : > { %v887_v26 = vmul.f32 %v1386_v39, %v886_v52  ;;  %v902_v22 = vstv %s2225_s20  ;;  %v906_v27 = vstv %s2230_s16  ;;  %v918_v33 = vstv %s2232_s7 }
 0x10b   : > { %v903_v10 = vmul.f32 %v1386_v39, %v902_v22  ;;  %v922_v59 = vstv %s2234_s19  ;;  %v934_v62 = vstv %s2236_s22  ;;  %v919_v63 = vmul.f32 %v1386_v39, %v918_v33 }
 0x10c   : > { %v935_v3 = vmul.f32 %v1386_v39, %v934_v62  ;;  %v938_v6 = vstv %s2238_s6  ;;  %v812_v7 = vmul.f32 %v1839_v19, %v811_v61  ;;  %v824_v20 = vadd.f32 %v823_v16, %v820_v51 }
 0x10d   : > { %v840_v21 = vadd.f32 %v839_v34, %v836_v4  ;;  %v856_v25 = vadd.f32 %v855_v49, %v852_v57  ;;  %v872_v9 = vadd.f32 %v871_v60, %v868_v28  ;;  %v888_v50 = vadd.f32 %v887_v26, %v884_v14 }
 0x10e   : > { %v827_v36 = vmul.f32 %v826_v46, %v812_v7  ;;  %v843_v42 = vmul.f32 %v842_v56, %v812_v7  ;;  %v859_v31 = vmul.f32 %v858_v58, %v812_v7  ;;  %v875_v8 = vmul.f32 %v874_v29, %v812_v7 }
 0x10f   : > { %v891_v23 = vmul.f32 %v890_v1, %v812_v7  ;;  %v904_v11 = vadd.f32 %v903_v10, %v900_v15  ;;  %v907_v37 = vmul.f32 %v906_v27, %v812_v7  ;;  %v920_v19 = vadd.f32 %v919_v63, %v916_v53 }
 0x110   : > { %v828_v12 = vadd.f32 %v827_v36, %v824_v20  ;;  %v844_v0 = vadd.f32 %v843_v42, %v840_v21  ;;  %v860_v55 = vadd.f32 %v859_v31, %v856_v25  ;;  %v876_v5 = vadd.f32 %v875_v8, %v872_v9 }
 0x111   : > { %v2258_v32 = vadd.f32 %v891_v23, %v888_v50  ;;  %v2260_v44 = vadd.f32 %v907_v37, %v904_v11  ;;  %v923_v54 = vmul.f32 %v922_v59, %v812_v7  ;;  %v936_v40 = vadd.f32 %v935_v3, %v932_v43 }
 0x112   : > { %v939_v38 = vmul.f32 %v938_v6, %v812_v7  ;;  %v941_v48 = vrot.slane %v828_v12, 4  ;;  %v948_v47 = vmul.f32 %v828_v12, %v828_v12  ;;  %v956_v18 = vrot.slane %v844_v0, 4 }
 0x113   : > { %v2262_v45 = vadd.f32 %v923_v54, %v920_v19  ;;  %v963_v51 = vmul.f32 %v844_v0, %v844_v0  ;;  %v971_v4 = vrot.slane %v860_v55, 4  ;;  %v978_v15 = vmul.f32 %v860_v55, %v860_v55 }
 0x114   : > { %v2264_v57 = vadd.f32 %v939_v38, %v936_v40  ;;  %v942_v28 = vadd.f32 %v941_v48, %v828_v12  ;;  %v949_v14 = vrot.slane %v948_v47, 4  ;;  %v957_v35 = vadd.f32 %v956_v18, %v844_v0 }
 0x115   : > { %v964_v17 = vrot.slane %v963_v51, 4  ;;  %v972_v41 = vadd.f32 %v971_v4, %v860_v55  ;;  %v986_v30 = vrot.slane %v876_v5, 4  ;;  %v979_v53 = vrot.slane %v978_v15, 4 }
 0x116   : > { %v943_v46 = vrot.slane %v942_v28, 2  ;;  %v950_v13 = vadd.f32 %v949_v14, %v948_v47  ;;  %v993_v39 = vmul.f32 %v876_v5, %v876_v5  ;;  %v958_v16 = vrot.slane %v957_v35, 2 }
 0x117   : > { %v965_v34 = vadd.f32 %v964_v17, %v963_v51  ;;  %v973_v56 = vrot.slane %v972_v41, 2  ;;  %v987_v43 = vadd.f32 %v986_v30, %v876_v5  ;;  %v980_v2 = vadd.f32 %v979_v53, %v978_v15 }
 0x118   : > { %v944_v24 = vadd.f32 %v943_v46, %v942_v28  ;;  %v951_v58 = vrot.slane %v950_v13, 2  ;;  %v994_v49 = vrot.slane %v993_v39, 4  ;;  %v959_v60 = vadd.f32 %v958_v16, %v957_v35 }
 0x119   : > { %v966_v29 = vrot.slane %v965_v34, 2  ;;  %v974_v52 = vadd.f32 %v973_v56, %v972_v41  ;;  %v988_v61 = vrot.slane %v987_v43, 2  ;;  %v981_v22 = vrot.slane %v980_v2, 2 }
 0x11a   : > { %v945_v26 = vrot.slane %v944_v24, 1  ;;  %v952_v1 = vadd.f32 %v951_v58, %v950_v13  ;;  %v995_v27 = vadd.f32 %v994_v49, %v993_v39  ;;  %v960_v10 = vrot.slane %v959_v60, 1 }
 0x11b   : > { %v967_v33 = vadd.f32 %v966_v29, %v965_v34  ;;  %v975_v59 = vrot.slane %v974_v52, 1  ;;  %v989_v62 = vadd.f32 %v988_v61, %v987_v43  ;;  %v982_v6 = vadd.f32 %v981_v22, %v980_v2 }
 0x11c   : > { %v946_v63 = vadd.f32 %v945_v26, %v944_v24  ;;  %v953_v3 = vrot.slane %v952_v1, 1  ;;  %v996_v7 = vrot.slane %v995_v27, 2  ;;  %v961_v20 = vadd.f32 %v960_v10, %v959_v60 }
 0x11d   : > { %v968_v21 = vrot.slane %v967_v33, 1  ;;  %v976_v25 = vadd.f32 %v975_v59, %v974_v52  ;;  %v990_v9 = vrot.slane %v989_v62, 1  ;;  %v983_v42 = vrot.slane %v982_v6, 1 }
 0x11e   : > { %947 = vst [vmem:[%s2270_s29] sm:$0x1] %v946_v63  ;;  %v954_v36 = vadd.f32 %v953_v3, %v952_v1  ;;  %v997_v31 = vadd.f32 %v996_v7, %v995_v27  ;;  %v1001_v8 = vrot.slane %v2258_v32, 4  ;;  %v1008_v11 = vmul.f32 %v2258_v32, %v2258_v32 }
 0x11f   : > { %962 = vst [vmem:[%s2270_s29 + $0x1] sm:$0x1] %v961_v20  ;;  %v969_v50 = vadd.f32 %v968_v21, %v967_v33  ;;  %v991_v23 = vadd.f32 %v990_v9, %v989_v62  ;;  %v1016_v37 = vrot.slane %v2260_v44, 4  ;;  %v984_v12 = vadd.f32 %v983_v42, %v982_v6 }
 0x120   : > { %955 = vst [vmem:[%s2270_s29 + $0x8] sm:$0x1] %v954_v36  ;;  %v998_v0 = vrot.slane %v997_v31, 1  ;;  %v1002_v55 = vadd.f32 %v1001_v8, %v2258_v32  ;;  %v1023_v5 = vmul.f32 %v2260_v44, %v2260_v44  ;;  %v1009_v19 = vrot.slane %v1008_v11, 4 }
 0x121   : > { %970 = vst [vmem:[%s2270_s29 + $0x9] sm:$0x1] %v969_v50  ;;  %v1017_v54 = vadd.f32 %v1016_v37, %v2260_v44  ;;  %v1031_v40 = vrot.slane %v2262_v45, 4  ;;  %v1038_v38 = vmul.f32 %v2262_v45, %v2262_v45  ;;  %v1046_v32 = vrot.slane %v2264_v57, 4 }
 0x122   : > { %977 = vst [vmem:[%s2270_s29 + $0x2] sm:$0x1] %v976_v25  ;;  %v999_v48 = vadd.f32 %v998_v0, %v997_v31  ;;  %v1003_v47 = vrot.slane %v1002_v55, 2  ;;  %v1024_v18 = vrot.slane %v1023_v5, 4  ;;  %v1010_v51 = vadd.f32 %v1009_v19, %v1008_v11 }
 0x123   : > { %985 = vst [vmem:[%s2270_s29 + $0xa] sm:$0x1] %v984_v12  ;;  %v1018_v4 = vrot.slane %v1017_v54, 2  ;;  %v1032_v28 = vadd.f32 %v1031_v40, %v2262_v45  ;;  %v1039_v14 = vrot.slane %v1038_v38, 4  ;;  %v1047_v35 = vadd.f32 %v1046_v32, %v2264_v57 }
 0x124   : > { %992 = vst [vmem:[%s2270_s29 + $0x3] sm:$0x1] %v991_v23  ;;  %v1004_v44 = vadd.f32 %v1003_v47, %v1002_v55  ;;  %v1025_v15 = vadd.f32 %v1024_v18, %v1023_v5  ;;  %v1053_v17 = vmul.f32 %v2264_v57, %v2264_v57  ;;  %v1011_v41 = vrot.slane %v1010_v51, 2 }
 0x125   : > { %1000 = vst [vmem:[%s2270_s29 + $0xb] sm:$0x1] %v999_v48  ;;  %v1019_v30 = vadd.f32 %v1018_v4, %v1017_v54  ;;  %v1033_v46 = vrot.slane %v1032_v28, 2  ;;  %v1040_v13 = vadd.f32 %v1039_v14, %v1038_v38  ;;  %v1048_v16 = vrot.slane %v1047_v35, 2 }
 0x126   : > { %v1005_v53 = vrot.slane %v1004_v44, 1  ;;  %v1026_v39 = vrot.slane %v1025_v15, 2  ;;  %v1054_v34 = vrot.slane %v1053_v17, 4  ;;  %v1012_v45 = vadd.f32 %v1011_v41, %v1010_v51 }
 0x127   : > { %v1020_v56 = vrot.slane %v1019_v30, 1  ;;  %v1034_v43 = vadd.f32 %v1033_v46, %v1032_v28  ;;  %v1041_v24 = vrot.slane %v1040_v13, 2  ;;  %v1049_v49 = vadd.f32 %v1048_v16, %v1047_v35 }
 0x128   : > { %v1006_v58 = vadd.f32 %v1005_v53, %v1004_v44  ;;  %v1027_v2 = vadd.f32 %v1026_v39, %v1025_v15  ;;  %v1055_v57 = vadd.f32 %v1054_v34, %v1053_v17  ;;  %v1013_v60 = vrot.slane %v1012_v45, 1 }
 0x129   : > { %v1021_v29 = vadd.f32 %v1020_v56, %v1019_v30  ;;  %v1035_v52 = vrot.slane %v1034_v43, 1  ;;  %v1042_v61 = vadd.f32 %v1041_v24, %v1040_v13  ;;  %v1050_v1 = vrot.slane %v1049_v49, 1 }
 0x12a   : > { %1007 = vst [vmem:[%s2270_s29 + $0x4] sm:$0x1] %v1006_v58  ;;  %v1028_v26 = vrot.slane %v1027_v2, 1  ;;  %v1056_v22 = vrot.slane %v1055_v57, 2  ;;  %v1014_v27 = vadd.f32 %v1013_v60, %v1012_v45 }
 0x12b   : > { %1022 = vst [vmem:[%s2270_s29 + $0x5] sm:$0x1] %v1021_v29  ;;  %v1036_v10 = vadd.f32 %v1035_v52, %v1034_v43  ;;  %v1043_v33 = vrot.slane %v1042_v61, 1  ;;  %v1051_v3 = vadd.f32 %v1050_v1, %v1049_v49 }
 0x12c   : > { %v1029_v59 = vadd.f32 %v1028_v26, %v1027_v2  ;;  %v1057_v62 = vadd.f32 %v1056_v22, %v1055_v57  ;;  %1015 = vst [vmem:[%s2270_s29 + $0xc] sm:$0x1] %v1014_v27 }
 0x12d   : > { %v1044_v63 = vadd.f32 %v1043_v33, %v1042_v61  ;;  %1037 = vst [vmem:[%s2270_s29 + $0x6] sm:$0x1] %v1036_v10 }
 0x12e   : > { %1030 = vst [vmem:[%s2270_s29 + $0xd] sm:$0x1] %v1029_v59  ;;  %v1058_v6 = vrot.slane %v1057_v62, 1 }
 0x12f   : > { %1045 = vst [vmem:[%s2270_s29 + $0xe] sm:$0x1] %v1044_v63 }
 0x130   : > { %v1059_v7 = vadd.f32 %v1058_v6, %v1057_v62  ;;  %1052 = vst [vmem:[%s2270_s29 + $0x7] sm:$0x1] %v1051_v3 }
 0x132   : > { %1060 = vst [vmem:[%s2270_s29 + $0xf] sm:$0x1] %v1059_v7 }
 0x133 PF: > { %s2539_s0 = sld [smem:[#allocation6_spill]] }
 0x134   : > { %s2540_s21 = sld [smem:[#allocation5_spill]] }
 0x135   : > { %s2541_s22 = sld [smem:[#allocation7_spill]] }
 0x139   : > { %s17_s23 = sadd.s32 1, %s2539_s0  }
 0x13a   : > { %p14_p8 = scmp.ge.s32.totalorder %s17_s23, 4  }
 0x13c   :  { %16 = sbr.rel (!%p14_p8) target bundleno = 10 (0xa), region = 88 }
 0x141   :  { %1090 = vsyncpa [#allocation3], 1 }
 0x142   :  { %1092 = vsyncpa [#allocation3 + $0x1], 1 }

// kernel: upconv_forward.3
= control target key start
LH: loop header
LB: loop body
LE: loop exit
PB: predicated region body
PF: predicated region fallthrough
CT: control target
= control target key end

     0   :  { %s2165_s0 = inlined_call_operand.vmem [shape: f32[128], index: 0, kind: input, shape index: {}]   ;;  %s2166_s1 = inlined_call_operand.vmem [shape: f32[2,4,8,128], index: 1, kind: input, shape index: {}]   ;;  %s2167_s2 = inlined_call_operand.vmem [shape: f32[2,4,8,128], index: 2, kind: input, shape index: {}]   ;;  %s2168_s3 = inlined_call_operand.vmem [shape: f32[1,128], index: 3, kind: input, shape index: {}]   ;;  %s2169_s4 = inlined_call_operand.vmem [shape: f32[8,128], index: 4, kind: input, shape index: {}]   ;;  %s2170_s5 = inlined_call_operand.vmem [shape: f32[8,128], index: 5, kind: input, shape index: {}]   ;;  %s2171_s6 = inlined_call_operand.vmem [shape: f32[2,8,8,128], index: 6, kind: output, shape index: {}]  }
   0x1   :  { %2205 = sst [smem:[#allocation65_spill]] %s2165_s0 }
   0x2   :  { %2206 = sst [smem:[#allocation66_spill]] %s2166_s1 }
   0x3   :  { %2207 = sst [smem:[#allocation67_spill]] %s2167_s2 }
   0x4   :  { %2208 = sst [smem:[#allocation68_spill]] %s2168_s3 }
   0x5   :  { %2209 = sst [smem:[#allocation69_spill]] %s2169_s4 }
   0x6   :  { %2210 = sst [smem:[#allocation70_spill]] %s2170_s5 }
   0x7   :  { %2211 = sst [smem:[#allocation71_spill]] %s2171_s6 }
   0x8   :  { %11 = vsyncpa [#allocation3], 0  ;;  %s1362_s21 = smov 0   ;;  %s1364_s22 = smov 0  }
   0x9   :  { %s1366_s23 = smov 0  }
   0xa LB: > { %2212 = sst [smem:[#allocation5_spill]] %s1318_s22  ;;  %s1068_s24 = sadd.s32 4294967295, %s1322_s23   ;;  %s1322_s23 = sphi %s1366_s23, %s17_s23   ;;  %s1318_s22 = sphi %s1364_s22, %s2393_s22   ;;  %s1314_s21 = sphi %s1362_s21, %s2392_s21  }
   0xb   : > { %2213 = sst [smem:[#allocation6_spill]] %s1322_s23  ;;  %s29_s25 = sadd.s32 1, %s1318_s22 }
   0xc   : > { %p31_p0 = scmp.ge.s32.totalorder %s29_s25, 2  ;;  %p1070_p1 = scmp.ge.s32.totalorder %s1322_s23, 1 }
   0xd   : > { %p202_p2 = scmp.lt.s32.totalorder %s1322_s23, 3  ;;  %p1234_p4 = scmp.eq.s32.totalorder %s1068_s24, 0 }
   0xe   : > { %s2395_s25 = smov (%p31_p0, %s29_s25), 0  ;;  %s2215_s0 = sld [smem:[#allocation65_spill]] }
   0xf   : > { %2214 = sst [smem:[#allocation7_spill]] %s2395_s25  ;;  %p203_p3 = pnand %p1070_p1, %p202_p2 }
  0x10   : > { %s1324_s29 = smov [#allocation2]  }
  0x11   : > { %p1230_p5 = pneg %p203_p3  ;;  %258 = sbr.rel (%p203_p3) target bundleno = 282 (0x11a), region = 44 }
  0x13   : > { %p1231_p6 = pnand %p1234_p4, %p1230_p5 }
  0x14   : > { %s214_s28 = sshll.u32 %s2215_s0, 4  ;;  %s215_s28 = int_to_ptr.vmem [resolvable:$true] %s214_s28 }
  0x15   : > { %1233 = dma.vmem_to_smem (!%p1231_p6), %s215_s28, 16, %s1324_s29, [#allocation3]  }
  0x16   : > { %1309 = dma.done.wait (%p1234_p4), [#allocation3], 16  }
  0x17   : > { %1311 = vsyncadd (%p1234_p4), [#allocation3], 4294967280 }
  0x18   : > { %265 = sfence }
  0x19   : > { %p304_p7 = scmp.lt.s32.totalorder %s1314_s21, 1  ;;  %s2217_s1 = sld [smem:[#allocation66_spill]]  ;;  %v328_v8 = vlaneseq  ;;  %v1326_v12 = vmov 0.0  }
  0x1a   : > { %s1325_s10 = smov 127   ;;  %s2218_s2 = sld [smem:[#allocation67_spill]] }
  0x1b   : > { %s2397_s21 = smov (!%p304_p7, %s1314_s21), 1  ;;  %s1420_s14 = sld [smem:[#allocation2]]  ;;  %v329_v9 = vshrl.u32 %v328_v8, 7 }
  0x1c   : > { %2216 = sst [smem:[#allocation8_spill]] %s2397_s21  ;;  %s1223_s30 = sshll.u32 %s2397_s21, 5 }
  0x1d   : > { %s1422_s15 = sld [smem:[#allocation2 + $0x20]]  ;;  %vm331_vm0 = vcmp.eq.s32.totalorder %v329_v9, 7 }
  0x1e   : > { %s1424_s16 = sld [smem:[#allocation2 + $0x1]]  ;;  %v336_v13 = vsel %vm331_vm0, 1.0, %v1326_v12 }
  0x1f   : > { %s311_s9 = scalar_lea.vmem %s2217_s1, %s1223_s30  ;;  %s1426_s17 = sld [smem:[#allocation2 + $0x21]] }
  0x20   : > { %v1390_v0 = vld [vmem:[%s311_s9] sm:$0xff]  ;;  %v1392_v1 = vld [vmem:[%s311_s9 + $0x8] sm:$0xff]  ;;  %s1399_s13 = scalar_lea.vmem %s2218_s2, %s1223_s30  ;;  %v1401_v2 = vld [vmem:[%s311_s9 + $0x10] sm:$0xff]  ;;  %s1428_s18 = sld [smem:[#allocation2 + $0x2]] }
  0x21   : > { %387 = vrot.lane.b32.xlu0 %v1390_v0, %s1325_s10  ;;  %527 = vrot.lane.b32.xlu1 %v1392_v1, %s1325_s10  ;;  %2219 = sst [smem:[#allocation9_spill]] %s1399_s13  ;;  %v1405_v3 = vld [vmem:[%s1399_s13] sm:$0xff]  ;;  %v1408_v4 = vld [vmem:[%s1399_s13 + $0x8] sm:$0xff] }
  0x22   : > { %665 = vrot.lane.b32.xlu2 %v1401_v2, %s1325_s10  ;;  %v1411_v5 = vld [vmem:[%s1399_s13 + $0x10] sm:$0xff]  ;;  %v1416_v6 = vld [vmem:[%s311_s9 + $0x18] sm:$0xff]  ;;  %s1430_s19 = sld [smem:[#allocation2 + $0x22]]  ;;  %v398_v39 = vstv %s1420_s14 }
  0x23   : > { %2220 = vst [vmem:[#allocation10_spill] sm:$0xff] %v1416_v6  ;;  %v1181_v7 = vld [vmem:[%s1399_s13 + $0x18] sm:$0xff]  ;;  %2221 = sst [smem:[#allocation11_spill]] %s1422_s15  ;;  %v399_v56 = vmul.f32 %v398_v39, %v1390_v0 }
  0x24   : > { %s1432_s20 = sld [smem:[#allocation2 + $0x3]]  ;;  %v414_v43 = vstv %s1424_s16 }
  0x25   : > { %2222 = sst [smem:[#allocation12_spill]] %s1426_s17  ;;  %v415_v57 = vmul.f32 %v414_v43, %v1390_v0 }
  0x26   : > { %s1434_s24 = sld [smem:[#allocation2 + $0x23]]  ;;  %v430_v46 = vstv %s1428_s18 }
  0x27   : > { %s1436_s26 = sld [smem:[#allocation2 + $0x4]]  ;;  %v431_v58 = vmul.f32 %v430_v46, %v1390_v0 }
  0x28   : > { %2223 = sst [smem:[#allocation13_spill]] %s1430_s19 }
  0x29   : > { %394 = vrot.lane.b32.xlu0 %v1405_v3, %s1325_s10  ;;  %532 = vrot.lane.b32.xlu1 %v1408_v4, %s1325_s10  ;;  %s1438_s27 = sld [smem:[#allocation2 + $0x24]] }
  0x2a   : > { %670 = vrot.lane.b32.xlu2 %v1411_v5, %s1325_s10  ;;  %s1440_s28 = sld [smem:[#allocation2 + $0x5]]  ;;  %v446_v47 = vstv %s1432_s20 }
  0x2b   : > { %s1442_s29 = sld [smem:[#allocation2 + $0x25]]  ;;  %v447_v59 = vmul.f32 %v446_v47, %v1390_v0 }
  0x2c   : > { %2224 = sst [smem:[#allocation14_spill]] %s1434_s24 }
  0x2d   : > { %s1444_s30 = sld [smem:[#allocation2 + $0x6]]  ;;  %v462_v48 = vstv %s1436_s26 }
  0x2e   : > { %s1446_s7 = sld [smem:[#allocation2 + $0x26]]  ;;  %v463_v60 = vmul.f32 %v462_v48, %v1390_v0 }
  0x2f   : > { %2225 = sst [smem:[#allocation15_spill]] %s1438_s27 }
  0x30   : > { %s1448_s8 = sld [smem:[#allocation2 + $0x7]]  ;;  %v478_v49 = vstv %s1440_s28 }
  0x31   : > { %803 = vrot.lane.b32.xlu0 %v1416_v6, %s1325_s10  ;;  %808 = vrot.lane.b32.xlu1 %v1181_v7, %s1325_s10  ;;  %2226 = sst [smem:[#allocation16_spill]] %s1442_s29  ;;  %v479_v61 = vmul.f32 %v478_v49, %v1390_v0 }
  0x32   : > { %s1450_s9 = sld [smem:[#allocation2 + $0x27]] }
  0x33   : > { %s1452_s10 = sld [smem:[#allocation2 + $0x28]]  ;;  %v494_v50 = vstv %s1444_s30 }
  0x34   : > { %2227 = sst [smem:[#allocation17_spill]] %s1446_s7  ;;  %v495_v62 = vmul.f32 %v494_v50, %v1390_v0 }
  0x35   : > { %s1454_s11 = sld [smem:[#allocation2 + $0x29]] }
  0x36   : > { %s1456_s12 = sld [smem:[#allocation2 + $0x2a]]  ;;  %v510_v51 = vstv %s1448_s8 }
  0x37   : > { %s1458_s0 = sld [smem:[#allocation2 + $0x2b]]  ;;  %v511_v63 = vmul.f32 %v510_v51, %v1390_v0 }
  0x38   : > { %2228 = sst [smem:[#allocation18_spill]] %s1450_s9 }
  0x39   : > { %2229 = sst [smem:[#allocation19_spill]] %s1452_s10 }
  0x3a   : > { %s1460_s1 = sld [smem:[#allocation2 + $0x2c]] }
  0x3b   : > { %2230 = sst [smem:[#allocation20_spill]] %s1454_s11 }
  0x3c   : > { %2231 = sst [smem:[#allocation21_spill]] %s1456_s12 }
  0x3d   : > { %2232 = sst [smem:[#allocation22_spill]] %s1458_s0 }
  0x3e   : > { %s1462_s2 = sld [smem:[#allocation2 + $0x2d]] }
  0x3f   : > { %s1464_s25 = sld [smem:[#allocation2 + $0x2e]] }
  0x40   : > { %2233 = sst [smem:[#allocation23_spill]] %s1460_s1 }
  0x41   : > { %s1466_s22 = sld [smem:[#allocation2 + $0x2f]] }
  0x42   : > { %s1468_s23 = sld [smem:[#allocation2 + $0x40]] }
  0x43   : > { %s1470_s6 = sld [smem:[#allocation2 + $0x60]] }
  0x44   : > { %2234 = sst [smem:[#allocation24_spill]] %s1462_s2 }
  0x45   : > { %2235 = sst [smem:[#allocation25_spill]] %s1464_s25 }
  0x46   : > { %s1472_s21 = sld [smem:[#allocation2 + $0x41]] }
  0x47   : > { %2236 = sst [smem:[#allocation26_spill]] %s1466_s22 }
  0x48   : > { %s1474_s13 = sld [smem:[#allocation2 + $0x61]] }
  0x49   : > { %2237 = sst [smem:[#allocation27_spill]] %s1470_s6 }
  0x4a   : > { %s1476_s3 = sld [smem:[#allocation2 + $0x42]] }
  0x4b   : > { %s1478_s12 = sld [smem:[#allocation2 + $0x62]] }
  0x4c   : > { %2238 = sst [smem:[#allocation28_spill]] %s1472_s21 }
  0x4d   : > { %s1480_s0 = sld [smem:[#allocation2 + $0x43]] }
  0x4e   : > { %2239 = sst [smem:[#allocation29_spill]] %s1474_s13 }
  0x4f   : > { %s1482_s1 = sld [smem:[#allocation2 + $0x63]] }
  0x50   : > { %2240 = sst [smem:[#allocation30_spill]] %s1476_s3 }
  0x51   : > { %2241 = sst [smem:[#allocation31_spill]] %s1478_s12 }
  0x52   : > { %s1484_s2 = sld [smem:[#allocation2 + $0x44]] }
  0x53   : > { %2242 = sst [smem:[#allocation32_spill]] %s1480_s0 }
  0x54   : > { %s1486_s25 = sld [smem:[#allocation2 + $0x64]] }
  0x55   : > { %2243 = sst [smem:[#allocation33_spill]] %s1482_s1 }
  0x56   : > { %s1488_s22 = sld [smem:[#allocation2 + $0x45]] }
  0x57   : > { %s1490_s11 = sld [smem:[#allocation2 + $0x65]] }
  0x58   : > { %2244 = sst [smem:[#allocation34_spill]] %s1484_s2 }
  0x59   : > { %s1492_s6 = sld [smem:[#allocation2 + $0x46]] }
  0x5a   : > { %2245 = sst [smem:[#allocation35_spill]] %s1486_s25 }
  0x5b   : > { %s1494_s13 = sld [smem:[#allocation2 + $0x66]] }
  0x5c   : > { %2246 = sst [smem:[#allocation36_spill]] %s1488_s22 }
  0x5d   : > { %2247 = sst [smem:[#allocation37_spill]] %s1490_s11 }
  0x5e   : > { %s1496_s10 = sld [smem:[#allocation2 + $0x47]] }
  0x5f   : > { %2248 = sst [smem:[#allocation38_spill]] %s1492_s6 }
  0x60   : > { %s1498_s12 = sld [smem:[#allocation2 + $0x67]] }
  0x61   : > { %2249 = sst [smem:[#allocation39_spill]] %s1494_s13 }
  0x62   : > { %s1500_s0 = sld [smem:[#allocation2 + $0x8]] }
  0x63   : > { %s1502_s1 = sld [smem:[#allocation2 + $0x9]] }
  0x64   : > { %2250 = sst [smem:[#allocation40_spill]] %s1496_s10 }
  0x65   : > { %s1504_s2 = sld [smem:[#allocation2 + $0xa]] }
  0x66   : > { %2251 = sst [smem:[#allocation41_spill]] %s1498_s12 }
  0x67   : > { %s1506_s25 = sld [smem:[#allocation2 + $0xb]] }
  0x68   : > { %2252 = sst [smem:[#allocation42_spill]] %s1500_s0 }
  0x69   : > { %2253 = sst [smem:[#allocation43_spill]] %s1502_s1 }
  0x6a   : > { %s1508_s22 = sld [smem:[#allocation2 + $0xc]] }
  0x6b   : > { %2254 = sst [smem:[#allocation44_spill]] %s1504_s2 }
  0x6c   : > { %s1510_s11 = sld [smem:[#allocation2 + $0xd]] }
  0x6d   : > { %2255 = sst [smem:[#allocation45_spill]] %s1506_s25 }
  0x6e   : > { %s1512_s6 = sld [smem:[#allocation2 + $0xe]] }
  0x6f   : > { %s2259_s5 = sld [smem:[#allocation70_spill]] }
  0x70   : > { %2256 = sst [smem:[#allocation46_spill]] %s1508_s22 }
  0x71   : > { %s1520_s1 = sld [smem:[#allocation2 + $0xf]] }
  0x72   : > { %2257 = sst [smem:[#allocation47_spill]] %s1510_s11 }
  0x73   : > { %s1525_s22 = sld [smem:[#allocation2 + $0x30]] }
  0x74   : > { %2258 = sst [smem:[#allocation48_spill]] %s1512_s6 }
  0x75   : > { %v1263_v10 = vld [vmem:[%s2259_s5] ss:$0 sm:$0xff]  ;;  %v1265_v11 = vld [vmem:[%s2259_s5 + $0x1] ss:$0 sm:$0xff]  ;;  %v1267_v14 = vld [vmem:[%s2259_s5 + $0x2] ss:$0 sm:$0xff] }
  0x76   : > { %v1269_v15 = vld [vmem:[%s2259_s5 + $0x3] ss:$0 sm:$0xff]  ;;  %v1271_v16 = vld [vmem:[%s2259_s5 + $0x4] ss:$0 sm:$0xff]  ;;  %s1533_s0 = sld [smem:[#allocation2 + $0x31]]  ;;  %v341_v19 = vmul.f32 %v1263_v10, %v336_v13  ;;  %v347_v22 = vmul.f32 %v1265_v11, %v336_v13  ;;  %v353_v23 = vmul.f32 %v1267_v14, %v336_v13 }
  0x77   : > { %2260 = sst [smem:[#allocation49_spill]] %s1520_s1  ;;  %v1273_v17 = vld [vmem:[%s2259_s5 + $0x5] ss:$0 sm:$0xff]  ;;  %v1275_v18 = vld [vmem:[%s2259_s5 + $0x6] ss:$0 sm:$0xff]  ;;  %v359_v26 = vmul.f32 %v1269_v15, %v336_v13  ;;  %v365_v28 = vmul.f32 %v1271_v16, %v336_v13 }
  0x78   : > { %s1541_s2 = sld [smem:[#allocation2 + $0x32]]  ;;  %v1277_v25 = vld [vmem:[%s2259_s5 + $0x7] ss:$0 sm:$0xff]  ;;  %v371_v30 = vmul.f32 %v1273_v17, %v336_v13  ;;  %v377_v32 = vmul.f32 %v1275_v18, %v336_v13  ;;  %v406_v18 = vstv %s1468_s23 }
  0x79   : > { %s2262_s4 = sld [smem:[#allocation69_spill]]  ;;  %v383_v37 = vmul.f32 %v1277_v25, %v336_v13 }
  0x7a   : > { %s1549_s10 = sld [smem:[#allocation2 + $0x33]] }
  0x7b   : > { %s1573_s25 = sld [smem:[#allocation2 + $0x36]] }
  0x7c   : > { %s1575_s6 = sld [smem:[#allocation2 + $0x37]] }
  0x7d   : > { %s1581_s1 = sld [smem:[#allocation2 + $0x48]] }
  0x7e   : > { %2261 = sst [smem:[#allocation50_spill]] %s1541_s2 }
  0x7f   : > { %v1264_v20 = vld [vmem:[%s2262_s4] ss:$0 sm:$0xff]  ;;  %v1266_v21 = vld [vmem:[%s2262_s4 + $0x1] ss:$0 sm:$0xff]  ;;  %v1268_v24 = vld [vmem:[%s2262_s4 + $0x2] ss:$0 sm:$0xff] }
  0x80   : > { %2263 = sst [smem:[#allocation51_spill]] %s1549_s10  ;;  %v1270_v27 = vld [vmem:[%s2262_s4 + $0x3] ss:$0 sm:$0xff]  ;;  %v1272_v29 = vld [vmem:[%s2262_s4 + $0x4] ss:$0 sm:$0xff]  ;;  %v343_v34 = vadd.f32 %v1264_v20, %v341_v19  ;;  %v349_v35 = vadd.f32 %v1266_v21, %v347_v22  ;;  %v355_v36 = vadd.f32 %v1268_v24, %v353_v23 }
  0x81   : > { %s1557_s2 = sld [smem:[#allocation2 + $0x34]]  ;;  %v1274_v31 = vld [vmem:[%s2262_s4 + $0x5] ss:$0 sm:$0xff]  ;;  %v1276_v33 = vld [vmem:[%s2262_s4 + $0x6] ss:$0 sm:$0xff]  ;;  %v361_v40 = vadd.f32 %v1270_v27, %v359_v26  ;;  %v367_v41 = vadd.f32 %v1272_v29, %v365_v28 }
  0x82   : > { %s1565_s10 = sld [smem:[#allocation2 + $0x35]]  ;;  %v1278_v38 = vld [vmem:[%s2262_s4 + $0x7] ss:$0 sm:$0xff]  ;;  %v373_v44 = vadd.f32 %v1274_v31, %v371_v30  ;;  %v379_v45 = vadd.f32 %v1276_v33, %v377_v32  ;;  %v1620_v11 = vadd.f32 %v399_v56, %v343_v34  ;;  %v1622_v12 = vadd.f32 %v415_v57, %v349_v35 }
  0x83   : > { %s1585_s12 = sld [smem:[#allocation2 + $0x68]]  ;;  %v385_v52 = vadd.f32 %v1278_v38, %v383_v37  ;;  %v1624_v0 = vadd.f32 %v431_v58, %v355_v36  ;;  %v1626_v13 = vadd.f32 %v447_v59, %v361_v40  ;;  %v1630_v14 = vadd.f32 %v463_v60, %v367_v41 }
  0x84   : > { %s1589_s3 = sld [smem:[#allocation2 + $0x49]]  ;;  %v1632_v15 = vadd.f32 %v479_v61, %v373_v44  ;;  %v1634_v16 = vadd.f32 %v495_v62, %v379_v45  ;;  %v1659_v30 = vmul.f32 %v406_v18, %v1405_v3 }
  0x85   : > { %s1595_s14 = sld [smem:[#allocation2 + $0x69]]  ;;  %v1636_v17 = vadd.f32 %v511_v63, %v385_v52 }
  0x86   : > { %s1600_s16 = sld [smem:[#allocation2 + $0x4a]] }
  0x87   : > { %s1606_s18 = sld [smem:[#allocation2 + $0x6a]] }
  0x88   : > { %s1612_s20 = sld [smem:[#allocation2 + $0x4b]] }
  0x89   : > { %s2267_s26 = sld [smem:[#allocation28_spill]] }
  0x8a   : > { %s2268_s28 = sld [smem:[#allocation30_spill]]  ;;  %v560_v48 = vstv %s1589_s3 }
  0x8b   : > { %s2269_s30 = sld [smem:[#allocation32_spill]]  ;;  %v1771_v40 = vmul.f32 %v1408_v4, %v560_v48 }
  0x8c   : > { %2264 = sst [smem:[#allocation52_spill]] %s1600_s16 }
  0x8d   : > { %2265 = sst [smem:[#allocation53_spill]] %s1606_s18 }
  0x8e   : > { %2266 = sst [smem:[#allocation54_spill]] %s1612_s20 }
  0x8f   : > { %s1618_s8 = sld [smem:[#allocation2 + $0x6b]]  ;;  %v422_v19 = vstv %s2267_s26 }
  0x90   : > { %s1628_s5 = sld [smem:[#allocation2 + $0x4c]]  ;;  %v438_v20 = vstv %s2268_s28  ;;  %v1663_v32 = vmul.f32 %v422_v19, %v1405_v3 }
  0x91   : > { %s1638_s24 = sld [smem:[#allocation2 + $0x6c]]  ;;  %v454_v21 = vstv %s2269_s30  ;;  %v1669_v34 = vmul.f32 %v438_v20, %v1405_v3 }
  0x92   : > { %s1644_s15 = sld [smem:[#allocation2 + $0x4d]]  ;;  %v1677_v38 = vmul.f32 %v454_v21, %v1405_v3 }
  0x93   : > { %s2284_s20 = sld [smem:[#allocation36_spill]]  ;;  %v528_v10 = vpop.permute.xlu1 %527 }
  0x94   : > { %s1650_s18 = sld [smem:[#allocation2 + $0x6d]] }
  0x95   : > { %2270 = sst [smem:[#allocation28_spill]] %s1618_s8 }
  0x96   : > { %2275 = sst [smem:[#allocation30_spill]] %s1628_s5 }
  0x97   : > { %s2283_s8 = sld [smem:[#allocation34_spill]] }
  0x98   : > { %s2285_s16 = sld [smem:[#allocation33_spill]] }
  0x99   : > { %s2287_s26 = sld [smem:[#allocation38_spill]]  ;;  %v486_v37 = vstv %s2284_s20 }
  0x9a   : > { %s1656_s28 = sld [smem:[#allocation2 + $0x4e]]  ;;  %v1693_v47 = vmul.f32 %v486_v37, %v1405_v3 }
  0x9b   : > { %s2288_s30 = sld [smem:[#allocation37_spill]] }
  0x9c   : > { %s2289_s13 = sld [smem:[#allocation40_spill]] }
  0x9d   : > { %s2290_s4 = sld [smem:[#allocation42_spill]]  ;;  %v470_v36 = vstv %s2283_s8 }
  0x9e   : > { %s1666_s29 = sld [smem:[#allocation2 + $0x6e]]  ;;  %v1685_v43 = vmul.f32 %v470_v36, %v1405_v3 }
  0x9f   : > { %s2292_s7 = sld [smem:[#allocation39_spill]]  ;;  %v502_v41 = vstv %s2287_s26 }
  0xa0   : > { %s2293_s27 = sld [smem:[#allocation43_spill]]  ;;  %v1701_v51 = vmul.f32 %v502_v41, %v1405_v3  ;;  %v678_v41 = vstv %s1525_s22  ;;  %v640_v29 = vstv %s1656_s28 }
  0xa1   : > { %s2294_s9 = sld [smem:[#allocation44_spill]] }
  0xa2   : > { %s1674_s11 = sld [smem:[#allocation2 + $0x4f]]  ;;  %v518_v45 = vstv %s2289_s13 }
  0xa3   : > { %s2295_s19 = sld [smem:[#allocation41_spill]]  ;;  %v536_v46 = vstv %s2290_s4  ;;  %v1709_v58 = vmul.f32 %v518_v45, %v1405_v3  ;;  %v694_v45 = vstv %s1533_s0 }
  0xa4   : > { %2291 = sst [smem:[#allocation32_spill]] %s1666_s29  ;;  %v1712_v59 = vmul.f32 %v1392_v1, %v536_v46 }
  0xa5   : > { %s2296_s21 = sld [smem:[#allocation45_spill]] }
  0xa6   : > { %s2297_s17 = sld [smem:[#allocation46_spill]]  ;;  %v552_v49 = vstv %s2293_s27 }
  0xa7   : > { %s1682_s29 = sld [smem:[#allocation2 + $0x6f]]  ;;  %v568_v50 = vstv %s2294_s9  ;;  %v1719_v62 = vmul.f32 %v1392_v1, %v552_v49 }
  0xa8   : > { %s2298_s8 = sld [smem:[#allocation47_spill]]  ;;  %v1722_v63 = vmul.f32 %v1392_v1, %v568_v50  ;;  %v666_v50 = vpop.permute.xlu2 %665  ;;  %v656_v28 = vstv %s1674_s11 }
  0xa9   : > { %s2299_s20 = sld [smem:[#allocation48_spill]] }
  0xaa   : > { %s1690_s5 = sld [smem:[#allocation2 + $0x10]] }
  0xab   : > { %s2300_s23 = sld [smem:[#allocation49_spill]]  ;;  %v584_v56 = vstv %s2296_s21 }
  0xac   : > { %s1698_s26 = sld [smem:[#allocation2 + $0x11]]  ;;  %v600_v57 = vstv %s2297_s17  ;;  %v1725_v3 = vmul.f32 %v1392_v1, %v584_v56  ;;  %v742_v56 = vstv %s1557_s2 }
  0xad   : > { %s1706_s13 = sld [smem:[#allocation2 + $0x12]]  ;;  %v1736_v20 = vmul.f32 %v1392_v1, %v600_v57  ;;  %v758_v57 = vstv %s1565_s10 }
  0xae   : > { %v616_v60 = vstv %s2298_s8  ;;  %s2301_s4 = sld [smem:[#allocation50_spill]] }
  0xaf   : > { %v632_v61 = vstv %s2299_s20  ;;  %s2302_s27 = sld [smem:[#allocation51_spill]]  ;;  %v1739_v21 = vmul.f32 %v1392_v1, %v616_v60  ;;  %v774_v60 = vstv %s1573_s25 }
  0xb0   : > { %s1716_s9 = sld [smem:[#allocation2 + $0x13]]  ;;  %v1742_v36 = vmul.f32 %v1392_v1, %v632_v61  ;;  %v790_v61 = vstv %s1575_s6  ;;  %v674_v26 = vstv %s1690_s5 }
  0xb1   : > { %v648_v18 = vstv %s2300_s23  ;;  %s1728_s17 = sld [smem:[#allocation2 + $0x14]] }
  0xb2   : > { %s2303_s20 = sld [smem:[#allocation68_spill]]  ;;  %v1745_v37 = vmul.f32 %v1392_v1, %v648_v18  ;;  %v544_v18 = vstv %s1581_s1 }
  0xb3   : > { %s1747_s23 = sld [smem:[#allocation2 + $0x15]]  ;;  %v1768_v44 = vmul.f32 %v1408_v4, %v544_v18  ;;  %v706_v25 = vstv %s1706_s13 }
  0xb4   : > { %v710_v46 = vstv %s2301_s4  ;;  %s2304_s21 = sld [smem:[#allocation52_spill]] }
  0xb5   : > { %v726_v49 = vstv %s2302_s27  ;;  %s1753_s8 = sld [smem:[#allocation2 + $0x16]] }
  0xb6   : > { %s1765_s22 = sld [smem:[#allocation2 + $0x50]]  ;;  %v722_v27 = vstv %s1716_s9 }
  0xb7   : > { %s2305_s0 = sld [smem:[#allocation53_spill]] }
  0xb8   : > { %v1733_v19 = vld [vmem:[%s2303_s20] ss:$0 sm:$0xff]  ;;  %s1759_s20 = sld [smem:[#allocation2 + $0x17]] }
  0xb9   : > { %v667_v1 = vmul.f32 %v1733_v19, %v666_v50  ;;  %s2306_s2 = sld [smem:[#allocation54_spill]]  ;;  %v529_v7 = vmul.f32 %v1733_v19, %v528_v10 }
  0xba   : > { %s2307_s10 = sld [smem:[#allocation28_spill]]  ;;  %v576_v35 = vstv %s2304_s21 }
  0xbb   : > { %s1775_s25 = sld [smem:[#allocation2 + $0x70]]  ;;  %v1777_v33 = vmul.f32 %v678_v41, %v667_v1  ;;  %v1779_v50 = vmul.f32 %v694_v45, %v667_v1  ;;  %v1781_v52 = vmul.f32 %v710_v46, %v667_v1  ;;  %v1783_v18 = vmul.f32 %v726_v49, %v667_v1 }
  0xbc   : > { %s2309_s6 = sld [smem:[#allocation30_spill]]  ;;  %v1787_v48 = vmul.f32 %v742_v56, %v667_v1  ;;  %v1789_v39 = vmul.f32 %v758_v57, %v667_v1  ;;  %v1791_v31 = vmul.f32 %v774_v60, %v667_v1  ;;  %v1793_v41 = vmul.f32 %v790_v61, %v667_v1 }
  0xbd   : > { %2308 = vst [vmem:[#allocation55_spill] sm:$0xff] %v1777_v33  ;;  %s1785_s1 = sld [smem:[#allocation2 + $0x51]]  ;;  %v1798_v45 = vmul.f32 %v1408_v4, %v576_v35  ;;  %v624_v1 = vstv %s1644_s15  ;;  %v1836_v56 = vmul.f32 %v1401_v2, %v674_v26  ;;  %v1846_v61 = vmul.f32 %v1401_v2, %v722_v27  ;;  %v388_v27 = vpop.permute.xlu0 %387 }
  0xbe   : > { %2310 = vst [vmem:[#allocation56_spill] sm:$0xff] %v1779_v50  ;;  %s1795_s3 = sld [smem:[#allocation2 + $0x71]]  ;;  %v1817_v46 = vmul.f32 %v1408_v4, %v624_v1  ;;  %v690_v1 = vstv %s1698_s26  ;;  %v770_v23 = vstv %s1753_s8  ;;  %v786_v22 = vstv %s1759_s20 }
  0xbf   : > { %2311 = vst [vmem:[#allocation57_spill] sm:$0xff] %v1781_v52  ;;  %s2317_s4 = sld [smem:[#allocation32_spill]]  ;;  %v592_v49 = vstv %s2306_s2  ;;  %v1839_v24 = vmul.f32 %v1401_v2, %v690_v1  ;;  %v1862_v9 = vmul.f32 %v1401_v2, %v786_v22 }
  0xc0   : > { %2312 = vst [vmem:[#allocation58_spill] sm:$0xff] %v1783_v18  ;;  %s1803_s27 = sld [smem:[#allocation2 + $0x52]]  ;;  %v1806_v57 = vmul.f32 %v1408_v4, %v592_v49  ;;  %v1824_v49 = vmul.f32 %v1408_v4, %v640_v29  ;;  %v1842_v29 = vmul.f32 %v1401_v2, %v706_v25  ;;  %v1858_v25 = vmul.f32 %v1401_v2, %v770_v23 }
  0xc1   : > { %2313 = vst [vmem:[#allocation59_spill] sm:$0xff] %v1787_v48  ;;  %s1811_s21 = sld [smem:[#allocation2 + $0x72]]  ;;  %v392_v23 = vmul.f32 %v1733_v19, %v388_v27 }
  0xc2   : > { %2314 = vst [vmem:[#allocation60_spill] sm:$0xff] %v1789_v39  ;;  %v608_v60 = vstv %s2309_s6  ;;  %s1821_s2 = sld [smem:[#allocation2 + $0x53]] }
  0xc3   : > { %2315 = vst [vmem:[#allocation61_spill] sm:$0xff] %v1791_v31  ;;  %v1814_v35 = vmul.f32 %v1408_v4, %v608_v60  ;;  %v1830_v60 = vmul.f32 %v1408_v4, %v656_v28  ;;  %v738_v4 = vstv %s1728_s17  ;;  %v754_v28 = vstv %s1747_s23  ;;  %s2318_s5 = sld [smem:[#allocation11_spill]] }
  0xc4   : > { %2316 = vst [vmem:[#allocation62_spill] sm:$0xff] %v1793_v41  ;;  %v1852_v26 = vmul.f32 %v1401_v2, %v738_v4  ;;  %v1855_v1 = vmul.f32 %v1401_v2, %v754_v28  ;;  %s2319_s15 = sld [smem:[#allocation12_spill]]  ;;  %v682_v4 = vstv %s1765_s22  ;;  %v698_v28 = vstv %s1785_s1 }
  0xc5   : > { %s2320_s11 = sld [smem:[#allocation13_spill]]  ;;  %v1870_v55 = vmul.f32 %v1411_v5, %v682_v4  ;;  %v1873_v54 = vmul.f32 %v1411_v5, %v698_v28 }
  0xc6   : > { %s2321_s28 = sld [smem:[#allocation14_spill]] }
  0xc7   : > { %s2322_s26 = sld [smem:[#allocation15_spill]]  ;;  %2326 = vst [vmem:[#allocation63_spill] sm:$0xff] %v1870_v55 }
  0xc8   : > { %s2323_s13 = sld [smem:[#allocation16_spill]]  ;;  %2327 = vst [vmem:[#allocation64_spill] sm:$0xff] %v1873_v54 }
  0xc9   : > { %s2324_s9 = sld [smem:[#allocation17_spill]]  ;;  %v2328_v6 = vstv %s2318_s5 }
  0xca   : > { %s2325_s17 = sld [smem:[#allocation18_spill]]  ;;  %v403_v41 = vmul.f32 %v2328_v6, %v392_v23  ;;  %v2329_v8 = vstv %s2319_s15 }
  0xcb   : > { %s2330_s23 = sld [smem:[#allocation19_spill]]  ;;  %v419_v31 = vmul.f32 %v2329_v8, %v392_v23  ;;  %v2331_v39 = vstv %s2320_s11 }
  0xcc   : > { %s2332_s8 = sld [smem:[#allocation20_spill]]  ;;  %v435_v27 = vmul.f32 %v2331_v39, %v392_v23  ;;  %v2333_v48 = vstv %s2321_s28  ;;  %v404_v8 = vadd.f32 %v403_v41, %v1620_v11 }
  0xcd   : > { %s2334_s20 = sld [smem:[#allocation21_spill]]  ;;  %v451_v10 = vmul.f32 %v2333_v48, %v392_v23  ;;  %v2335_v4 = vstv %s2322_s26  ;;  %v420_v39 = vadd.f32 %v419_v31, %v1622_v12 }
  0xce   : > { %s2336_s22 = sld [smem:[#allocation22_spill]]  ;;  %v467_v55 = vmul.f32 %v2335_v4, %v392_v23  ;;  %v2337_v28 = vstv %s2323_s13  ;;  %v436_v54 = vadd.f32 %v435_v27, %v1624_v0 }
  0xcf   : > { %s2338_s6 = sld [smem:[#allocation23_spill]]  ;;  %v483_v53 = vmul.f32 %v2337_v28, %v392_v23  ;;  %v2339_v2 = vstv %s2324_s9  ;;  %v452_v48 = vadd.f32 %v451_v10, %v1626_v13 }
  0xd0   : > { %s2340_s1 = sld [smem:[#allocation24_spill]]  ;;  %v499_v22 = vmul.f32 %v2339_v2, %v392_v23  ;;  %v2341_v42 = vstv %s2325_s17  ;;  %v468_v4 = vadd.f32 %v467_v55, %v1630_v14  ;;  %v440_v27 = vadd.f32 %v1669_v34, %v436_v54 }
  0xd1   : > { %s2342_s5 = sld [smem:[#allocation25_spill]]  ;;  %v515_v6 = vmul.f32 %v2341_v42, %v392_v23  ;;  %v484_v18 = vadd.f32 %v483_v53, %v1632_v15  ;;  %v2344_v52 = vstv %s2330_s23  ;;  %v456_v10 = vadd.f32 %v1677_v38, %v452_v48 }
  0xd2   : > { %s2343_s15 = sld [smem:[#allocation26_spill]]  ;;  %v500_v28 = vadd.f32 %v499_v22, %v1634_v16  ;;  %v541_v50 = vmul.f32 %v2344_v52, %v529_v7  ;;  %v2345_v42 = vstv %s2332_s8  ;;  %v408_v52 = vadd.f32 %v1659_v30, %v404_v8 }
  0xd3   : > { %v516_v2 = vadd.f32 %v515_v6, %v1636_v17  ;;  %v557_v23 = vmul.f32 %v2345_v42, %v529_v7  ;;  %v2346_v33 = vstv %s2334_s20  ;;  %s2349_s11 = sld [smem:[#allocation27_spill]]  ;;  %v395_v17 = vpop.permute.xlu0 %394  ;;  %v424_v22 = vadd.f32 %v1663_v32, %v420_v39 }
  0xd4   : > { %v573_v11 = vmul.f32 %v2346_v33, %v529_v7  ;;  %v2347_v41 = vstv %s2336_s22  ;;  %s2351_s28 = sld [smem:[#allocation29_spill]]  ;;  %v396_v33 = vmul.f32 %v1733_v19, %v395_v17  ;;  %v472_v6 = vadd.f32 %v1685_v43, %v468_v4 }
  0xd5   : > { %v589_v12 = vmul.f32 %v2347_v41, %v529_v7  ;;  %v2348_v31 = vstv %s2338_s6  ;;  %s2353_s26 = sld [smem:[#allocation31_spill]]  ;;  %v504_v42 = vadd.f32 %v1701_v51, %v500_v28  ;;  %v2359_v39 = vstv %s2285_s16 }
  0xd6   : > { %v605_v0 = vmul.f32 %v2348_v31, %v529_v7  ;;  %v2350_v13 = vstv %s2340_s1  ;;  %s2355_s13 = sld [smem:[#allocation35_spill]]  ;;  %v459_v54 = vmul.f32 %v2359_v39, %v396_v33  ;;  %v2361_v43 = vstv %s2288_s30 }
  0xd7   : > { %v621_v55 = vmul.f32 %v2350_v13, %v529_v7  ;;  %v2352_v14 = vstv %s2342_s5  ;;  %s1927_s9 = sld [smem:[#allocation2 + $0x73]]  ;;  %v491_v48 = vmul.f32 %v2361_v43, %v396_v33  ;;  %v520_v51 = vadd.f32 %v1709_v58, %v516_v2 }
  0xd8   : > { %v1917_v53 = vmul.f32 %v2352_v14, %v529_v7  ;;  %v2354_v15 = vstv %s2343_s15  ;;  %s1933_s17 = sld [smem:[#allocation2 + $0x54]] }
  0xd9   : > { %v1921_v16 = vmul.f32 %v2354_v15, %v529_v7  ;;  %v488_v7 = vadd.f32 %v1693_v47, %v484_v18  ;;  %v2356_v41 = vstv %s2349_s11  ;;  %s1943_s23 = sld [smem:[#allocation2 + $0x74]]  ;;  %v2362_v47 = vstv %s2292_s7 }
  0xda   : > { %v411_v31 = vmul.f32 %v2356_v41, %v396_v33  ;;  %v2357_v30 = vstv %s2351_s28  ;;  %v507_v18 = vmul.f32 %v2362_v47, %v396_v33  ;;  %s1952_s8 = sld [smem:[#allocation2 + $0x55]]  ;;  %v460_v15 = vadd.f32 %v459_v54, %v456_v10 }
  0xdb   : > { %v427_v8 = vmul.f32 %v2357_v30, %v396_v33  ;;  %v2358_v13 = vstv %s2353_s26  ;;  %s1954_s20 = sld [smem:[#allocation2 + $0x75]]  ;;  %v492_v41 = vadd.f32 %v491_v48, %v488_v7 }
  0xdc   : > { %v443_v32 = vmul.f32 %v2358_v13, %v396_v33  ;;  %v2360_v34 = vstv %s2355_s13  ;;  %v412_v4 = vadd.f32 %v411_v31, %v408_v52  ;;  %v508_v30 = vadd.f32 %v507_v18, %v504_v42  ;;  %s1958_s16 = sld [smem:[#allocation2 + $0x56]] }
  0xdd   : > { %v475_v38 = vmul.f32 %v2360_v34, %v396_v33  ;;  %v428_v28 = vadd.f32 %v427_v8, %v424_v22  ;;  %v2363_v13 = vstv %s2295_s19  ;;  %v533_v34 = vpop.permute.xlu1 %532  ;;  %v586_v52 = vadd.f32 %v1725_v3, %v460_v15  ;;  %s1964_s7 = sld [smem:[#allocation2 + $0x76]] }
  0xde   : > { %v444_v14 = vadd.f32 %v443_v32, %v440_v27  ;;  %v523_v39 = vmul.f32 %v2363_v13, %v396_v33  ;;  %v538_v43 = vadd.f32 %v1712_v59, %v412_v4  ;;  %v618_v10 = vadd.f32 %v1739_v21, %v492_v41  ;;  %s1969_s19 = sld [smem:[#allocation2 + $0x57]] }
  0xdf   : > { %v476_v17 = vadd.f32 %v475_v38, %v472_v6  ;;  %v554_v58 = vadd.f32 %v1719_v62, %v428_v28  ;;  %v634_v33 = vadd.f32 %v1742_v36, %v508_v30  ;;  %v534_v59 = vmul.f32 %v1733_v19, %v533_v34  ;;  %s1972_s30 = sld [smem:[#allocation2 + $0x77]] }
  0xe0   : > { %v570_v2 = vadd.f32 %v1722_v63, %v444_v14  ;;  %v524_v22 = vadd.f32 %v523_v39, %v520_v51  ;;  %v542_v62 = vadd.f32 %v541_v50, %v538_v43  ;;  %v590_v7 = vadd.f32 %v589_v12, %v586_v52  ;;  %s1975_s22 = sld [smem:[#allocation2 + $0x18]] }
  0xe1   : > { %v602_v27 = vadd.f32 %v1736_v20, %v476_v17  ;;  %v558_v63 = vadd.f32 %v557_v23, %v554_v58  ;;  %v622_v21 = vadd.f32 %v621_v55, %v618_v10  ;;  %v2364_v42 = vstv %s1585_s12  ;;  %s1983_s6 = sld [smem:[#allocation2 + $0x38]]  ;;  %v671_v10 = vpop.permute.xlu2 %670 }
  0xe2   : > { %v574_v3 = vadd.f32 %v573_v11, %v570_v2  ;;  %v650_v6 = vadd.f32 %v1745_v37, %v524_v22  ;;  %v546_v36 = vadd.f32 %v1768_v44, %v542_v62  ;;  %v549_v31 = vmul.f32 %v2364_v42, %v534_v59  ;;  %s1991_s1 = sld [smem:[#allocation2 + $0x19]]  ;;  %v2375_v42 = vld [vmem:[#allocation56_spill] sm:$0xff] }
  0xe3   : > { %v606_v20 = vadd.f32 %v605_v0, %v602_v27  ;;  %v562_v8 = vadd.f32 %v1771_v40, %v558_v63  ;;  %v2365_v50 = vstv %s1595_s14  ;;  %v2366_v37 = vstv %s2305_s0  ;;  %s1996_s12 = sld [smem:[#allocation2 + $0x39]] }
  0xe4   : > { %v565_v23 = vmul.f32 %v2365_v50, %v534_v59  ;;  %v578_v11 = vadd.f32 %v1798_v45, %v574_v3  ;;  %v581_v12 = vmul.f32 %v2366_v37, %v534_v59  ;;  %v594_v0 = vadd.f32 %v1806_v57, %v590_v7  ;;  %s2001_s14 = sld [smem:[#allocation2 + $0x1a]]  ;;  %v2378_v37 = vld [vmem:[#allocation59_spill] sm:$0xff] }
  0xe5   : > { %v2367_v55 = vstv %s2307_s10  ;;  %v550_v44 = vadd.f32 %v549_v31, %v546_v36  ;;  %v610_v40 = vadd.f32 %v1814_v35, %v606_v20  ;;  %v2368_v38 = vstv %s1638_s24  ;;  %s2007_s24 = sld [smem:[#allocation2 + $0x3a]] }
  0xe6   : > { %v597_v32 = vmul.f32 %v2367_v55, %v534_v59  ;;  %v566_v54 = vadd.f32 %v565_v23, %v562_v8  ;;  %v613_v48 = vmul.f32 %v2368_v38, %v534_v59  ;;  %v582_v47 = vadd.f32 %v581_v12, %v578_v11  ;;  %s2029_s0 = sld [smem:[#allocation2 + $0x1c]]  ;;  %v2376_v8 = vld [vmem:[#allocation57_spill] sm:$0xff]  ;;  %v2377_v23 = vld [vmem:[#allocation58_spill] sm:$0xff] }
  0xe7   : > { %v626_v18 = vadd.f32 %v1817_v46, %v622_v21  ;;  %v2369_v51 = vstv %s1650_s18  ;;  %v638_v28 = vadd.f32 %v1917_v53, %v634_v33  ;;  %v2370_v14 = vstv %s2317_s4  ;;  %s2013_s18 = sld [smem:[#allocation2 + $0x1b]] }
  0xe8   : > { %v598_v45 = vadd.f32 %v597_v32, %v594_v0  ;;  %v629_v4 = vmul.f32 %v2369_v51, %v534_v59  ;;  %v614_v57 = vadd.f32 %v613_v48, %v610_v40  ;;  %v645_v15 = vmul.f32 %v2370_v14, %v534_v59  ;;  %s2033_s10 = sld [smem:[#allocation2 + $0x3c]]  ;;  %v2379_v0 = vld [vmem:[#allocation60_spill] sm:$0xff] }
  0xe9   : > { %v654_v35 = vadd.f32 %v1921_v16, %v650_v6  ;;  %v2371_v41 = vstv %s1682_s29  ;;  %v676_v46 = vadd.f32 %v1836_v56, %v550_v44  ;;  %v692_v13 = vadd.f32 %v1839_v24, %v566_v54  ;;  %s2019_s29 = sld [smem:[#allocation2 + $0x3b]]  ;;  %v2382_v40 = vld [vmem:[#allocation64_spill] sm:$0xff] }
  0xea   : > { %v630_v17 = vadd.f32 %v629_v4, %v626_v18  ;;  %v661_v30 = vmul.f32 %v2371_v41, %v534_v59  ;;  %v642_v53 = vadd.f32 %v1824_v49, %v638_v28  ;;  %v708_v16 = vadd.f32 %v1842_v29, %v582_v47  ;;  %s2039_s4 = sld [smem:[#allocation2 + $0x1d]] }
  0xeb   : > { %v658_v39 = vadd.f32 %v1830_v60, %v654_v35  ;;  %v724_v34 = vadd.f32 %v1846_v61, %v598_v45  ;;  %v740_v56 = vadd.f32 %v1852_v26, %v614_v57  ;;  %v2372_v24 = vstv %s1803_s27  ;;  %s2045_s27 = sld [smem:[#allocation2 + $0x3d]] }
  0xec   : > { %v756_v43 = vadd.f32 %v1855_v1, %v630_v17  ;;  %v715_v58 = vmul.f32 %v1411_v5, %v2372_v24  ;;  %v2373_v2 = vstv %s1821_s2  ;;  %v646_v60 = vadd.f32 %v645_v15, %v642_v53  ;;  %s2051_s2 = sld [smem:[#allocation2 + $0x1e]]  ;;  %v2385_v53 = vld [vmem:[#allocation61_spill] sm:$0xff] }
  0xed   : > { %v731_v49 = vmul.f32 %v1411_v5, %v2373_v2  ;;  %v662_v29 = vadd.f32 %v661_v30, %v658_v39  ;;  %v734_v52 = vstv %s1927_s9  ;;  %v746_v61 = vstv %s1933_s17  ;;  %s2057_s5 = sld [smem:[#allocation2 + $0x3e]] }
  0xee   : > { %v747_v26 = vmul.f32 %v1411_v5, %v746_v61  ;;  %v750_v1 = vstv %s1943_s23  ;;  %v762_v22 = vstv %s1952_s8  ;;  %v766_v27 = vstv %s1954_s20  ;;  %s2063_s15 = sld [smem:[#allocation2 + $0x1f]] }
  0xef   : > { %v772_v33 = vadd.f32 %v1858_v25, %v646_v60  ;;  %v788_v59 = vadd.f32 %v1862_v9, %v662_v29  ;;  %v763_v62 = vmul.f32 %v1411_v5, %v762_v22  ;;  %v778_v63 = vstv %s1958_s16  ;;  %v2374_v9 = vld [vmem:[#allocation55_spill] sm:$0xff]  ;;  %s2071_s11 = sld [smem:[#allocation2 + $0x3f]]  ;;  %v2387_v29 = vld [vmem:[#allocation10_spill] sm:$0xff] }
  0xf0   : > { %v779_v3 = vmul.f32 %v1411_v5, %v778_v63  ;;  %v782_v6 = vstv %s1964_s7  ;;  %v794_v7 = vstv %s1969_s19  ;;  %v798_v20 = vstv %s1972_s30  ;;  %s2075_s28 = sld [smem:[#allocation2 + $0x58]] }
  0xf1   : > { %v795_v21 = vmul.f32 %v1411_v5, %v794_v7  ;;  %v672_v25 = vmul.f32 %v1733_v19, %v671_v10  ;;  %v680_v36 = vadd.f32 %v2374_v9, %v676_v46  ;;  %v696_v31 = vadd.f32 %v2375_v42, %v692_v13  ;;  %v2380_v5 = vld [vmem:[#allocation63_spill] sm:$0xff]  ;;  %s2087_s26 = sld [smem:[#allocation2 + $0x5a]] }
  0xf2   : > { %v712_v50 = vadd.f32 %v2376_v8, %v708_v16  ;;  %v728_v11 = vadd.f32 %v2377_v23, %v724_v34  ;;  %v744_v12 = vadd.f32 %v2378_v37, %v740_v56  ;;  %v760_v55 = vadd.f32 %v2379_v0, %v756_v43  ;;  %v2386_v34 = vld [vmem:[#allocation62_spill] sm:$0xff]  ;;  %s2091_s13 = sld [smem:[#allocation2 + $0x7a]] }
  0xf3   : > { %v684_v32 = vadd.f32 %v2380_v5, %v680_v36  ;;  %v2381_v44 = vstv %s1775_s25  ;;  %v700_v38 = vadd.f32 %v2382_v40, %v696_v31  ;;  %v2383_v48 = vstv %s1795_s3  ;;  %s2077_s25 = sld [smem:[#allocation2 + $0x78]] }
  0xf4   : > { %v687_v54 = vmul.f32 %v2381_v44, %v672_v25  ;;  %v703_v47 = vmul.f32 %v2383_v48, %v672_v25  ;;  %v716_v45 = vadd.f32 %v715_v58, %v712_v50  ;;  %v2384_v18 = vstv %s1811_s21  ;;  %s2079_s3 = sld [smem:[#allocation2 + $0x59]] }
  0xf5   : > { %v719_v51 = vmul.f32 %v2384_v18, %v672_v25  ;;  %v732_v4 = vadd.f32 %v731_v49, %v728_v11  ;;  %v735_v57 = vmul.f32 %v734_v52, %v672_v25  ;;  %v748_v15 = vadd.f32 %v747_v26, %v744_v12  ;;  %s2083_s21 = sld [smem:[#allocation2 + $0x79]] }
  0xf6   : > { %v688_v28 = vadd.f32 %v687_v54, %v684_v32  ;;  %v704_v14 = vadd.f32 %v703_v47, %v700_v38  ;;  %v751_v35 = vmul.f32 %v750_v1, %v672_v25  ;;  %v764_v30 = vadd.f32 %v763_v62, %v760_v55  ;;  %s2097_s9 = sld [smem:[#allocation2 + $0x5b]] }
  0xf7   : > { %v720_v17 = vadd.f32 %v719_v51, %v716_v45  ;;  %v736_v41 = vadd.f32 %v735_v57, %v732_v4  ;;  %v767_v46 = vmul.f32 %v766_v27, %v672_v25  ;;  %v776_v39 = vadd.f32 %v2385_v53, %v772_v33  ;;  %s2101_s17 = sld [smem:[#allocation2 + $0x7b]] }
  0xf8   : > { %v752_v13 = vadd.f32 %v751_v35, %v748_v15  ;;  %v783_v16 = vmul.f32 %v782_v6, %v672_v25  ;;  %v792_v56 = vadd.f32 %v2386_v34, %v788_v59  ;;  %v799_v24 = vmul.f32 %v798_v20, %v672_v25  ;;  %v804_v20 = vpop.permute.xlu0 %803  ;;  %s2107_s23 = sld [smem:[#allocation2 + $0x5c]] }
  0xf9   : > { %v768_v43 = vadd.f32 %v767_v46, %v764_v30  ;;  %v812_v58 = vstv %s1975_s22  ;;  %v816_v2 = vstv %s1983_s6  ;;  %v780_v49 = vadd.f32 %v779_v3, %v776_v39  ;;  %s2113_s8 = sld [smem:[#allocation2 + $0x7c]] }
  0xfa   : > { %v796_v60 = vadd.f32 %v795_v21, %v792_v56  ;;  %v813_v52 = vmul.f32 %v2387_v29, %v812_v58  ;;  %v828_v61 = vstv %s1991_s1  ;;  %v832_v1 = vstv %s1996_s12  ;;  %s2119_s20 = sld [smem:[#allocation2 + $0x5d]] }
  0xfb   : > { %v829_v26 = vmul.f32 %v2387_v29, %v828_v61  ;;  %v844_v22 = vstv %s2001_s14  ;;  %v848_v27 = vstv %s2007_s24  ;;  %v784_v10 = vadd.f32 %v783_v16, %v780_v49  ;;  %s2124_s16 = sld [smem:[#allocation2 + $0x7d]]  ;;  %v809_v61 = vpop.permute.xlu1 %808 }
  0xfc   : > { %v800_v33 = vadd.f32 %v799_v24, %v796_v60  ;;  %v845_v59 = vmul.f32 %v2387_v29, %v844_v22  ;;  %v860_v62 = vstv %s2013_s18  ;;  %v864_v3 = vstv %s2019_s29  ;;  %s2126_s7 = sld [smem:[#allocation2 + $0x5e]] }
  0xfd   : > { %v861_v63 = vmul.f32 %v2387_v29, %v860_v62  ;;  %v876_v6 = vstv %s2029_s0  ;;  %v880_v7 = vstv %s2033_s10  ;;  %v892_v25 = vstv %s2039_s4  ;;  %s2128_s19 = sld [smem:[#allocation2 + $0x7e]] }
  0xfe   : > { %v877_v21 = vmul.f32 %v2387_v29, %v876_v6  ;;  %v896_v9 = vstv %s2045_s27  ;;  %v908_v36 = vstv %s2051_s2  ;;  %v893_v42 = vmul.f32 %v2387_v29, %v892_v25  ;;  %s2388_s30 = sld [smem:[#allocation9_spill]] }
  0xff   : > { %v909_v31 = vmul.f32 %v2387_v29, %v908_v36  ;;  %v912_v8 = vstv %s2057_s5  ;;  %v924_v50 = vstv %s2063_s15  ;;  %v928_v11 = vstv %s2071_s11  ;;  %s2130_s22 = sld [smem:[#allocation2 + $0x5f]] }
 0x100   : > { %v925_v23 = vmul.f32 %v2387_v29, %v924_v50  ;;  %v805_v37 = vmul.f32 %v1733_v19, %v804_v20  ;;  %v814_v12 = vadd.f32 %v813_v52, %v688_v28  ;;  %v830_v0 = vadd.f32 %v829_v26, %v704_v14  ;;  %s2132_s6 = sld [smem:[#allocation2 + $0x7f]] }
 0x101   : > { %v846_v55 = vadd.f32 %v845_v59, %v720_v17  ;;  %v862_v5 = vadd.f32 %v861_v63, %v736_v41  ;;  %v878_v32 = vadd.f32 %v877_v21, %v752_v13  ;;  %v894_v47 = vadd.f32 %v893_v42, %v768_v43  ;;  %s2389_s1 = sld [smem:[#allocation8_spill]] }
 0x102   : > { %v817_v44 = vmul.f32 %v816_v2, %v805_v37  ;;  %v833_v54 = vmul.f32 %v832_v1, %v805_v37  ;;  %v849_v40 = vmul.f32 %v848_v27, %v805_v37  ;;  %v865_v38 = vmul.f32 %v864_v3, %v805_v37  ;;  %s2390_s18 = sld [smem:[#allocation71_spill]] }
 0x103   : > { %v881_v48 = vmul.f32 %v880_v7, %v805_v37  ;;  %v897_v45 = vmul.f32 %v896_v9, %v805_v37  ;;  %v910_v18 = vadd.f32 %v909_v31, %v784_v10  ;;  %v913_v35 = vmul.f32 %v912_v8, %v805_v37 }
 0x104   : > { %v818_v51 = vadd.f32 %v817_v44, %v814_v12  ;;  %v834_v4 = vadd.f32 %v833_v54, %v830_v0  ;;  %v850_v57 = vadd.f32 %v849_v40, %v846_v55  ;;  %v866_v28 = vadd.f32 %v865_v38, %v862_v5  ;;  %v1280_v39 = vld [vmem:[%s2388_s30 + $0x18] sm:$0xff] }
 0x105   : > { %v882_v14 = vadd.f32 %v881_v48, %v878_v32  ;;  %v898_v15 = vadd.f32 %v897_v45, %v894_v47  ;;  %v926_v17 = vadd.f32 %v925_v23, %v800_v33  ;;  %v929_v41 = vmul.f32 %v928_v11, %v805_v37 }
 0x106   : > { %v820_v30 = vstv %s2075_s28  ;;  %v824_v46 = vstv %s2077_s25  ;;  %v836_v13 = vstv %s2079_s3  ;;  %v914_v53 = vadd.f32 %v913_v35, %v910_v18 }
 0x107   : > { %v821_v16 = vmul.f32 %v1280_v39, %v820_v30  ;;  %v837_v34 = vmul.f32 %v1280_v39, %v836_v13  ;;  %v840_v56 = vstv %s2083_s21  ;;  %v930_v43 = vadd.f32 %v929_v41, %v926_v17  ;;  %s1225_s12 = sshll.u32 %s2389_s1, 6 }
 0x108   : > { %v852_v24 = vstv %s2087_s26  ;;  %v856_v58 = vstv %s2091_s13  ;;  %v868_v2 = vstv %s2097_s9  ;;  %v872_v29 = vstv %s2101_s17  ;;  %s327_s29 = scalar_lea.vmem %s2390_s18, %s1225_s12 }
 0x109   : > { %v853_v49 = vmul.f32 %v1280_v39, %v852_v24  ;;  %v869_v60 = vmul.f32 %v1280_v39, %v868_v2  ;;  %v884_v52 = vstv %s2107_s23  ;;  %v888_v1 = vstv %s2113_s8 }
 0x10a   : > { %v885_v26 = vmul.f32 %v1280_v39, %v884_v52  ;;  %v900_v22 = vstv %s2119_s20  ;;  %v904_v27 = vstv %s2124_s16  ;;  %v916_v33 = vstv %s2126_s7 }
 0x10b   : > { %v901_v10 = vmul.f32 %v1280_v39, %v900_v22  ;;  %v920_v59 = vstv %s2128_s19  ;;  %v932_v62 = vstv %s2130_s22  ;;  %v917_v63 = vmul.f32 %v1280_v39, %v916_v33 }
 0x10c   : > { %v933_v3 = vmul.f32 %v1280_v39, %v932_v62  ;;  %v936_v6 = vstv %s2132_s6  ;;  %v810_v7 = vmul.f32 %v1733_v19, %v809_v61  ;;  %v822_v20 = vadd.f32 %v821_v16, %v818_v51 }
 0x10d   : > { %v838_v21 = vadd.f32 %v837_v34, %v834_v4  ;;  %v854_v25 = vadd.f32 %v853_v49, %v850_v57  ;;  %v870_v9 = vadd.f32 %v869_v60, %v866_v28  ;;  %v886_v50 = vadd.f32 %v885_v26, %v882_v14 }
 0x10e   : > { %v825_v36 = vmul.f32 %v824_v46, %v810_v7  ;;  %v841_v42 = vmul.f32 %v840_v56, %v810_v7  ;;  %v857_v31 = vmul.f32 %v856_v58, %v810_v7  ;;  %v873_v8 = vmul.f32 %v872_v29, %v810_v7 }
 0x10f   : > { %v889_v23 = vmul.f32 %v888_v1, %v810_v7  ;;  %v902_v11 = vadd.f32 %v901_v10, %v898_v15  ;;  %v905_v37 = vmul.f32 %v904_v27, %v810_v7  ;;  %v918_v5 = vadd.f32 %v917_v63, %v914_v53 }
 0x110   : > { %v826_v12 = vadd.f32 %v825_v36, %v822_v20  ;;  %v842_v0 = vadd.f32 %v841_v42, %v838_v21  ;;  %v858_v55 = vadd.f32 %v857_v31, %v854_v25  ;;  %v874_v19 = vadd.f32 %v873_v8, %v870_v9 }
 0x111   : > { %v921_v32 = vmul.f32 %v920_v59, %v810_v7  ;;  %v890_v44 = vadd.f32 %v889_v23, %v886_v50  ;;  %v934_v54 = vadd.f32 %v933_v3, %v930_v43  ;;  %v937_v40 = vmul.f32 %v936_v6, %v810_v7 }
 0x112   : > { %939 = vst [vmem:[%s327_s29] sm:$0xff] %v826_v12  ;;  %v906_v38 = vadd.f32 %v905_v37, %v902_v11 }
 0x113   : > { %1214 = vst [vmem:[%s327_s29 + $0x8] sm:$0xff] %v842_v0  ;;  %v922_v48 = vadd.f32 %v921_v32, %v918_v5  ;;  %v938_v47 = vadd.f32 %v937_v40, %v934_v54 }
 0x114   : > { %1215 = vst [vmem:[%s327_s29 + $0x10] sm:$0xff] %v858_v55 }
 0x115   : > { %1216 = vst [vmem:[%s327_s29 + $0x18] sm:$0xff] %v874_v19 }
 0x116   : > { %1217 = vst [vmem:[%s327_s29 + $0x20] sm:$0xff] %v890_v44 }
 0x117   : > { %1218 = vst [vmem:[%s327_s29 + $0x28] sm:$0xff] %v906_v38 }
 0x118   : > { %1219 = vst [vmem:[%s327_s29 + $0x30] sm:$0xff] %v922_v48 }
 0x119   : > { %1220 = vst [vmem:[%s327_s29 + $0x38] sm:$0xff] %v938_v47 }
 0x11a PF: > { %s2391_s0 = sld [smem:[#allocation6_spill]] }
 0x11b   : > { %s2392_s21 = sld [smem:[#allocation5_spill]] }
 0x11c   : > { %s2393_s22 = sld [smem:[#allocation7_spill]] }
 0x120   : > { %s17_s23 = sadd.s32 1, %s2391_s0  }
 0x121   : > { %p14_p8 = scmp.ge.s32.totalorder %s17_s23, 4  }
 0x123   :  { %16 = sbr.rel (!%p14_p8) target bundleno = 10 (0xa), region = 95 }
 0x128   :  { %981 = vsyncpa [#allocation3], 1 }
 0x129   :  { %983 = vsyncpa [#allocation3 + $0x1], 1 }

</bundles_post_ra>
